<compile_context>
chip_gen: v7x
topology: tpu7x:2x2x1
jax: 0.10.0
libtpu: 0.0.40
codegen_flags: <defaults>
</compile_context>

<pallas_src>
import functools

import jax
import jax.numpy as jnp
from jax.experimental import pallas as pl
from jax.experimental.pallas import tpu as pltpu

F32 = jnp.float32
BF16 = jnp.bfloat16


# ----------------------------------------------------------------------------
# Fully fused NetGINE forward kernel
# ----------------------------------------------------------------------------
def netgine_fused_kernel(eps_ref,                                   # SMEM (L,)
                         x_ref, ea_ref, s_ref, dt_ref, m_ref,       # graph data
                         wb1c_ref, bb1c_ref, wb2bd_ref, bb2c_ref,   # fused bond enc
                         wm1_ref, bm1_ref, wm2_ref, bm2_ref,        # node MLPs [L,...]
                         whh_ref, wihr_ref, bl_ref,                 # Set2Set LSTM
                         wfc1q_ref, wfc1r_ref, bfc1_ref,            # head fc1 (split)
                         wfc2_ref, bfc2_ref,                        # head fc2
                         out_ref, *, dim, num_layers, steps):
    x = x_ref[...]                            # [N, dim] f32 (feature-padded)
    S = s_ref[...]                            # [E, N] bf16 one-hot (edge -> src)
    Dt = dt_ref[...]                          # [N, E] bf16 one-hot (dst -> edge), pre-transposed
    mask = m_ref[...] > 0.5                   # [B, N] graph membership mask
    B = mask.shape[0]

    # -------- fused bond encoder: all 6 layers' edge embeddings in 2 matmuls --
    ea_bf = ea_ref[...].astype(BF16)          # [E, 4]
    h1_all = jnp.maximum(
        jnp.dot(ea_bf, wb1c_ref[...], preferred_element_type=F32)
        + bb1c_ref[...], 0.0)                                        # [E, L*dim]
    edge_emb_all = (jnp.dot(h1_all.astype(BF16), wb2bd_ref[...],
                            preferred_element_type=F32)
                    + bb2c_ref[...])                                 # [E, L*dim]

    # -------- 6 fused GINConv layers (static unroll at toy size) -------------
    for l in range(num_layers):
        eps = eps_ref[l]
        edge_emb = edge_emb_all[:, l * dim:(l + 1) * dim]            # [E, dim]

        x_bf = x.astype(BF16)
        # message: relu(x[src] + e); gather via bf16 one-hot matmul (f32 accum)
        xj = jnp.dot(S, x_bf, preferred_element_type=F32)            # [E, dim]
        msg = jnp.maximum(xj + edge_emb, 0.0)
        # scatter-add to dst: plain NN matmul with pre-transposed one-hot
        agg = jnp.dot(Dt, msg.astype(BF16), preferred_element_type=F32)  # [N, dim]

        z = (1.0 + eps) * x + agg

        # node MLP: Linear -> ReLU -> Linear, then outer F.relu from forward()
        h2 = jnp.maximum(
            jnp.dot(z.astype(BF16), wm1_ref[l], preferred_element_type=F32)
            + bm1_ref[l], 0.0)
        x = jnp.maximum(
            jnp.dot(h2.astype(BF16), wm2_ref[l], preferred_element_type=F32)
            + bm2_ref[l], 0.0)

    # -------- Set2Set (processing_steps LSTM + attention) --------------------
    x_bf = x.astype(BF16)                     # [N, dim]
    xt_bf = jnp.transpose(x).astype(BF16)     # [dim, N]  transposed ONCE (hoisted)
    whh = whh_ref[...]                        # [dim, 4*dim] (wih_q folded in host-side)
    wihr = wihr_ref[...]                      # [dim, 4*dim]
    bl = bl_ref[...]                          # [1, 4*dim] f32

    h = jnp.zeros((B, dim), F32)
    c = jnp.zeros((B, dim), F32)
    r = jnp.zeros((B, dim), F32)

    for _ in range(steps):
        # LSTM cell (PyTorch gate order i, f, g, o); q-half folded into whh
        gates = (jnp.dot(h.astype(BF16), whh, preferred_element_type=F32)
                 + jnp.dot(r.astype(BF16), wihr, preferred_element_type=F32)
                 + bl)
        i_g = jax.nn.sigmoid(gates[:, 0 * dim:1 * dim])
        f_g = jax.nn.sigmoid(gates[:, 1 * dim:2 * dim])
        g_g = jnp.tanh(gates[:, 2 * dim:3 * dim])
        o_g = jax.nn.sigmoid(gates[:, 3 * dim:4 * dim])
        c = f_g * c + i_g * g_g
        h = o_g * jnp.tanh(c)                                        # == q

        # lane-dense [B, N] attention + per-graph softmax (torch_geometric)
        e_bn = jnp.dot(h.astype(BF16), xt_bf, preferred_element_type=F32)  # [B, N]
        e_bn = jnp.where(mask, e_bn, jnp.float32(-1e30))
        e_max = jnp.max(e_bn, axis=-1, keepdims=True)                # [B, 1]
        p = jnp.exp(e_bn - e_max)                                    # masked -> 0
        den = jnp.sum(p, axis=-1, keepdims=True) + 1e-16             # tg softmax eps
        a_bn = p * pl.reciprocal(den, approx=True)                   # EUP divide
        r = jnp.dot(a_bn.astype(BF16), x_bf, preferred_element_type=F32)   # [B, dim]

    q = h
    # -------- head: fc1 -> relu -> fc2 ---------------------------------------
    y = jnp.maximum(
        jnp.dot(q.astype(BF16), wfc1q_ref[...], preferred_element_type=F32)
        + jnp.dot(r.astype(BF16), wfc1r_ref[...], preferred_element_type=F32)
        + bfc1_ref[...], 0.0)
    out_ref[...] = (jnp.dot(y.astype(BF16), wfc2_ref[...],
                            preferred_element_type=F32) + bfc2_ref[...])


# ----------------------------------------------------------------------------
# Parameter construction (deterministic; not a checkpoint load)
# ----------------------------------------------------------------------------
def _linear(key, fin, fout):
    kw, kb = jax.random.split(key)
    w = jax.random.normal(kw, (fin, fout), F32) / jnp.sqrt(jnp.float32(fin))
    b = jax.random.normal(kb, (1, fout), F32) * 0.01
    return w, b


def _pad2(a, rows, cols):
    return jnp.pad(a, ((0, rows - a.shape[0]), (0, cols - a.shape[1])))


def make_gin_layer_params(key, emb_dim, dim1, dim2, pad_dim):
    """One GINConv (bond encoder + node MLP), zero-padded to a common width.

    Zero-padding weight/bias columns/rows is exact: padded feature columns stay
    identically 0 through every Linear/ReLU, so the first `dim2` outputs match
    the unpadded computation bit-for-bit.
    """
    ks = jax.random.split(key, 4)
    wb1, bb1 = _linear(ks[0], emb_dim, dim1)
    wb2, bb2 = _linear(ks[1], dim1, dim1)
    wm1, bm1 = _linear(ks[2], dim1, dim1)
    wm2, bm2 = _linear(ks[3], dim1, dim2)
    return dict(
        wb1=_pad2(wb1, emb_dim, pad_dim), bb1=_pad2(bb1, 1, pad_dim),
        wb2=_pad2(wb2, pad_dim, pad_dim), bb2=_pad2(bb2, 1, pad_dim),
        wm1=_pad2(wm1, pad_dim, pad_dim), bm1=_pad2(bm1, 1, pad_dim),
        wm2=_pad2(wm2, pad_dim, pad_dim), bm2=_pad2(bm2, 1, pad_dim),
    )


def fuse_gin_params(layers, dim):
    """Stack node-MLP weights; fuse ALL bond encoders into two wide matmuls.

    wb1_cat  : [4, L*dim]        -- one [E,4]x[4,L*dim] dot covers all layers
    wb2_bd   : [L*dim, L*dim]    -- block-diagonal (exact; zero cross-blocks)
    """
    L = len(layers)
    wb1_cat = jnp.concatenate([lp["wb1"] for lp in layers], axis=1)
    bb1_cat = jnp.concatenate([lp["bb1"] for lp in layers], axis=1)
    wb2_bd = jnp.zeros((L * dim, L * dim), F32)
    for l, lp in enumerate(layers):
        wb2_bd = wb2_bd.at[l * dim:(l + 1) * dim, l * dim:(l + 1) * dim].set(lp["wb2"])
    bb2_cat = jnp.concatenate([lp["bb2"] for lp in layers], axis=1)
    return dict(
        wb1_cat=wb1_cat.astype(BF16), bb1_cat=bb1_cat,
        wb2_bd=wb2_bd.astype(BF16), bb2_cat=bb2_cat,
        wm1=jnp.stack([lp["wm1"] for lp in layers]).astype(BF16),
        bm1=jnp.stack([lp["bm1"] for lp in layers]),
        wm2=jnp.stack([lp["wm2"] for lp in layers]).astype(BF16),
        bm2=jnp.stack([lp["bm2"] for lp in layers]),
    )


def make_head_params(key, dim, out_classes=12):
    ks = jax.random.split(key, 4)
    wih, bih = _linear(ks[0], 2 * dim, 4 * dim)   # LSTM input  -> gates
    whh, bhh = _linear(ks[1], dim, 4 * dim)       # LSTM hidden -> gates
    wfc1, bfc1 = _linear(ks[2], 2 * dim, dim)
    wfc2, bfc2 = _linear(ks[3], dim, out_classes)
    return dict(
        # q-half of q_star equals h_{t-1} (both zero at t=0), so
        # q@wih_q + h@whh == h@(wih_q + whh): fold host-side (exact).
        whh_eff=(wih[:dim] + whh).astype(BF16),
        wih_r=wih[dim:].astype(BF16),
        bl=bih + bhh,
        wfc1_q=wfc1[:dim].astype(BF16), wfc1_r=wfc1[dim:].astype(BF16), bfc1=bfc1,
        wfc2=wfc2.astype(BF16), bfc2=bfc2,
    )


# ----------------------------------------------------------------------------
# NetGINE forward (single fused pallas_call)
# ----------------------------------------------------------------------------
def net_gine_forward(x, edge_index, edge_attr, batch, params, *, dim,
                     num_graphs, steps=6, out_classes=12):
    N, f_in = x.shape
    B = num_graphs
    L = int(params["eps"].shape[0])

    src, dst = edge_index[0], edge_index[1]
    node_ids = jnp.arange(N, dtype=edge_index.dtype)
    graph_ids = jnp.arange(B, dtype=batch.dtype)
    # bf16 0/1 matrices (exact values). The dst one-hot is built ALREADY
    # transposed ([N, E]) so the in-kernel scatter-add is a plain NN matmul.
    S = (src[:, None] == node_ids[None, :]).astype(BF16)       # [E, N]
    Dt = (node_ids[:, None] == dst[None, :]).astype(BF16)      # [N, E]
    M = (graph_ids[:, None] == batch[None, :]).astype(BF16)    # [B, N]

    x_pad = jnp.pad(x, ((0, 0), (0, dim - f_in)))               # [N, dim]

    g = params["gin"]
    h = params["head"]
    kern = functools.partial(netgine_fused_kernel, dim=dim,
                             num_layers=L, steps=steps)
    vmem = pl.BlockSpec(memory_space=pltpu.MemorySpace.VMEM)
    smem = pl.BlockSpec(memory_space=pltpu.MemorySpace.SMEM)

    return pl.pallas_call(
        kern,
        out_shape=jax.ShapeDtypeStruct((B, out_classes), F32),
        in_specs=[smem] + [vmem] * 21,
        out_specs=vmem,
        compiler_params=pltpu.CompilerParams(
            # toy footprint is <1 MiB; 32 MiB keeps headroom on v7x (64 MiB/TC)
            vmem_limit_bytes=32 * 1024 * 1024),
    )(params["eps"], x_pad, edge_attr, S, Dt, M,
      g["wb1_cat"], g["bb1_cat"], g["wb2_bd"], g["bb2_cat"],
      g["wm1"], g["bm1"], g["wm2"], g["bm2"],
      h["whh_eff"], h["wih_r"], h["bl"],
      h["wfc1_q"], h["wfc1_r"], h["bfc1"], h["wfc2"], h["bfc2"])


# ----------------------------------------------------------------------------
# Example run
# ----------------------------------------------------------------------------
if __name__ == "__main__":
    key = jax.random.PRNGKey(0)

    # Small, module-consistent shapes
    num_features = 6       # node feature dim (fixed in NetGINE)
    edge_dim = 4           # edge feature dim (emb_dim=4 in GINConv)
    dim = 32               # hidden dim
    N = 16                 # nodes (8 per graph)
    B = 2                  # graphs
    E_per = 16
    E = B * E_per
    num_layers = 6

    k_x, k_ea, k_e0, k_e1, k_p = jax.random.split(key, 5)
    x = jax.random.normal(k_x, (N, num_features), F32)
    edge_attr = jax.random.normal(k_ea, (E, edge_dim), F32)

    # edges stay within each graph's node range
    src0 = jax.random.randint(k_e0, (E_per,), 0, 8)
    dst0 = jax.random.randint(jax.random.fold_in(k_e0, 1), (E_per,), 0, 8)
    src1 = jax.random.randint(k_e1, (E_per,), 8, 16)
    dst1 = jax.random.randint(jax.random.fold_in(k_e1, 1), (E_per,), 8, 16)
    edge_index = jnp.stack([jnp.concatenate([src0, src1]),
                            jnp.concatenate([dst0, dst1])]).astype(jnp.int32)
    batch = jnp.concatenate([jnp.zeros((8,), jnp.int32),
                             jnp.ones((8,), jnp.int32)])

    # conv1 uses (emb_dim=4, dim1=6, dim2=dim); conv2..6 use (4, dim, dim);
    # all zero-padded to a common `dim`-wide layout, then fused/stacked.
    pk = jax.random.split(k_p, num_layers + 1)
    layers = [make_gin_layer_params(pk[0], edge_dim, num_features, dim, dim)]
    for i in range(1, num_layers):
        layers.append(make_gin_layer_params(pk[i], edge_dim, dim, dim, dim))

    params = dict(
        gin=fuse_gin_params(layers, dim),
        head=make_head_params(pk[num_layers], dim),
        eps=jnp.zeros((num_layers,), F32),   # one eps per GINConv (init 0)
    )

    out = net_gine_forward(x, edge_index, edge_attr, batch, params,
                           dim=dim, num_graphs=B)
    out = jax.block_until_ready(out)
    assert out.shape == (B, 12), out.shape
    assert bool(jnp.all(jnp.isfinite(out)))
    print("KERNEL_OK")
</pallas_src>

<mosaic_0001>
module attributes {stable_mosaic.version = 11 : i64} {
  func.func @netgine_fused_kernel(%arg0: memref<6xf32, #tpu.memory_space<smem>>, %arg1: memref<16x32xf32, #tpu.memory_space<vmem>>, %arg2: memref<32x4xf32, #tpu.memory_space<vmem>>, %arg3: memref<32x16xbf16, #tpu.memory_space<vmem>>, %arg4: memref<16x32xbf16, #tpu.memory_space<vmem>>, %arg5: memref<2x16xbf16, #tpu.memory_space<vmem>>, %arg6: memref<4x192xbf16, #tpu.memory_space<vmem>>, %arg7: memref<1x192xf32, #tpu.memory_space<vmem>>, %arg8: memref<192x192xbf16, #tpu.memory_space<vmem>>, %arg9: memref<1x192xf32, #tpu.memory_space<vmem>>, %arg10: memref<6x32x32xbf16, #tpu.memory_space<vmem>>, %arg11: memref<6x1x32xf32, #tpu.memory_space<vmem>>, %arg12: memref<6x32x32xbf16, #tpu.memory_space<vmem>>, %arg13: memref<6x1x32xf32, #tpu.memory_space<vmem>>, %arg14: memref<32x128xbf16, #tpu.memory_space<vmem>>, %arg15: memref<32x128xbf16, #tpu.memory_space<vmem>>, %arg16: memref<1x128xf32, #tpu.memory_space<vmem>>, %arg17: memref<32x32xbf16, #tpu.memory_space<vmem>>, %arg18: memref<32x32xbf16, #tpu.memory_space<vmem>>, %arg19: memref<1x32xf32, #tpu.memory_space<vmem>>, %arg20: memref<32x12xbf16, #tpu.memory_space<vmem>>, %arg21: memref<1x12xf32, #tpu.memory_space<vmem>>, %arg22: memref<2x12xf32, #tpu.memory_space<vmem>>) attributes {dimension_semantics = [], scalar_prefetch = 0 : i64, scratch_operands = 0 : i64, tpu.core_type = #tpu.core_type<tc>} {
    %c0 = arith.constant 0 : index
    %c0_0 = arith.constant 0 : index
    %0 = vector.load %arg1[%c0, %c0_0] : memref<16x32xf32, #tpu.memory_space<vmem>>, vector<16x32xf32>
    %c0_1 = arith.constant 0 : index
    %c0_2 = arith.constant 0 : index
    %1 = vector.load %arg3[%c0_1, %c0_2] : memref<32x16xbf16, #tpu.memory_space<vmem>>, vector<32x16xbf16>
    %c0_3 = arith.constant 0 : index
    %c0_4 = arith.constant 0 : index
    %2 = vector.load %arg4[%c0_3, %c0_4] : memref<16x32xbf16, #tpu.memory_space<vmem>>, vector<16x32xbf16>
    %c0_5 = arith.constant 0 : index
    %c0_6 = arith.constant 0 : index
    %3 = vector.load %arg5[%c0_5, %c0_6] : memref<2x16xbf16, #tpu.memory_space<vmem>>, vector<2x16xbf16>
    %cst = arith.constant 5.000000e-01 : bf16
    %4 = vector.broadcast %cst : bf16 to vector<2x16xbf16>
    %5 = arith.cmpf ogt, %3, %4 : vector<2x16xbf16>
    %c0_7 = arith.constant 0 : index
    %c0_8 = arith.constant 0 : index
    %6 = vector.load %arg2[%c0_7, %c0_8] : memref<32x4xf32, #tpu.memory_space<vmem>>, vector<32x4xf32>
    %7 = arith.truncf %6 : vector<32x4xf32> to vector<32x4xbf16>
    %c0_9 = arith.constant 0 : index
    %c0_10 = arith.constant 0 : index
    %8 = vector.load %arg6[%c0_9, %c0_10] : memref<4x192xbf16, #tpu.memory_space<vmem>>, vector<4x192xbf16>
    %cst_11 = arith.constant dense<0.000000e+00> : vector<32x192xf32>
    %9 = tpu.matmul %7, %8, %cst_11 {dimension_numbers = #tpu.dot_dimension_numbers<[1], [0], [0], [1], [0, 0, 1, 1], [], []>} : vector<32x4xbf16>, vector<4x192xbf16>, vector<32x192xf32> -> vector<32x192xf32>
    %c0_12 = arith.constant 0 : index
    %c0_13 = arith.constant 0 : index
    %10 = vector.load %arg7[%c0_12, %c0_13] : memref<1x192xf32, #tpu.memory_space<vmem>>, vector<1x192xf32>
    %11 = vector.broadcast %10 : vector<1x192xf32> to vector<32x192xf32>
    %12 = arith.addf %9, %11 : vector<32x192xf32>
    %cst_14 = arith.constant 0.000000e+00 : f32
    %13 = vector.broadcast %cst_14 : f32 to vector<32x192xf32>
    %14 = arith.maximumf %12, %13 : vector<32x192xf32>
    %15 = arith.truncf %14 : vector<32x192xf32> to vector<32x192xbf16>
    %c0_15 = arith.constant 0 : index
    %c0_16 = arith.constant 0 : index
    %16 = vector.load %arg8[%c0_15, %c0_16] : memref<192x192xbf16, #tpu.memory_space<vmem>>, vector<192x192xbf16>
    %cst_17 = arith.constant dense<0.000000e+00> : vector<32x192xf32>
    %17 = tpu.matmul %15, %16, %cst_17 {dimension_numbers = #tpu.dot_dimension_numbers<[1], [0], [0], [1], [0, 0, 1, 1], [], []>} : vector<32x192xbf16>, vector<192x192xbf16>, vector<32x192xf32> -> vector<32x192xf32>
    %c0_18 = arith.constant 0 : index
    %c0_19 = arith.constant 0 : index
    %18 = vector.load %arg9[%c0_18, %c0_19] : memref<1x192xf32, #tpu.memory_space<vmem>>, vector<1x192xf32>
    %19 = vector.broadcast %18 : vector<1x192xf32> to vector<32x192xf32>
    %20 = arith.addf %17, %19 : vector<32x192xf32>
    %c0_20 = arith.constant 0 : index
    %21 = memref.load %arg0[%c0_20] : memref<6xf32, #tpu.memory_space<smem>>
    %22 = vector.extract_strided_slice %20 {offsets = [0, 0], sizes = [32, 32], strides = [1, 1]} : vector<32x192xf32> to vector<32x32xf32>
    %23 = arith.truncf %0 : vector<16x32xf32> to vector<16x32xbf16>
    %cst_21 = arith.constant dense<0.000000e+00> : vector<32x32xf32>
    %24 = tpu.matmul %1, %23, %cst_21 {dimension_numbers = #tpu.dot_dimension_numbers<[1], [0], [0], [1], [0, 0, 1, 1], [], []>} : vector<32x16xbf16>, vector<16x32xbf16>, vector<32x32xf32> -> vector<32x32xf32>
    %25 = arith.addf %24, %22 : vector<32x32xf32>
    %cst_22 = arith.constant 0.000000e+00 : f32
    %26 = vector.broadcast %cst_22 : f32 to vector<32x32xf32>
    %27 = arith.maximumf %25, %26 : vector<32x32xf32>
    %28 = arith.truncf %27 : vector<32x32xf32> to vector<32x32xbf16>
    %cst_23 = arith.constant dense<0.000000e+00> : vector<16x32xf32>
    %29 = tpu.matmul %2, %28, %cst_23 {dimension_numbers = #tpu.dot_dimension_numbers<[1], [0], [0], [1], [0, 0, 1, 1], [], []>} : vector<16x32xbf16>, vector<32x32xbf16>, vector<16x32xf32> -> vector<16x32xf32>
    %cst_24 = arith.constant 1.000000e+00 : f32
    %30 = arith.addf %cst_24, %21 : f32
    %31 = vector.broadcast %30 : f32 to vector<16x32xf32>
    %32 = arith.mulf %31, %0 : vector<16x32xf32>
    %33 = arith.addf %32, %29 : vector<16x32xf32>
    %34 = arith.truncf %33 : vector<16x32xf32> to vector<16x32xbf16>
    %c0_25 = arith.constant 0 : index
    %c0_26 = arith.constant 0 : index
    %c0_27 = arith.constant 0 : index
    %35 = vector.load %arg10[%c0_25, %c0_26, %c0_27] : memref<6x32x32xbf16, #tpu.memory_space<vmem>>, vector<1x32x32xbf16>
    %36 = vector.shape_cast %35 : vector<1x32x32xbf16> to vector<32x32xbf16>
    %cst_28 = arith.constant dense<0.000000e+00> : vector<16x32xf32>
    %37 = tpu.matmul %34, %36, %cst_28 {dimension_numbers = #tpu.dot_dimension_numbers<[1], [0], [0], [1], [0, 0, 1, 1], [], []>} : vector<16x32xbf16>, vector<32x32xbf16>, vector<16x32xf32> -> vector<16x32xf32>
    %c0_29 = arith.constant 0 : index
    %c0_30 = arith.constant 0 : index
    %c0_31 = arith.constant 0 : index
    %38 = vector.load %arg11[%c0_29, %c0_30, %c0_31] : memref<6x1x32xf32, #tpu.memory_space<vmem>>, vector<1x1x32xf32>
    %39 = vector.shape_cast %38 : vector<1x1x32xf32> to vector<1x32xf32>
    %40 = vector.broadcast %39 : vector<1x32xf32> to vector<16x32xf32>
    %41 = arith.addf %37, %40 : vector<16x32xf32>
    %cst_32 = arith.constant 0.000000e+00 : f32
    %42 = vector.broadcast %cst_32 : f32 to vector<16x32xf32>
    %43 = arith.maximumf %41, %42 : vector<16x32xf32>
    %44 = arith.truncf %43 : vector<16x32xf32> to vector<16x32xbf16>
    %c0_33 = arith.constant 0 : index
    %c0_34 = arith.constant 0 : index
    %c0_35 = arith.constant 0 : index
    %45 = vector.load %arg12[%c0_33, %c0_34, %c0_35] : memref<6x32x32xbf16, #tpu.memory_space<vmem>>, vector<1x32x32xbf16>
    %46 = vector.shape_cast %45 : vector<1x32x32xbf16> to vector<32x32xbf16>
    %cst_36 = arith.constant dense<0.000000e+00> : vector<16x32xf32>
    %47 = tpu.matmul %44, %46, %cst_36 {dimension_numbers = #tpu.dot_dimension_numbers<[1], [0], [0], [1], [0, 0, 1, 1], [], []>} : vector<16x32xbf16>, vector<32x32xbf16>, vector<16x32xf32> -> vector<16x32xf32>
    %c0_37 = arith.constant 0 : index
    %c0_38 = arith.constant 0 : index
    %c0_39 = arith.constant 0 : index
    %48 = vector.load %arg13[%c0_37, %c0_38, %c0_39] : memref<6x1x32xf32, #tpu.memory_space<vmem>>, vector<1x1x32xf32>
    %49 = vector.shape_cast %48 : vector<1x1x32xf32> to vector<1x32xf32>
    %50 = vector.broadcast %49 : vector<1x32xf32> to vector<16x32xf32>
    %51 = arith.addf %47, %50 : vector<16x32xf32>
    %cst_40 = arith.constant 0.000000e+00 : f32
    %52 = vector.broadcast %cst_40 : f32 to vector<16x32xf32>
    %53 = arith.maximumf %51, %52 : vector<16x32xf32>
    %c1 = arith.constant 1 : index
    %54 = memref.load %arg0[%c1] : memref<6xf32, #tpu.memory_space<smem>>
    %55 = vector.extract_strided_slice %20 {offsets = [0, 32], sizes = [32, 32], strides = [1, 1]} : vector<32x192xf32> to vector<32x32xf32>
    %56 = arith.truncf %53 : vector<16x32xf32> to vector<16x32xbf16>
    %cst_41 = arith.constant dense<0.000000e+00> : vector<32x32xf32>
    %57 = tpu.matmul %1, %56, %cst_41 {dimension_numbers = #tpu.dot_dimension_numbers<[1], [0], [0], [1], [0, 0, 1, 1], [], []>} : vector<32x16xbf16>, vector<16x32xbf16>, vector<32x32xf32> -> vector<32x32xf32>
    %58 = arith.addf %57, %55 : vector<32x32xf32>
    %cst_42 = arith.constant 0.000000e+00 : f32
    %59 = vector.broadcast %cst_42 : f32 to vector<32x32xf32>
    %60 = arith.maximumf %58, %59 : vector<32x32xf32>
    %61 = arith.truncf %60 : vector<32x32xf32> to vector<32x32xbf16>
    %cst_43 = arith.constant dense<0.000000e+00> : vector<16x32xf32>
    %62 = tpu.matmul %2, %61, %cst_43 {dimension_numbers = #tpu.dot_dimension_numbers<[1], [0], [0], [1], [0, 0, 1, 1], [], []>} : vector<16x32xbf16>, vector<32x32xbf16>, vector<16x32xf32> -> vector<16x32xf32>
    %cst_44 = arith.constant 1.000000e+00 : f32
    %63 = arith.addf %cst_44, %54 : f32
    %64 = vector.broadcast %63 : f32 to vector<16x32xf32>
    %65 = arith.mulf %64, %53 : vector<16x32xf32>
    %66 = arith.addf %65, %62 : vector<16x32xf32>
    %67 = arith.truncf %66 : vector<16x32xf32> to vector<16x32xbf16>
    %c1_45 = arith.constant 1 : index
    %c0_46 = arith.constant 0 : index
    %c0_47 = arith.constant 0 : index
    %68 = vector.load %arg10[%c1_45, %c0_46, %c0_47] : memref<6x32x32xbf16, #tpu.memory_space<vmem>>, vector<1x32x32xbf16>
    %69 = vector.shape_cast %68 : vector<1x32x32xbf16> to vector<32x32xbf16>
    %cst_48 = arith.constant dense<0.000000e+00> : vector<16x32xf32>
    %70 = tpu.matmul %67, %69, %cst_48 {dimension_numbers = #tpu.dot_dimension_numbers<[1], [0], [0], [1], [0, 0, 1, 1], [], []>} : vector<16x32xbf16>, vector<32x32xbf16>, vector<16x32xf32> -> vector<16x32xf32>
    %c1_49 = arith.constant 1 : index
    %c0_50 = arith.constant 0 : index
    %c0_51 = arith.constant 0 : index
    %71 = vector.load %arg11[%c1_49, %c0_50, %c0_51] : memref<6x1x32xf32, #tpu.memory_space<vmem>>, vector<1x1x32xf32>
    %72 = vector.shape_cast %71 : vector<1x1x32xf32> to vector<1x32xf32>
    %73 = vector.broadcast %72 : vector<1x32xf32> to vector<16x32xf32>
    %74 = arith.addf %70, %73 : vector<16x32xf32>
    %cst_52 = arith.constant 0.000000e+00 : f32
    %75 = vector.broadcast %cst_52 : f32 to vector<16x32xf32>
    %76 = arith.maximumf %74, %75 : vector<16x32xf32>
    %77 = arith.truncf %76 : vector<16x32xf32> to vector<16x32xbf16>
    %c1_53 = arith.constant 1 : index
    %c0_54 = arith.constant 0 : index
    %c0_55 = arith.constant 0 : index
    %78 = vector.load %arg12[%c1_53, %c0_54, %c0_55] : memref<6x32x32xbf16, #tpu.memory_space<vmem>>, vector<1x32x32xbf16>
    %79 = vector.shape_cast %78 : vector<1x32x32xbf16> to vector<32x32xbf16>
    %cst_56 = arith.constant dense<0.000000e+00> : vector<16x32xf32>
    %80 = tpu.matmul %77, %79, %cst_56 {dimension_numbers = #tpu.dot_dimension_numbers<[1], [0], [0], [1], [0, 0, 1, 1], [], []>} : vector<16x32xbf16>, vector<32x32xbf16>, vector<16x32xf32> -> vector<16x32xf32>
    %c1_57 = arith.constant 1 : index
    %c0_58 = arith.constant 0 : index
    %c0_59 = arith.constant 0 : index
    %81 = vector.load %arg13[%c1_57, %c0_58, %c0_59] : memref<6x1x32xf32, #tpu.memory_space<vmem>>, vector<1x1x32xf32>
    %82 = vector.shape_cast %81 : vector<1x1x32xf32> to vector<1x32xf32>
    %83 = vector.broadcast %82 : vector<1x32xf32> to vector<16x32xf32>
    %84 = arith.addf %80, %83 : vector<16x32xf32>
    %cst_60 = arith.constant 0.000000e+00 : f32
    %85 = vector.broadcast %cst_60 : f32 to vector<16x32xf32>
    %86 = arith.maximumf %84, %85 : vector<16x32xf32>
    %c2 = arith.constant 2 : index
    %87 = memref.load %arg0[%c2] : memref<6xf32, #tpu.memory_space<smem>>
    %88 = vector.extract_strided_slice %20 {offsets = [0, 64], sizes = [32, 32], strides = [1, 1]} : vector<32x192xf32> to vector<32x32xf32>
    %89 = arith.truncf %86 : vector<16x32xf32> to vector<16x32xbf16>
    %cst_61 = arith.constant dense<0.000000e+00> : vector<32x32xf32>
    %90 = tpu.matmul %1, %89, %cst_61 {dimension_numbers = #tpu.dot_dimension_numbers<[1], [0], [0], [1], [0, 0, 1, 1], [], []>} : vector<32x16xbf16>, vector<16x32xbf16>, vector<32x32xf32> -> vector<32x32xf32>
    %91 = arith.addf %90, %88 : vector<32x32xf32>
    %cst_62 = arith.constant 0.000000e+00 : f32
    %92 = vector.broadcast %cst_62 : f32 to vector<32x32xf32>
    %93 = arith.maximumf %91, %92 : vector<32x32xf32>
    %94 = arith.truncf %93 : vector<32x32xf32> to vector<32x32xbf16>
    %cst_63 = arith.constant dense<0.000000e+00> : vector<16x32xf32>
    %95 = tpu.matmul %2, %94, %cst_63 {dimension_numbers = #tpu.dot_dimension_numbers<[1], [0], [0], [1], [0, 0, 1, 1], [], []>} : vector<16x32xbf16>, vector<32x32xbf16>, vector<16x32xf32> -> vector<16x32xf32>
    %cst_64 = arith.constant 1.000000e+00 : f32
    %96 = arith.addf %cst_64, %87 : f32
    %97 = vector.broadcast %96 : f32 to vector<16x32xf32>
    %98 = arith.mulf %97, %86 : vector<16x32xf32>
    %99 = arith.addf %98, %95 : vector<16x32xf32>
    %100 = arith.truncf %99 : vector<16x32xf32> to vector<16x32xbf16>
    %c2_65 = arith.constant 2 : index
    %c0_66 = arith.constant 0 : index
    %c0_67 = arith.constant 0 : index
    %101 = vector.load %arg10[%c2_65, %c0_66, %c0_67] : memref<6x32x32xbf16, #tpu.memory_space<vmem>>, vector<1x32x32xbf16>
    %102 = vector.shape_cast %101 : vector<1x32x32xbf16> to vector<32x32xbf16>
    %cst_68 = arith.constant dense<0.000000e+00> : vector<16x32xf32>
    %103 = tpu.matmul %100, %102, %cst_68 {dimension_numbers = #tpu.dot_dimension_numbers<[1], [0], [0], [1], [0, 0, 1, 1], [], []>} : vector<16x32xbf16>, vector<32x32xbf16>, vector<16x32xf32> -> vector<16x32xf32>
    %c2_69 = arith.constant 2 : index
    %c0_70 = arith.constant 0 : index
    %c0_71 = arith.constant 0 : index
    %104 = vector.load %arg11[%c2_69, %c0_70, %c0_71] : memref<6x1x32xf32, #tpu.memory_space<vmem>>, vector<1x1x32xf32>
    %105 = vector.shape_cast %104 : vector<1x1x32xf32> to vector<1x32xf32>
    %106 = vector.broadcast %105 : vector<1x32xf32> to vector<16x32xf32>
    %107 = arith.addf %103, %106 : vector<16x32xf32>
    %cst_72 = arith.constant 0.000000e+00 : f32
    %108 = vector.broadcast %cst_72 : f32 to vector<16x32xf32>
    %109 = arith.maximumf %107, %108 : vector<16x32xf32>
    %110 = arith.truncf %109 : vector<16x32xf32> to vector<16x32xbf16>
    %c2_73 = arith.constant 2 : index
    %c0_74 = arith.constant 0 : index
    %c0_75 = arith.constant 0 : index
    %111 = vector.load %arg12[%c2_73, %c0_74, %c0_75] : memref<6x32x32xbf16, #tpu.memory_space<vmem>>, vector<1x32x32xbf16>
    %112 = vector.shape_cast %111 : vector<1x32x32xbf16> to vector<32x32xbf16>
    %cst_76 = arith.constant dense<0.000000e+00> : vector<16x32xf32>
    %113 = tpu.matmul %110, %112, %cst_76 {dimension_numbers = #tpu.dot_dimension_numbers<[1], [0], [0], [1], [0, 0, 1, 1], [], []>} : vector<16x32xbf16>, vector<32x32xbf16>, vector<16x32xf32> -> vector<16x32xf32>
    %c2_77 = arith.constant 2 : index
    %c0_78 = arith.constant 0 : index
    %c0_79 = arith.constant 0 : index
    %114 = vector.load %arg13[%c2_77, %c0_78, %c0_79] : memref<6x1x32xf32, #tpu.memory_space<vmem>>, vector<1x1x32xf32>
    %115 = vector.shape_cast %114 : vector<1x1x32xf32> to vector<1x32xf32>
    %116 = vector.broadcast %115 : vector<1x32xf32> to vector<16x32xf32>
    %117 = arith.addf %113, %116 : vector<16x32xf32>
    %cst_80 = arith.constant 0.000000e+00 : f32
    %118 = vector.broadcast %cst_80 : f32 to vector<16x32xf32>
    %119 = arith.maximumf %117, %118 : vector<16x32xf32>
    %c3 = arith.constant 3 : index
    %120 = memref.load %arg0[%c3] : memref<6xf32, #tpu.memory_space<smem>>
    %121 = vector.extract_strided_slice %20 {offsets = [0, 96], sizes = [32, 32], strides = [1, 1]} : vector<32x192xf32> to vector<32x32xf32>
    %122 = arith.truncf %119 : vector<16x32xf32> to vector<16x32xbf16>
    %cst_81 = arith.constant dense<0.000000e+00> : vector<32x32xf32>
    %123 = tpu.matmul %1, %122, %cst_81 {dimension_numbers = #tpu.dot_dimension_numbers<[1], [0], [0], [1], [0, 0, 1, 1], [], []>} : vector<32x16xbf16>, vector<16x32xbf16>, vector<32x32xf32> -> vector<32x32xf32>
    %124 = arith.addf %123, %121 : vector<32x32xf32>
    %cst_82 = arith.constant 0.000000e+00 : f32
    %125 = vector.broadcast %cst_82 : f32 to vector<32x32xf32>
    %126 = arith.maximumf %124, %125 : vector<32x32xf32>
    %127 = arith.truncf %126 : vector<32x32xf32> to vector<32x32xbf16>
    %cst_83 = arith.constant dense<0.000000e+00> : vector<16x32xf32>
    %128 = tpu.matmul %2, %127, %cst_83 {dimension_numbers = #tpu.dot_dimension_numbers<[1], [0], [0], [1], [0, 0, 1, 1], [], []>} : vector<16x32xbf16>, vector<32x32xbf16>, vector<16x32xf32> -> vector<16x32xf32>
    %cst_84 = arith.constant 1.000000e+00 : f32
    %129 = arith.addf %cst_84, %120 : f32
    %130 = vector.broadcast %129 : f32 to vector<16x32xf32>
    %131 = arith.mulf %130, %119 : vector<16x32xf32>
    %132 = arith.addf %131, %128 : vector<16x32xf32>
    %133 = arith.truncf %132 : vector<16x32xf32> to vector<16x32xbf16>
    %c3_85 = arith.constant 3 : index
    %c0_86 = arith.constant 0 : index
    %c0_87 = arith.constant 0 : index
    %134 = vector.load %arg10[%c3_85, %c0_86, %c0_87] : memref<6x32x32xbf16, #tpu.memory_space<vmem>>, vector<1x32x32xbf16>
    %135 = vector.shape_cast %134 : vector<1x32x32xbf16> to vector<32x32xbf16>
    %cst_88 = arith.constant dense<0.000000e+00> : vector<16x32xf32>
    %136 = tpu.matmul %133, %135, %cst_88 {dimension_numbers = #tpu.dot_dimension_numbers<[1], [0], [0], [1], [0, 0, 1, 1], [], []>} : vector<16x32xbf16>, vector<32x32xbf16>, vector<16x32xf32> -> vector<16x32xf32>
    %c3_89 = arith.constant 3 : index
    %c0_90 = arith.constant 0 : index
    %c0_91 = arith.constant 0 : index
    %137 = vector.load %arg11[%c3_89, %c0_90, %c0_91] : memref<6x1x32xf32, #tpu.memory_space<vmem>>, vector<1x1x32xf32>
    %138 = vector.shape_cast %137 : vector<1x1x32xf32> to vector<1x32xf32>
    %139 = vector.broadcast %138 : vector<1x32xf32> to vector<16x32xf32>
    %140 = arith.addf %136, %139 : vector<16x32xf32>
    %cst_92 = arith.constant 0.000000e+00 : f32
    %141 = vector.broadcast %cst_92 : f32 to vector<16x32xf32>
    %142 = arith.maximumf %140, %141 : vector<16x32xf32>
    %143 = arith.truncf %142 : vector<16x32xf32> to vector<16x32xbf16>
    %c3_93 = arith.constant 3 : index
    %c0_94 = arith.constant 0 : index
    %c0_95 = arith.constant 0 : index
    %144 = vector.load %arg12[%c3_93, %c0_94, %c0_95] : memref<6x32x32xbf16, #tpu.memory_space<vmem>>, vector<1x32x32xbf16>
    %145 = vector.shape_cast %144 : vector<1x32x32xbf16> to vector<32x32xbf16>
    %cst_96 = arith.constant dense<0.000000e+00> : vector<16x32xf32>
    %146 = tpu.matmul %143, %145, %cst_96 {dimension_numbers = #tpu.dot_dimension_numbers<[1], [0], [0], [1], [0, 0, 1, 1], [], []>} : vector<16x32xbf16>, vector<32x32xbf16>, vector<16x32xf32> -> vector<16x32xf32>
    %c3_97 = arith.constant 3 : index
    %c0_98 = arith.constant 0 : index
    %c0_99 = arith.constant 0 : index
    %147 = vector.load %arg13[%c3_97, %c0_98, %c0_99] : memref<6x1x32xf32, #tpu.memory_space<vmem>>, vector<1x1x32xf32>
    %148 = vector.shape_cast %147 : vector<1x1x32xf32> to vector<1x32xf32>
    %149 = vector.broadcast %148 : vector<1x32xf32> to vector<16x32xf32>
    %150 = arith.addf %146, %149 : vector<16x32xf32>
    %cst_100 = arith.constant 0.000000e+00 : f32
    %151 = vector.broadcast %cst_100 : f32 to vector<16x32xf32>
    %152 = arith.maximumf %150, %151 : vector<16x32xf32>
    %c4 = arith.constant 4 : index
    %153 = memref.load %arg0[%c4] : memref<6xf32, #tpu.memory_space<smem>>
    %154 = vector.extract_strided_slice %20 {offsets = [0, 128], sizes = [32, 32], strides = [1, 1]} : vector<32x192xf32> to vector<32x32xf32>
    %155 = arith.truncf %152 : vector<16x32xf32> to vector<16x32xbf16>
    %cst_101 = arith.constant dense<0.000000e+00> : vector<32x32xf32>
    %156 = tpu.matmul %1, %155, %cst_101 {dimension_numbers = #tpu.dot_dimension_numbers<[1], [0], [0], [1], [0, 0, 1, 1], [], []>} : vector<32x16xbf16>, vector<16x32xbf16>, vector<32x32xf32> -> vector<32x32xf32>
    %157 = arith.addf %156, %154 : vector<32x32xf32>
    %cst_102 = arith.constant 0.000000e+00 : f32
    %158 = vector.broadcast %cst_102 : f32 to vector<32x32xf32>
    %159 = arith.maximumf %157, %158 : vector<32x32xf32>
    %160 = arith.truncf %159 : vector<32x32xf32> to vector<32x32xbf16>
    %cst_103 = arith.constant dense<0.000000e+00> : vector<16x32xf32>
    %161 = tpu.matmul %2, %160, %cst_103 {dimension_numbers = #tpu.dot_dimension_numbers<[1], [0], [0], [1], [0, 0, 1, 1], [], []>} : vector<16x32xbf16>, vector<32x32xbf16>, vector<16x32xf32> -> vector<16x32xf32>
    %cst_104 = arith.constant 1.000000e+00 : f32
    %162 = arith.addf %cst_104, %153 : f32
    %163 = vector.broadcast %162 : f32 to vector<16x32xf32>
    %164 = arith.mulf %163, %152 : vector<16x32xf32>
    %165 = arith.addf %164, %161 : vector<16x32xf32>
    %166 = arith.truncf %165 : vector<16x32xf32> to vector<16x32xbf16>
    %c4_105 = arith.constant 4 : index
    %c0_106 = arith.constant 0 : index
    %c0_107 = arith.constant 0 : index
    %167 = vector.load %arg10[%c4_105, %c0_106, %c0_107] : memref<6x32x32xbf16, #tpu.memory_space<vmem>>, vector<1x32x32xbf16>
    %168 = vector.shape_cast %167 : vector<1x32x32xbf16> to vector<32x32xbf16>
    %cst_108 = arith.constant dense<0.000000e+00> : vector<16x32xf32>
    %169 = tpu.matmul %166, %168, %cst_108 {dimension_numbers = #tpu.dot_dimension_numbers<[1], [0], [0], [1], [0, 0, 1, 1], [], []>} : vector<16x32xbf16>, vector<32x32xbf16>, vector<16x32xf32> -> vector<16x32xf32>
    %c4_109 = arith.constant 4 : index
    %c0_110 = arith.constant 0 : index
    %c0_111 = arith.constant 0 : index
    %170 = vector.load %arg11[%c4_109, %c0_110, %c0_111] : memref<6x1x32xf32, #tpu.memory_space<vmem>>, vector<1x1x32xf32>
    %171 = vector.shape_cast %170 : vector<1x1x32xf32> to vector<1x32xf32>
    %172 = vector.broadcast %171 : vector<1x32xf32> to vector<16x32xf32>
    %173 = arith.addf %169, %172 : vector<16x32xf32>
    %cst_112 = arith.constant 0.000000e+00 : f32
    %174 = vector.broadcast %cst_112 : f32 to vector<16x32xf32>
    %175 = arith.maximumf %173, %174 : vector<16x32xf32>
    %176 = arith.truncf %175 : vector<16x32xf32> to vector<16x32xbf16>
    %c4_113 = arith.constant 4 : index
    %c0_114 = arith.constant 0 : index
    %c0_115 = arith.constant 0 : index
    %177 = vector.load %arg12[%c4_113, %c0_114, %c0_115] : memref<6x32x32xbf16, #tpu.memory_space<vmem>>, vector<1x32x32xbf16>
    %178 = vector.shape_cast %177 : vector<1x32x32xbf16> to vector<32x32xbf16>
    %cst_116 = arith.constant dense<0.000000e+00> : vector<16x32xf32>
    %179 = tpu.matmul %176, %178, %cst_116 {dimension_numbers = #tpu.dot_dimension_numbers<[1], [0], [0], [1], [0, 0, 1, 1], [], []>} : vector<16x32xbf16>, vector<32x32xbf16>, vector<16x32xf32> -> vector<16x32xf32>
    %c4_117 = arith.constant 4 : index
    %c0_118 = arith.constant 0 : index
    %c0_119 = arith.constant 0 : index
    %180 = vector.load %arg13[%c4_117, %c0_118, %c0_119] : memref<6x1x32xf32, #tpu.memory_space<vmem>>, vector<1x1x32xf32>
    %181 = vector.shape_cast %180 : vector<1x1x32xf32> to vector<1x32xf32>
    %182 = vector.broadcast %181 : vector<1x32xf32> to vector<16x32xf32>
    %183 = arith.addf %179, %182 : vector<16x32xf32>
    %cst_120 = arith.constant 0.000000e+00 : f32
    %184 = vector.broadcast %cst_120 : f32 to vector<16x32xf32>
    %185 = arith.maximumf %183, %184 : vector<16x32xf32>
    %c5 = arith.constant 5 : index
    %186 = memref.load %arg0[%c5] : memref<6xf32, #tpu.memory_space<smem>>
    %187 = vector.extract_strided_slice %20 {offsets = [0, 160], sizes = [32, 32], strides = [1, 1]} : vector<32x192xf32> to vector<32x32xf32>
    %188 = arith.truncf %185 : vector<16x32xf32> to vector<16x32xbf16>
    %cst_121 = arith.constant dense<0.000000e+00> : vector<32x32xf32>
    %189 = tpu.matmul %1, %188, %cst_121 {dimension_numbers = #tpu.dot_dimension_numbers<[1], [0], [0], [1], [0, 0, 1, 1], [], []>} : vector<32x16xbf16>, vector<16x32xbf16>, vector<32x32xf32> -> vector<32x32xf32>
    %190 = arith.addf %189, %187 : vector<32x32xf32>
    %cst_122 = arith.constant 0.000000e+00 : f32
    %191 = vector.broadcast %cst_122 : f32 to vector<32x32xf32>
    %192 = arith.maximumf %190, %191 : vector<32x32xf32>
    %193 = arith.truncf %192 : vector<32x32xf32> to vector<32x32xbf16>
    %cst_123 = arith.constant dense<0.000000e+00> : vector<16x32xf32>
    %194 = tpu.matmul %2, %193, %cst_123 {dimension_numbers = #tpu.dot_dimension_numbers<[1], [0], [0], [1], [0, 0, 1, 1], [], []>} : vector<16x32xbf16>, vector<32x32xbf16>, vector<16x32xf32> -> vector<16x32xf32>
    %cst_124 = arith.constant 1.000000e+00 : f32
    %195 = arith.addf %cst_124, %186 : f32
    %196 = vector.broadcast %195 : f32 to vector<16x32xf32>
    %197 = arith.mulf %196, %185 : vector<16x32xf32>
    %198 = arith.addf %197, %194 : vector<16x32xf32>
    %199 = arith.truncf %198 : vector<16x32xf32> to vector<16x32xbf16>
    %c5_125 = arith.constant 5 : index
    %c0_126 = arith.constant 0 : index
    %c0_127 = arith.constant 0 : index
    %200 = vector.load %arg10[%c5_125, %c0_126, %c0_127] : memref<6x32x32xbf16, #tpu.memory_space<vmem>>, vector<1x32x32xbf16>
    %201 = vector.shape_cast %200 : vector<1x32x32xbf16> to vector<32x32xbf16>
    %cst_128 = arith.constant dense<0.000000e+00> : vector<16x32xf32>
    %202 = tpu.matmul %199, %201, %cst_128 {dimension_numbers = #tpu.dot_dimension_numbers<[1], [0], [0], [1], [0, 0, 1, 1], [], []>} : vector<16x32xbf16>, vector<32x32xbf16>, vector<16x32xf32> -> vector<16x32xf32>
    %c5_129 = arith.constant 5 : index
    %c0_130 = arith.constant 0 : index
    %c0_131 = arith.constant 0 : index
    %203 = vector.load %arg11[%c5_129, %c0_130, %c0_131] : memref<6x1x32xf32, #tpu.memory_space<vmem>>, vector<1x1x32xf32>
    %204 = vector.shape_cast %203 : vector<1x1x32xf32> to vector<1x32xf32>
    %205 = vector.broadcast %204 : vector<1x32xf32> to vector<16x32xf32>
    %206 = arith.addf %202, %205 : vector<16x32xf32>
    %cst_132 = arith.constant 0.000000e+00 : f32
    %207 = vector.broadcast %cst_132 : f32 to vector<16x32xf32>
    %208 = arith.maximumf %206, %207 : vector<16x32xf32>
    %209 = arith.truncf %208 : vector<16x32xf32> to vector<16x32xbf16>
    %c5_133 = arith.constant 5 : index
    %c0_134 = arith.constant 0 : index
    %c0_135 = arith.constant 0 : index
    %210 = vector.load %arg12[%c5_133, %c0_134, %c0_135] : memref<6x32x32xbf16, #tpu.memory_space<vmem>>, vector<1x32x32xbf16>
    %211 = vector.shape_cast %210 : vector<1x32x32xbf16> to vector<32x32xbf16>
    %cst_136 = arith.constant dense<0.000000e+00> : vector<16x32xf32>
    %212 = tpu.matmul %209, %211, %cst_136 {dimension_numbers = #tpu.dot_dimension_numbers<[1], [0], [0], [1], [0, 0, 1, 1], [], []>} : vector<16x32xbf16>, vector<32x32xbf16>, vector<16x32xf32> -> vector<16x32xf32>
    %c5_137 = arith.constant 5 : index
    %c0_138 = arith.constant 0 : index
    %c0_139 = arith.constant 0 : index
    %213 = vector.load %arg13[%c5_137, %c0_138, %c0_139] : memref<6x1x32xf32, #tpu.memory_space<vmem>>, vector<1x1x32xf32>
    %214 = vector.shape_cast %213 : vector<1x1x32xf32> to vector<1x32xf32>
    %215 = vector.broadcast %214 : vector<1x32xf32> to vector<16x32xf32>
    %216 = arith.addf %212, %215 : vector<16x32xf32>
    %cst_140 = arith.constant 0.000000e+00 : f32
    %217 = vector.broadcast %cst_140 : f32 to vector<16x32xf32>
    %218 = arith.maximumf %216, %217 : vector<16x32xf32>
    %219 = arith.truncf %218 : vector<16x32xf32> to vector<16x32xbf16>
    %220 = tpu.transpose %218, [1, 0] : vector<16x32xf32> -> vector<32x16xf32>
    %221 = arith.truncf %220 : vector<32x16xf32> to vector<32x16xbf16>
    %c0_141 = arith.constant 0 : index
    %c0_142 = arith.constant 0 : index
    %222 = vector.load %arg14[%c0_141, %c0_142] : memref<32x128xbf16, #tpu.memory_space<vmem>>, vector<32x128xbf16>
    %c0_143 = arith.constant 0 : index
    %c0_144 = arith.constant 0 : index
    %223 = vector.load %arg15[%c0_143, %c0_144] : memref<32x128xbf16, #tpu.memory_space<vmem>>, vector<32x128xbf16>
    %c0_145 = arith.constant 0 : index
    %c0_146 = arith.constant 0 : index
    %224 = vector.load %arg16[%c0_145, %c0_146] : memref<1x128xf32, #tpu.memory_space<vmem>>, vector<1x128xf32>
    %cst_147 = arith.constant 0.000000e+00 : f32
    %225 = vector.broadcast %cst_147 : f32 to vector<2x32xf32>
    %cst_148 = arith.constant 0.000000e+00 : f32
    %226 = vector.broadcast %cst_148 : f32 to vector<2x32xf32>
    %cst_149 = arith.constant 0.000000e+00 : f32
    %227 = vector.broadcast %cst_149 : f32 to vector<2x32xf32>
    %228 = arith.truncf %225 : vector<2x32xf32> to vector<2x32xbf16>
    %cst_150 = arith.constant dense<0.000000e+00> : vector<2x128xf32>
    %229 = tpu.matmul %228, %222, %cst_150 {dimension_numbers = #tpu.dot_dimension_numbers<[1], [0], [0], [1], [0, 0, 1, 1], [], []>} : vector<2x32xbf16>, vector<32x128xbf16>, vector<2x128xf32> -> vector<2x128xf32>
    %230 = arith.truncf %227 : vector<2x32xf32> to vector<2x32xbf16>
    %cst_151 = arith.constant dense<0.000000e+00> : vector<2x128xf32>
    %231 = tpu.matmul %230, %223, %cst_151 {dimension_numbers = #tpu.dot_dimension_numbers<[1], [0], [0], [1], [0, 0, 1, 1], [], []>} : vector<2x32xbf16>, vector<32x128xbf16>, vector<2x128xf32> -> vector<2x128xf32>
    %232 = arith.addf %229, %231 : vector<2x128xf32>
    %233 = vector.broadcast %224 : vector<1x128xf32> to vector<2x128xf32>
    %234 = arith.addf %232, %233 : vector<2x128xf32>
    %235 = vector.extract_strided_slice %234 {offsets = [0, 0], sizes = [2, 32], strides = [1, 1]} : vector<2x128xf32> to vector<2x32xf32>
    %236 = arith.negf %235 : vector<2x32xf32>
    %237 = math.exp %236 : vector<2x32xf32>
    %cst_152 = arith.constant 1.000000e+00 : f32
    %238 = vector.broadcast %cst_152 : f32 to vector<2x32xf32>
    %239 = arith.addf %238, %237 : vector<2x32xf32>
    %240 = arith.divf %238, %239 : vector<2x32xf32>
    %241 = vector.extract_strided_slice %234 {offsets = [0, 32], sizes = [2, 32], strides = [1, 1]} : vector<2x128xf32> to vector<2x32xf32>
    %242 = arith.negf %241 : vector<2x32xf32>
    %243 = math.exp %242 : vector<2x32xf32>
    %cst_153 = arith.constant 1.000000e+00 : f32
    %244 = vector.broadcast %cst_153 : f32 to vector<2x32xf32>
    %245 = arith.addf %244, %243 : vector<2x32xf32>
    %246 = arith.divf %244, %245 : vector<2x32xf32>
    %247 = vector.extract_strided_slice %234 {offsets = [0, 64], sizes = [2, 32], strides = [1, 1]} : vector<2x128xf32> to vector<2x32xf32>
    %248 = math.tanh %247 : vector<2x32xf32>
    %249 = vector.extract_strided_slice %234 {offsets = [0, 96], sizes = [2, 32], strides = [1, 1]} : vector<2x128xf32> to vector<2x32xf32>
    %250 = arith.negf %249 : vector<2x32xf32>
    %251 = math.exp %250 : vector<2x32xf32>
    %cst_154 = arith.constant 1.000000e+00 : f32
    %252 = vector.broadcast %cst_154 : f32 to vector<2x32xf32>
    %253 = arith.addf %252, %251 : vector<2x32xf32>
    %254 = arith.divf %252, %253 : vector<2x32xf32>
    %255 = arith.mulf %246, %226 : vector<2x32xf32>
    %256 = arith.mulf %240, %248 : vector<2x32xf32>
    %257 = arith.addf %255, %256 : vector<2x32xf32>
    %258 = math.tanh %257 : vector<2x32xf32>
    %259 = arith.mulf %254, %258 : vector<2x32xf32>
    %260 = arith.truncf %259 : vector<2x32xf32> to vector<2x32xbf16>
    %cst_155 = arith.constant dense<0.000000e+00> : vector<2x16xf32>
    %261 = tpu.matmul %260, %221, %cst_155 {dimension_numbers = #tpu.dot_dimension_numbers<[1], [0], [0], [1], [0, 0, 1, 1], [], []>} : vector<2x32xbf16>, vector<32x16xbf16>, vector<2x16xf32> -> vector<2x16xf32>
    %cst_156 = arith.constant -1.000000e+30 : f32
    %262 = vector.broadcast %cst_156 : f32 to vector<2x16xf32>
    %263 = arith.select %5, %261, %262 : vector<2x16xi1>, vector<2x16xf32>
    %cst_157 = arith.constant dense<0xFF800000> : vector<2xf32>
    %264 = vector.multi_reduction <maximumf>, %263, %cst_157 [1] : vector<2x16xf32> to vector<2xf32>
    %265 = vector.shape_cast %264 : vector<2xf32> to vector<2x1xf32>
    %266 = vector.broadcast %265 : vector<2x1xf32> to vector<2x16xf32>
    %267 = arith.subf %263, %266 : vector<2x16xf32>
    %268 = math.exp %267 : vector<2x16xf32>
    %cst_158 = arith.constant dense<0.000000e+00> : vector<2xf32>
    %269 = vector.multi_reduction <add>, %268, %cst_158 [1] : vector<2x16xf32> to vector<2xf32>
    %270 = vector.shape_cast %269 : vector<2xf32> to vector<2x1xf32>
    %cst_159 = arith.constant 1.000000e-16 : f32
    %271 = vector.broadcast %cst_159 : f32 to vector<2x1xf32>
    %272 = arith.addf %270, %271 : vector<2x1xf32>
    %273 = tpu.reciprocal %272 {approx = true} : vector<2x1xf32> -> vector<2x1xf32>
    %274 = vector.broadcast %273 : vector<2x1xf32> to vector<2x16xf32>
    %275 = arith.mulf %268, %274 : vector<2x16xf32>
    %276 = arith.truncf %275 : vector<2x16xf32> to vector<2x16xbf16>
    %cst_160 = arith.constant dense<0.000000e+00> : vector<2x32xf32>
    %277 = tpu.matmul %276, %219, %cst_160 {dimension_numbers = #tpu.dot_dimension_numbers<[1], [0], [0], [1], [0, 0, 1, 1], [], []>} : vector<2x16xbf16>, vector<16x32xbf16>, vector<2x32xf32> -> vector<2x32xf32>
    %278 = arith.truncf %259 : vector<2x32xf32> to vector<2x32xbf16>
    %cst_161 = arith.constant dense<0.000000e+00> : vector<2x128xf32>
    %279 = tpu.matmul %278, %222, %cst_161 {dimension_numbers = #tpu.dot_dimension_numbers<[1], [0], [0], [1], [0, 0, 1, 1], [], []>} : vector<2x32xbf16>, vector<32x128xbf16>, vector<2x128xf32> -> vector<2x128xf32>
    %280 = arith.truncf %277 : vector<2x32xf32> to vector<2x32xbf16>
    %cst_162 = arith.constant dense<0.000000e+00> : vector<2x128xf32>
    %281 = tpu.matmul %280, %223, %cst_162 {dimension_numbers = #tpu.dot_dimension_numbers<[1], [0], [0], [1], [0, 0, 1, 1], [], []>} : vector<2x32xbf16>, vector<32x128xbf16>, vector<2x128xf32> -> vector<2x128xf32>
    %282 = arith.addf %279, %281 : vector<2x128xf32>
    %283 = vector.broadcast %224 : vector<1x128xf32> to vector<2x128xf32>
    %284 = arith.addf %282, %283 : vector<2x128xf32>
    %285 = vector.extract_strided_slice %284 {offsets = [0, 0], sizes = [2, 32], strides = [1, 1]} : vector<2x128xf32> to vector<2x32xf32>
    %286 = arith.negf %285 : vector<2x32xf32>
    %287 = math.exp %286 : vector<2x32xf32>
    %cst_163 = arith.constant 1.000000e+00 : f32
    %288 = vector.broadcast %cst_163 : f32 to vector<2x32xf32>
    %289 = arith.addf %288, %287 : vector<2x32xf32>
    %290 = arith.divf %288, %289 : vector<2x32xf32>
    %291 = vector.extract_strided_slice %284 {offsets = [0, 32], sizes = [2, 32], strides = [1, 1]} : vector<2x128xf32> to vector<2x32xf32>
    %292 = arith.negf %291 : vector<2x32xf32>
    %293 = math.exp %292 : vector<2x32xf32>
    %cst_164 = arith.constant 1.000000e+00 : f32
    %294 = vector.broadcast %cst_164 : f32 to vector<2x32xf32>
    %295 = arith.addf %294, %293 : vector<2x32xf32>
    %296 = arith.divf %294, %295 : vector<2x32xf32>
    %297 = vector.extract_strided_slice %284 {offsets = [0, 64], sizes = [2, 32], strides = [1, 1]} : vector<2x128xf32> to vector<2x32xf32>
    %298 = math.tanh %297 : vector<2x32xf32>
    %299 = vector.extract_strided_slice %284 {offsets = [0, 96], sizes = [2, 32], strides = [1, 1]} : vector<2x128xf32> to vector<2x32xf32>
    %300 = arith.negf %299 : vector<2x32xf32>
    %301 = math.exp %300 : vector<2x32xf32>
    %cst_165 = arith.constant 1.000000e+00 : f32
    %302 = vector.broadcast %cst_165 : f32 to vector<2x32xf32>
    %303 = arith.addf %302, %301 : vector<2x32xf32>
    %304 = arith.divf %302, %303 : vector<2x32xf32>
    %305 = arith.mulf %296, %257 : vector<2x32xf32>
    %306 = arith.mulf %290, %298 : vector<2x32xf32>
    %307 = arith.addf %305, %306 : vector<2x32xf32>
    %308 = math.tanh %307 : vector<2x32xf32>
    %309 = arith.mulf %304, %308 : vector<2x32xf32>
    %310 = arith.truncf %309 : vector<2x32xf32> to vector<2x32xbf16>
    %cst_166 = arith.constant dense<0.000000e+00> : vector<2x16xf32>
    %311 = tpu.matmul %310, %221, %cst_166 {dimension_numbers = #tpu.dot_dimension_numbers<[1], [0], [0], [1], [0, 0, 1, 1], [], []>} : vector<2x32xbf16>, vector<32x16xbf16>, vector<2x16xf32> -> vector<2x16xf32>
    %cst_167 = arith.constant -1.000000e+30 : f32
    %312 = vector.broadcast %cst_167 : f32 to vector<2x16xf32>
    %313 = arith.select %5, %311, %312 : vector<2x16xi1>, vector<2x16xf32>
    %cst_168 = arith.constant dense<0xFF800000> : vector<2xf32>
    %314 = vector.multi_reduction <maximumf>, %313, %cst_168 [1] : vector<2x16xf32> to vector<2xf32>
    %315 = vector.shape_cast %314 : vector<2xf32> to vector<2x1xf32>
    %316 = vector.broadcast %315 : vector<2x1xf32> to vector<2x16xf32>
    %317 = arith.subf %313, %316 : vector<2x16xf32>
    %318 = math.exp %317 : vector<2x16xf32>
    %cst_169 = arith.constant dense<0.000000e+00> : vector<2xf32>
    %319 = vector.multi_reduction <add>, %318, %cst_169 [1] : vector<2x16xf32> to vector<2xf32>
    %320 = vector.shape_cast %319 : vector<2xf32> to vector<2x1xf32>
    %cst_170 = arith.constant 1.000000e-16 : f32
    %321 = vector.broadcast %cst_170 : f32 to vector<2x1xf32>
    %322 = arith.addf %320, %321 : vector<2x1xf32>
    %323 = tpu.reciprocal %322 {approx = true} : vector<2x1xf32> -> vector<2x1xf32>
    %324 = vector.broadcast %323 : vector<2x1xf32> to vector<2x16xf32>
    %325 = arith.mulf %318, %324 : vector<2x16xf32>
    %326 = arith.truncf %325 : vector<2x16xf32> to vector<2x16xbf16>
    %cst_171 = arith.constant dense<0.000000e+00> : vector<2x32xf32>
    %327 = tpu.matmul %326, %219, %cst_171 {dimension_numbers = #tpu.dot_dimension_numbers<[1], [0], [0], [1], [0, 0, 1, 1], [], []>} : vector<2x16xbf16>, vector<16x32xbf16>, vector<2x32xf32> -> vector<2x32xf32>
    %328 = arith.truncf %309 : vector<2x32xf32> to vector<2x32xbf16>
    %cst_172 = arith.constant dense<0.000000e+00> : vector<2x128xf32>
    %329 = tpu.matmul %328, %222, %cst_172 {dimension_numbers = #tpu.dot_dimension_numbers<[1], [0], [0], [1], [0, 0, 1, 1], [], []>} : vector<2x32xbf16>, vector<32x128xbf16>, vector<2x128xf32> -> vector<2x128xf32>
    %330 = arith.truncf %327 : vector<2x32xf32> to vector<2x32xbf16>
    %cst_173 = arith.constant dense<0.000000e+00> : vector<2x128xf32>
    %331 = tpu.matmul %330, %223, %cst_173 {dimension_numbers = #tpu.dot_dimension_numbers<[1], [0], [0], [1], [0, 0, 1, 1], [], []>} : vector<2x32xbf16>, vector<32x128xbf16>, vector<2x128xf32> -> vector<2x128xf32>
    %332 = arith.addf %329, %331 : vector<2x128xf32>
    %333 = vector.broadcast %224 : vector<1x128xf32> to vector<2x128xf32>
    %334 = arith.addf %332, %333 : vector<2x128xf32>
    %335 = vector.extract_strided_slice %334 {offsets = [0, 0], sizes = [2, 32], strides = [1, 1]} : vector<2x128xf32> to vector<2x32xf32>
    %336 = arith.negf %335 : vector<2x32xf32>
    %337 = math.exp %336 : vector<2x32xf32>
    %cst_174 = arith.constant 1.000000e+00 : f32
    %338 = vector.broadcast %cst_174 : f32 to vector<2x32xf32>
    %339 = arith.addf %338, %337 : vector<2x32xf32>
    %340 = arith.divf %338, %339 : vector<2x32xf32>
    %341 = vector.extract_strided_slice %334 {offsets = [0, 32], sizes = [2, 32], strides = [1, 1]} : vector<2x128xf32> to vector<2x32xf32>
    %342 = arith.negf %341 : vector<2x32xf32>
    %343 = math.exp %342 : vector<2x32xf32>
    %cst_175 = arith.constant 1.000000e+00 : f32
    %344 = vector.broadcast %cst_175 : f32 to vector<2x32xf32>
    %345 = arith.addf %344, %343 : vector<2x32xf32>
    %346 = arith.divf %344, %345 : vector<2x32xf32>
    %347 = vector.extract_strided_slice %334 {offsets = [0, 64], sizes = [2, 32], strides = [1, 1]} : vector<2x128xf32> to vector<2x32xf32>
    %348 = math.tanh %347 : vector<2x32xf32>
    %349 = vector.extract_strided_slice %334 {offsets = [0, 96], sizes = [2, 32], strides = [1, 1]} : vector<2x128xf32> to vector<2x32xf32>
    %350 = arith.negf %349 : vector<2x32xf32>
    %351 = math.exp %350 : vector<2x32xf32>
    %cst_176 = arith.constant 1.000000e+00 : f32
    %352 = vector.broadcast %cst_176 : f32 to vector<2x32xf32>
    %353 = arith.addf %352, %351 : vector<2x32xf32>
    %354 = arith.divf %352, %353 : vector<2x32xf32>
    %355 = arith.mulf %346, %307 : vector<2x32xf32>
    %356 = arith.mulf %340, %348 : vector<2x32xf32>
    %357 = arith.addf %355, %356 : vector<2x32xf32>
    %358 = math.tanh %357 : vector<2x32xf32>
    %359 = arith.mulf %354, %358 : vector<2x32xf32>
    %360 = arith.truncf %359 : vector<2x32xf32> to vector<2x32xbf16>
    %cst_177 = arith.constant dense<0.000000e+00> : vector<2x16xf32>
    %361 = tpu.matmul %360, %221, %cst_177 {dimension_numbers = #tpu.dot_dimension_numbers<[1], [0], [0], [1], [0, 0, 1, 1], [], []>} : vector<2x32xbf16>, vector<32x16xbf16>, vector<2x16xf32> -> vector<2x16xf32>
    %cst_178 = arith.constant -1.000000e+30 : f32
    %362 = vector.broadcast %cst_178 : f32 to vector<2x16xf32>
    %363 = arith.select %5, %361, %362 : vector<2x16xi1>, vector<2x16xf32>
    %cst_179 = arith.constant dense<0xFF800000> : vector<2xf32>
    %364 = vector.multi_reduction <maximumf>, %363, %cst_179 [1] : vector<2x16xf32> to vector<2xf32>
    %365 = vector.shape_cast %364 : vector<2xf32> to vector<2x1xf32>
    %366 = vector.broadcast %365 : vector<2x1xf32> to vector<2x16xf32>
    %367 = arith.subf %363, %366 : vector<2x16xf32>
    %368 = math.exp %367 : vector<2x16xf32>
    %cst_180 = arith.constant dense<0.000000e+00> : vector<2xf32>
    %369 = vector.multi_reduction <add>, %368, %cst_180 [1] : vector<2x16xf32> to vector<2xf32>
    %370 = vector.shape_cast %369 : vector<2xf32> to vector<2x1xf32>
    %cst_181 = arith.constant 1.000000e-16 : f32
    %371 = vector.broadcast %cst_181 : f32 to vector<2x1xf32>
    %372 = arith.addf %370, %371 : vector<2x1xf32>
    %373 = tpu.reciprocal %372 {approx = true} : vector<2x1xf32> -> vector<2x1xf32>
    %374 = vector.broadcast %373 : vector<2x1xf32> to vector<2x16xf32>
    %375 = arith.mulf %368, %374 : vector<2x16xf32>
    %376 = arith.truncf %375 : vector<2x16xf32> to vector<2x16xbf16>
    %cst_182 = arith.constant dense<0.000000e+00> : vector<2x32xf32>
    %377 = tpu.matmul %376, %219, %cst_182 {dimension_numbers = #tpu.dot_dimension_numbers<[1], [0], [0], [1], [0, 0, 1, 1], [], []>} : vector<2x16xbf16>, vector<16x32xbf16>, vector<2x32xf32> -> vector<2x32xf32>
    %378 = arith.truncf %359 : vector<2x32xf32> to vector<2x32xbf16>
    %cst_183 = arith.constant dense<0.000000e+00> : vector<2x128xf32>
    %379 = tpu.matmul %378, %222, %cst_183 {dimension_numbers = #tpu.dot_dimension_numbers<[1], [0], [0], [1], [0, 0, 1, 1], [], []>} : vector<2x32xbf16>, vector<32x128xbf16>, vector<2x128xf32> -> vector<2x128xf32>
    %380 = arith.truncf %377 : vector<2x32xf32> to vector<2x32xbf16>
    %cst_184 = arith.constant dense<0.000000e+00> : vector<2x128xf32>
    %381 = tpu.matmul %380, %223, %cst_184 {dimension_numbers = #tpu.dot_dimension_numbers<[1], [0], [0], [1], [0, 0, 1, 1], [], []>} : vector<2x32xbf16>, vector<32x128xbf16>, vector<2x128xf32> -> vector<2x128xf32>
    %382 = arith.addf %379, %381 : vector<2x128xf32>
    %383 = vector.broadcast %224 : vector<1x128xf32> to vector<2x128xf32>
    %384 = arith.addf %382, %383 : vector<2x128xf32>
    %385 = vector.extract_strided_slice %384 {offsets = [0, 0], sizes = [2, 32], strides = [1, 1]} : vector<2x128xf32> to vector<2x32xf32>
    %386 = arith.negf %385 : vector<2x32xf32>
    %387 = math.exp %386 : vector<2x32xf32>
    %cst_185 = arith.constant 1.000000e+00 : f32
    %388 = vector.broadcast %cst_185 : f32 to vector<2x32xf32>
    %389 = arith.addf %388, %387 : vector<2x32xf32>
    %390 = arith.divf %388, %389 : vector<2x32xf32>
    %391 = vector.extract_strided_slice %384 {offsets = [0, 32], sizes = [2, 32], strides = [1, 1]} : vector<2x128xf32> to vector<2x32xf32>
    %392 = arith.negf %391 : vector<2x32xf32>
    %393 = math.exp %392 : vector<2x32xf32>
    %cst_186 = arith.constant 1.000000e+00 : f32
    %394 = vector.broadcast %cst_186 : f32 to vector<2x32xf32>
    %395 = arith.addf %394, %393 : vector<2x32xf32>
    %396 = arith.divf %394, %395 : vector<2x32xf32>
    %397 = vector.extract_strided_slice %384 {offsets = [0, 64], sizes = [2, 32], strides = [1, 1]} : vector<2x128xf32> to vector<2x32xf32>
    %398 = math.tanh %397 : vector<2x32xf32>
    %399 = vector.extract_strided_slice %384 {offsets = [0, 96], sizes = [2, 32], strides = [1, 1]} : vector<2x128xf32> to vector<2x32xf32>
    %400 = arith.negf %399 : vector<2x32xf32>
    %401 = math.exp %400 : vector<2x32xf32>
    %cst_187 = arith.constant 1.000000e+00 : f32
    %402 = vector.broadcast %cst_187 : f32 to vector<2x32xf32>
    %403 = arith.addf %402, %401 : vector<2x32xf32>
    %404 = arith.divf %402, %403 : vector<2x32xf32>
    %405 = arith.mulf %396, %357 : vector<2x32xf32>
    %406 = arith.mulf %390, %398 : vector<2x32xf32>
    %407 = arith.addf %405, %406 : vector<2x32xf32>
    %408 = math.tanh %407 : vector<2x32xf32>
    %409 = arith.mulf %404, %408 : vector<2x32xf32>
    %410 = arith.truncf %409 : vector<2x32xf32> to vector<2x32xbf16>
    %cst_188 = arith.constant dense<0.000000e+00> : vector<2x16xf32>
    %411 = tpu.matmul %410, %221, %cst_188 {dimension_numbers = #tpu.dot_dimension_numbers<[1], [0], [0], [1], [0, 0, 1, 1], [], []>} : vector<2x32xbf16>, vector<32x16xbf16>, vector<2x16xf32> -> vector<2x16xf32>
    %cst_189 = arith.constant -1.000000e+30 : f32
    %412 = vector.broadcast %cst_189 : f32 to vector<2x16xf32>
    %413 = arith.select %5, %411, %412 : vector<2x16xi1>, vector<2x16xf32>
    %cst_190 = arith.constant dense<0xFF800000> : vector<2xf32>
    %414 = vector.multi_reduction <maximumf>, %413, %cst_190 [1] : vector<2x16xf32> to vector<2xf32>
    %415 = vector.shape_cast %414 : vector<2xf32> to vector<2x1xf32>
    %416 = vector.broadcast %415 : vector<2x1xf32> to vector<2x16xf32>
    %417 = arith.subf %413, %416 : vector<2x16xf32>
    %418 = math.exp %417 : vector<2x16xf32>
    %cst_191 = arith.constant dense<0.000000e+00> : vector<2xf32>
    %419 = vector.multi_reduction <add>, %418, %cst_191 [1] : vector<2x16xf32> to vector<2xf32>
    %420 = vector.shape_cast %419 : vector<2xf32> to vector<2x1xf32>
    %cst_192 = arith.constant 1.000000e-16 : f32
    %421 = vector.broadcast %cst_192 : f32 to vector<2x1xf32>
    %422 = arith.addf %420, %421 : vector<2x1xf32>
    %423 = tpu.reciprocal %422 {approx = true} : vector<2x1xf32> -> vector<2x1xf32>
    %424 = vector.broadcast %423 : vector<2x1xf32> to vector<2x16xf32>
    %425 = arith.mulf %418, %424 : vector<2x16xf32>
    %426 = arith.truncf %425 : vector<2x16xf32> to vector<2x16xbf16>
    %cst_193 = arith.constant dense<0.000000e+00> : vector<2x32xf32>
    %427 = tpu.matmul %426, %219, %cst_193 {dimension_numbers = #tpu.dot_dimension_numbers<[1], [0], [0], [1], [0, 0, 1, 1], [], []>} : vector<2x16xbf16>, vector<16x32xbf16>, vector<2x32xf32> -> vector<2x32xf32>
    %428 = arith.truncf %409 : vector<2x32xf32> to vector<2x32xbf16>
    %cst_194 = arith.constant dense<0.000000e+00> : vector<2x128xf32>
    %429 = tpu.matmul %428, %222, %cst_194 {dimension_numbers = #tpu.dot_dimension_numbers<[1], [0], [0], [1], [0, 0, 1, 1], [], []>} : vector<2x32xbf16>, vector<32x128xbf16>, vector<2x128xf32> -> vector<2x128xf32>
    %430 = arith.truncf %427 : vector<2x32xf32> to vector<2x32xbf16>
    %cst_195 = arith.constant dense<0.000000e+00> : vector<2x128xf32>
    %431 = tpu.matmul %430, %223, %cst_195 {dimension_numbers = #tpu.dot_dimension_numbers<[1], [0], [0], [1], [0, 0, 1, 1], [], []>} : vector<2x32xbf16>, vector<32x128xbf16>, vector<2x128xf32> -> vector<2x128xf32>
    %432 = arith.addf %429, %431 : vector<2x128xf32>
    %433 = vector.broadcast %224 : vector<1x128xf32> to vector<2x128xf32>
    %434 = arith.addf %432, %433 : vector<2x128xf32>
    %435 = vector.extract_strided_slice %434 {offsets = [0, 0], sizes = [2, 32], strides = [1, 1]} : vector<2x128xf32> to vector<2x32xf32>
    %436 = arith.negf %435 : vector<2x32xf32>
    %437 = math.exp %436 : vector<2x32xf32>
    %cst_196 = arith.constant 1.000000e+00 : f32
    %438 = vector.broadcast %cst_196 : f32 to vector<2x32xf32>
    %439 = arith.addf %438, %437 : vector<2x32xf32>
    %440 = arith.divf %438, %439 : vector<2x32xf32>
    %441 = vector.extract_strided_slice %434 {offsets = [0, 32], sizes = [2, 32], strides = [1, 1]} : vector<2x128xf32> to vector<2x32xf32>
    %442 = arith.negf %441 : vector<2x32xf32>
    %443 = math.exp %442 : vector<2x32xf32>
    %cst_197 = arith.constant 1.000000e+00 : f32
    %444 = vector.broadcast %cst_197 : f32 to vector<2x32xf32>
    %445 = arith.addf %444, %443 : vector<2x32xf32>
    %446 = arith.divf %444, %445 : vector<2x32xf32>
    %447 = vector.extract_strided_slice %434 {offsets = [0, 64], sizes = [2, 32], strides = [1, 1]} : vector<2x128xf32> to vector<2x32xf32>
    %448 = math.tanh %447 : vector<2x32xf32>
    %449 = vector.extract_strided_slice %434 {offsets = [0, 96], sizes = [2, 32], strides = [1, 1]} : vector<2x128xf32> to vector<2x32xf32>
    %450 = arith.negf %449 : vector<2x32xf32>
    %451 = math.exp %450 : vector<2x32xf32>
    %cst_198 = arith.constant 1.000000e+00 : f32
    %452 = vector.broadcast %cst_198 : f32 to vector<2x32xf32>
    %453 = arith.addf %452, %451 : vector<2x32xf32>
    %454 = arith.divf %452, %453 : vector<2x32xf32>
    %455 = arith.mulf %446, %407 : vector<2x32xf32>
    %456 = arith.mulf %440, %448 : vector<2x32xf32>
    %457 = arith.addf %455, %456 : vector<2x32xf32>
    %458 = math.tanh %457 : vector<2x32xf32>
    %459 = arith.mulf %454, %458 : vector<2x32xf32>
    %460 = arith.truncf %459 : vector<2x32xf32> to vector<2x32xbf16>
    %cst_199 = arith.constant dense<0.000000e+00> : vector<2x16xf32>
    %461 = tpu.matmul %460, %221, %cst_199 {dimension_numbers = #tpu.dot_dimension_numbers<[1], [0], [0], [1], [0, 0, 1, 1], [], []>} : vector<2x32xbf16>, vector<32x16xbf16>, vector<2x16xf32> -> vector<2x16xf32>
    %cst_200 = arith.constant -1.000000e+30 : f32
    %462 = vector.broadcast %cst_200 : f32 to vector<2x16xf32>
    %463 = arith.select %5, %461, %462 : vector<2x16xi1>, vector<2x16xf32>
    %cst_201 = arith.constant dense<0xFF800000> : vector<2xf32>
    %464 = vector.multi_reduction <maximumf>, %463, %cst_201 [1] : vector<2x16xf32> to vector<2xf32>
    %465 = vector.shape_cast %464 : vector<2xf32> to vector<2x1xf32>
    %466 = vector.broadcast %465 : vector<2x1xf32> to vector<2x16xf32>
    %467 = arith.subf %463, %466 : vector<2x16xf32>
    %468 = math.exp %467 : vector<2x16xf32>
    %cst_202 = arith.constant dense<0.000000e+00> : vector<2xf32>
    %469 = vector.multi_reduction <add>, %468, %cst_202 [1] : vector<2x16xf32> to vector<2xf32>
    %470 = vector.shape_cast %469 : vector<2xf32> to vector<2x1xf32>
    %cst_203 = arith.constant 1.000000e-16 : f32
    %471 = vector.broadcast %cst_203 : f32 to vector<2x1xf32>
    %472 = arith.addf %470, %471 : vector<2x1xf32>
    %473 = tpu.reciprocal %472 {approx = true} : vector<2x1xf32> -> vector<2x1xf32>
    %474 = vector.broadcast %473 : vector<2x1xf32> to vector<2x16xf32>
    %475 = arith.mulf %468, %474 : vector<2x16xf32>
    %476 = arith.truncf %475 : vector<2x16xf32> to vector<2x16xbf16>
    %cst_204 = arith.constant dense<0.000000e+00> : vector<2x32xf32>
    %477 = tpu.matmul %476, %219, %cst_204 {dimension_numbers = #tpu.dot_dimension_numbers<[1], [0], [0], [1], [0, 0, 1, 1], [], []>} : vector<2x16xbf16>, vector<16x32xbf16>, vector<2x32xf32> -> vector<2x32xf32>
    %478 = arith.truncf %459 : vector<2x32xf32> to vector<2x32xbf16>
    %cst_205 = arith.constant dense<0.000000e+00> : vector<2x128xf32>
    %479 = tpu.matmul %478, %222, %cst_205 {dimension_numbers = #tpu.dot_dimension_numbers<[1], [0], [0], [1], [0, 0, 1, 1], [], []>} : vector<2x32xbf16>, vector<32x128xbf16>, vector<2x128xf32> -> vector<2x128xf32>
    %480 = arith.truncf %477 : vector<2x32xf32> to vector<2x32xbf16>
    %cst_206 = arith.constant dense<0.000000e+00> : vector<2x128xf32>
    %481 = tpu.matmul %480, %223, %cst_206 {dimension_numbers = #tpu.dot_dimension_numbers<[1], [0], [0], [1], [0, 0, 1, 1], [], []>} : vector<2x32xbf16>, vector<32x128xbf16>, vector<2x128xf32> -> vector<2x128xf32>
    %482 = arith.addf %479, %481 : vector<2x128xf32>
    %483 = vector.broadcast %224 : vector<1x128xf32> to vector<2x128xf32>
    %484 = arith.addf %482, %483 : vector<2x128xf32>
    %485 = vector.extract_strided_slice %484 {offsets = [0, 0], sizes = [2, 32], strides = [1, 1]} : vector<2x128xf32> to vector<2x32xf32>
    %486 = arith.negf %485 : vector<2x32xf32>
    %487 = math.exp %486 : vector<2x32xf32>
    %cst_207 = arith.constant 1.000000e+00 : f32
    %488 = vector.broadcast %cst_207 : f32 to vector<2x32xf32>
    %489 = arith.addf %488, %487 : vector<2x32xf32>
    %490 = arith.divf %488, %489 : vector<2x32xf32>
    %491 = vector.extract_strided_slice %484 {offsets = [0, 32], sizes = [2, 32], strides = [1, 1]} : vector<2x128xf32> to vector<2x32xf32>
    %492 = arith.negf %491 : vector<2x32xf32>
    %493 = math.exp %492 : vector<2x32xf32>
    %cst_208 = arith.constant 1.000000e+00 : f32
    %494 = vector.broadcast %cst_208 : f32 to vector<2x32xf32>
    %495 = arith.addf %494, %493 : vector<2x32xf32>
    %496 = arith.divf %494, %495 : vector<2x32xf32>
    %497 = vector.extract_strided_slice %484 {offsets = [0, 64], sizes = [2, 32], strides = [1, 1]} : vector<2x128xf32> to vector<2x32xf32>
    %498 = math.tanh %497 : vector<2x32xf32>
    %499 = vector.extract_strided_slice %484 {offsets = [0, 96], sizes = [2, 32], strides = [1, 1]} : vector<2x128xf32> to vector<2x32xf32>
    %500 = arith.negf %499 : vector<2x32xf32>
    %501 = math.exp %500 : vector<2x32xf32>
    %cst_209 = arith.constant 1.000000e+00 : f32
    %502 = vector.broadcast %cst_209 : f32 to vector<2x32xf32>
    %503 = arith.addf %502, %501 : vector<2x32xf32>
    %504 = arith.divf %502, %503 : vector<2x32xf32>
    %505 = arith.mulf %496, %457 : vector<2x32xf32>
    %506 = arith.mulf %490, %498 : vector<2x32xf32>
    %507 = arith.addf %505, %506 : vector<2x32xf32>
    %508 = math.tanh %507 : vector<2x32xf32>
    %509 = arith.mulf %504, %508 : vector<2x32xf32>
    %510 = arith.truncf %509 : vector<2x32xf32> to vector<2x32xbf16>
    %cst_210 = arith.constant dense<0.000000e+00> : vector<2x16xf32>
    %511 = tpu.matmul %510, %221, %cst_210 {dimension_numbers = #tpu.dot_dimension_numbers<[1], [0], [0], [1], [0, 0, 1, 1], [], []>} : vector<2x32xbf16>, vector<32x16xbf16>, vector<2x16xf32> -> vector<2x16xf32>
    %cst_211 = arith.constant -1.000000e+30 : f32
    %512 = vector.broadcast %cst_211 : f32 to vector<2x16xf32>
    %513 = arith.select %5, %511, %512 : vector<2x16xi1>, vector<2x16xf32>
    %cst_212 = arith.constant dense<0xFF800000> : vector<2xf32>
    %514 = vector.multi_reduction <maximumf>, %513, %cst_212 [1] : vector<2x16xf32> to vector<2xf32>
    %515 = vector.shape_cast %514 : vector<2xf32> to vector<2x1xf32>
    %516 = vector.broadcast %515 : vector<2x1xf32> to vector<2x16xf32>
    %517 = arith.subf %513, %516 : vector<2x16xf32>
    %518 = math.exp %517 : vector<2x16xf32>
    %cst_213 = arith.constant dense<0.000000e+00> : vector<2xf32>
    %519 = vector.multi_reduction <add>, %518, %cst_213 [1] : vector<2x16xf32> to vector<2xf32>
    %520 = vector.shape_cast %519 : vector<2xf32> to vector<2x1xf32>
    %cst_214 = arith.constant 1.000000e-16 : f32
    %521 = vector.broadcast %cst_214 : f32 to vector<2x1xf32>
    %522 = arith.addf %520, %521 : vector<2x1xf32>
    %523 = tpu.reciprocal %522 {approx = true} : vector<2x1xf32> -> vector<2x1xf32>
    %524 = vector.broadcast %523 : vector<2x1xf32> to vector<2x16xf32>
    %525 = arith.mulf %518, %524 : vector<2x16xf32>
    %526 = arith.truncf %525 : vector<2x16xf32> to vector<2x16xbf16>
    %cst_215 = arith.constant dense<0.000000e+00> : vector<2x32xf32>
    %527 = tpu.matmul %526, %219, %cst_215 {dimension_numbers = #tpu.dot_dimension_numbers<[1], [0], [0], [1], [0, 0, 1, 1], [], []>} : vector<2x16xbf16>, vector<16x32xbf16>, vector<2x32xf32> -> vector<2x32xf32>
    %528 = arith.truncf %509 : vector<2x32xf32> to vector<2x32xbf16>
    %c0_216 = arith.constant 0 : index
    %c0_217 = arith.constant 0 : index
    %529 = vector.load %arg17[%c0_216, %c0_217] : memref<32x32xbf16, #tpu.memory_space<vmem>>, vector<32x32xbf16>
    %cst_218 = arith.constant dense<0.000000e+00> : vector<2x32xf32>
    %530 = tpu.matmul %528, %529, %cst_218 {dimension_numbers = #tpu.dot_dimension_numbers<[1], [0], [0], [1], [0, 0, 1, 1], [], []>} : vector<2x32xbf16>, vector<32x32xbf16>, vector<2x32xf32> -> vector<2x32xf32>
    %531 = arith.truncf %527 : vector<2x32xf32> to vector<2x32xbf16>
    %c0_219 = arith.constant 0 : index
    %c0_220 = arith.constant 0 : index
    %532 = vector.load %arg18[%c0_219, %c0_220] : memref<32x32xbf16, #tpu.memory_space<vmem>>, vector<32x32xbf16>
    %cst_221 = arith.constant dense<0.000000e+00> : vector<2x32xf32>
    %533 = tpu.matmul %531, %532, %cst_221 {dimension_numbers = #tpu.dot_dimension_numbers<[1], [0], [0], [1], [0, 0, 1, 1], [], []>} : vector<2x32xbf16>, vector<32x32xbf16>, vector<2x32xf32> -> vector<2x32xf32>
    %534 = arith.addf %530, %533 : vector<2x32xf32>
    %c0_222 = arith.constant 0 : index
    %c0_223 = arith.constant 0 : index
    %535 = vector.load %arg19[%c0_222, %c0_223] : memref<1x32xf32, #tpu.memory_space<vmem>>, vector<1x32xf32>
    %536 = vector.broadcast %535 : vector<1x32xf32> to vector<2x32xf32>
    %537 = arith.addf %534, %536 : vector<2x32xf32>
    %cst_224 = arith.constant 0.000000e+00 : f32
    %538 = vector.broadcast %cst_224 : f32 to vector<2x32xf32>
    %539 = arith.maximumf %537, %538 : vector<2x32xf32>
    %540 = arith.truncf %539 : vector<2x32xf32> to vector<2x32xbf16>
    %c0_225 = arith.constant 0 : index
    %c0_226 = arith.constant 0 : index
    %541 = vector.load %arg20[%c0_225, %c0_226] : memref<32x12xbf16, #tpu.memory_space<vmem>>, vector<32x12xbf16>
    %cst_227 = arith.constant dense<0.000000e+00> : vector<2x12xf32>
    %542 = tpu.matmul %540, %541, %cst_227 {dimension_numbers = #tpu.dot_dimension_numbers<[1], [0], [0], [1], [0, 0, 1, 1], [], []>} : vector<2x32xbf16>, vector<32x12xbf16>, vector<2x12xf32> -> vector<2x12xf32>
    %c0_228 = arith.constant 0 : index
    %c0_229 = arith.constant 0 : index
    %543 = vector.load %arg21[%c0_228, %c0_229] : memref<1x12xf32, #tpu.memory_space<vmem>>, vector<1x12xf32>
    %544 = vector.broadcast %543 : vector<1x12xf32> to vector<2x12xf32>
    %545 = arith.addf %542, %544 : vector<2x12xf32>
    %c0_230 = arith.constant 0 : index
    %c0_231 = arith.constant 0 : index
    %546 = vector.load %arg22[%c0_230, %c0_231] : memref<2x12xf32, #tpu.memory_space<vmem>>, vector<2x12xf32>
    tpu.vector_store %arg22[%c0_230, %c0_231], %545 {strides = array<i32>} : memref<2x12xf32, #tpu.memory_space<vmem>>, vector<2x12xf32>,
    return
  }
}

</mosaic_0001>

<bundles_post_ra>
// kernel: tpu_custom_call.1
= control target key start
LH: loop header
LB: loop body
LE: loop exit
PB: predicated region body
PF: predicated region fallthrough
CT: control target
= control target key end

     0   :  { %s5743_s0 = inlined_call_operand.hbm [shape: f32[6], index: 0, kind: input, shape index: {}]   ;;  %s5744_s1 = inlined_call_operand.vmem [shape: f32[16,32], index: 1, kind: input, shape index: {}]   ;;  %s5745_s2 = inlined_call_operand.vmem [shape: f32[32,4], index: 2, kind: input, shape index: {}]   ;;  %s5746_s3 = inlined_call_operand.vmem [shape: bf16[32,16], index: 3, kind: input, shape index: {}]   ;;  %s5747_s4 = inlined_call_operand.hbm [shape: bf16[16,32], index: 4, kind: input, shape index: {}]   ;;  %s5748_s5 = inlined_call_operand.hbm [shape: bf16[2,16], index: 5, kind: input, shape index: {}]   ;;  %s5749_s6 = inlined_call_operand.hbm [shape: bf16[4,192], index: 6, kind: input, shape index: {}]   ;;  %s5750_s7 = inlined_call_operand.hbm [shape: f32[1,192], index: 7, kind: input, shape index: {}]   ;;  %s5751_s8 = inlined_call_operand.hbm [shape: bf16[192,192], index: 8, kind: input, shape index: {}]   ;;  %s5752_s9 = inlined_call_operand.hbm [shape: f32[1,192], index: 9, kind: input, shape index: {}]   ;;  %s5753_s10 = inlined_call_operand.vmem [shape: bf16[6,32,32], index: 10, kind: input, shape index: {}]   ;;  %s5754_s11 = inlined_call_operand.hbm [shape: f32[6,1,32], index: 11, kind: input, shape index: {}]   ;;  %s5755_s12 = inlined_call_operand.hbm [shape: bf16[6,32,32], index: 12, kind: input, shape index: {}]   ;;  %s5756_s13 = inlined_call_operand.hbm [shape: f32[6,1,32], index: 13, kind: input, shape index: {}]   ;;  %s5757_s14 = inlined_call_operand.vmem [shape: bf16[32,128], index: 14, kind: input, shape index: {}]   ;;  %s5758_s15 = inlined_call_operand.hbm [shape: bf16[32,128], index: 15, kind: input, shape index: {}]   ;;  %s5759_s16 = inlined_call_operand.hbm [shape: f32[1,128], index: 16, kind: input, shape index: {}]   ;;  %s5760_s17 = inlined_call_operand.vmem [shape: bf16[32,32], index: 17, kind: input, shape index: {}]   ;;  %s5761_s18 = inlined_call_operand.hbm [shape: bf16[32,32], index: 18, kind: input, shape index: {}]   ;;  %s5762_s19 = inlined_call_operand.vmem [shape: f32[1,32], index: 19, kind: input, shape index: {}]   ;;  %s5763_s20 = inlined_call_operand.vmem [shape: bf16[32,12], index: 20, kind: input, shape index: {}]   ;;  %s5764_s21 = inlined_call_operand.vmem [shape: f32[1,12], index: 21, kind: input, shape index: {}]   ;;  %s5765_s22 = inlined_call_operand.hbm [shape: f32[2,12], index: 22, kind: output, shape index: {}]  }
   0x1   :  { %5773 = sst [smem:[#allocation34_spill]] %s5743_s0 }
   0x2   :  { %5774 = sst [smem:[#allocation35_spill]] %s5744_s1 }
   0x3   :  { %5775 = sst [smem:[#allocation36_spill]] %s5745_s2 }
   0x4   :  { %5776 = sst [smem:[#allocation37_spill]] %s5746_s3 }
   0x5   :  { %5777 = sst [smem:[#allocation38_spill]] %s5747_s4 }
   0x6   :  { %5778 = sst [smem:[#allocation39_spill]] %s5748_s5 }
   0x7   :  { %5779 = sst [smem:[#allocation40_spill]] %s5749_s6 }
   0x8   :  { %27 = vsyncpa [#allocation5], 0 }
   0x9   :  { %28 = vsyncpa [#allocation3], 0 }
   0xa   :  { %29 = vsyncpa [#allocation8], 0 }
   0xb   :  { %30 = vsyncpa [#allocation11], 0 }
   0xc   :  { %31 = vsyncpa [#allocation14], 0 }
   0xd   :  { %32 = vsyncpa [#allocation17], 0 }
   0xe   :  { %33 = vsyncpa [#allocation20], 0 }
   0xf   :  { %34 = vsyncpa [#allocation23], 0 }
  0x10   :  { %35 = vsyncpa [#allocation4], 0  ;;  %s4893_s3 = smov [#allocation7]   ;;  %s4894_s29 = smov [#allocation10]  }
  0x11   :  { %s68_s28 = sshll.u32 %s4893_s3, 4  ;;  %s88_s30 = sshll.u32 %s4894_s29, 4  ;;  %s69_s28 = int_to_ptr.vmem [resolvable:$true] %s68_s28  ;;  %s89_s30 = int_to_ptr.vmem [resolvable:$true] %s88_s30 }
  0x12   :  { %s5780_s23 = sld [smem:[#allocation39_spill]] }
  0x18   :  { %s4579_s1 = scalar_lea.hbm %s5780_s23, 16 }
  0x19   :  { %p4580_p0 = scmp.ne.s32.totalorder %s5780_s23, %s4579_s1  ;;  %p4583_p1 = scmp.lt.u32.totalorder %s4579_s1, %s5780_s23 }
  0x1b   :  { %p4585_p2 = pnand %p4583_p1, %p4580_p0 }
  0x1d   :  { %4588 = shalt.err (!%p4585_p2)
}
  0x1e   :  { %s4589_s26 = scalar_lea.vmem %s69_s28, 16  ;;  %s4593_s2 = scalar_lea.vmem %s69_s28, 32 }
  0x1f   :  { %p4590_p3 = scmp.ne.s32.totalorder %s69_s28, %s4589_s26  ;;  %p4594_p4 = scmp.lt.s32.totalorder %s69_s28, %s69_s28 }
  0x20   :  { %p4595_p5 = scmp.lt.s32.totalorder %s4593_s2, %s4589_s26 }
  0x22   :  { %p4596_p6 = por %p4595_p5, %p4594_p4 }
  0x24   :  { %p4597_p7 = pnand %p4596_p6, %p4590_p3 }
  0x26   :  { %4600 = shalt.err (!%p4597_p7)
}
  0x27   :  { %71 = dma.hbm_to_vmem [thread:$0]  %s5780_s23, 16, %s69_s28, [#allocation8]  }
  0x28   :  { %s4601_s0 = scalar_lea.hbm %s5750_s7, 32 }
  0x29   :  { %p4602_p8 = scmp.ne.s32.totalorder %s5750_s7, %s4601_s0  ;;  %p4605_p9 = scmp.lt.u32.totalorder %s4601_s0, %s5750_s7 }
  0x2b   :  { %p4607_p10 = pnand %p4605_p9, %p4602_p8 }
  0x2d   :  { %4610 = shalt.err (!%p4607_p10)
}
  0x2e   :  { %s4611_s25 = scalar_lea.vmem %s89_s30, 32  ;;  %p4616_p12 = scmp.lt.s32.totalorder %s89_s30, %s89_s30 }
  0x2f   :  { %p4612_p11 = scmp.ne.s32.totalorder %s89_s30, %s4611_s25  ;;  %p4617_p13 = scmp.lt.s32.totalorder %s4611_s25, %s4611_s25 }
  0x31   :  { %p4618_p0 = por %p4617_p13, %p4616_p12 }
  0x33   :  { %p4619_p1 = pnand %p4618_p0, %p4612_p11 }
  0x35   :  { %4622 = shalt.err (!%p4619_p1)
}
  0x36   :  { %91 = dma.hbm_to_vmem [thread:$0]  %s5750_s7, 32, %s89_s30, [#allocation11]  }
  0x37   :  { %s4895_s26 = smov [#allocation13]   ;;  %s4623_s29 = scalar_lea.hbm %s5752_s9, 32 }
  0x38   :  { %s110_s2 = sshll.u32 %s4895_s26, 4  ;;  %p4624_p2 = scmp.ne.s32.totalorder %s5752_s9, %s4623_s29  ;;  %s111_s2 = int_to_ptr.vmem [resolvable:$true] %s110_s2 }
  0x39   :  { %p4627_p3 = scmp.lt.u32.totalorder %s4623_s29, %s5752_s9 }
  0x3b   :  { %p4629_p4 = pnand %p4627_p3, %p4624_p2 }
  0x3d   :  { %4632 = shalt.err (!%p4629_p4)
}
  0x3e   :  { %s4633_s24 = scalar_lea.vmem %s111_s2, 32  ;;  %p4638_p6 = scmp.lt.s32.totalorder %s111_s2, %s111_s2 }
  0x3f   :  { %p4634_p5 = scmp.ne.s32.totalorder %s111_s2, %s4633_s24  ;;  %p4639_p7 = scmp.lt.s32.totalorder %s4633_s24, %s4633_s24 }
  0x41   :  { %p4640_p8 = por %p4639_p7, %p4638_p6 }
  0x43   :  { %p4641_p9 = pnand %p4640_p8, %p4634_p5 }
  0x45   :  { %4644 = shalt.err (!%p4641_p9)
}
  0x46   :  { %113 = dma.hbm_to_vmem [thread:$0]  %s5752_s9, 32, %s111_s2, [#allocation14]  }
  0x47   :  { %s4896_s6 = smov [#allocation16]   ;;  %s4897_s28 = smov [#allocation19]  }
  0x48   :  { %s133_s25 = sshll.u32 %s4896_s6, 4  ;;  %s159_s23 = sshll.u32 %s4897_s28, 4  ;;  %s134_s25 = int_to_ptr.vmem [resolvable:$true] %s133_s25  ;;  %s160_s23 = int_to_ptr.vmem [resolvable:$true] %s159_s23 }
  0x49   :  { %s4645_s3 = scalar_lea.hbm %s5755_s12, 1536 }
  0x4a   :  { %p4646_p10 = scmp.ne.s32.totalorder %s5755_s12, %s4645_s3  ;;  %p4649_p11 = scmp.lt.u32.totalorder %s4645_s3, %s5755_s12 }
  0x4c   :  { %p4651_p12 = pnand %p4649_p11, %p4646_p10 }
  0x4e   :  { %4654 = shalt.err (!%p4651_p12)
}
  0x4f   :  { %s4655_s9 = scalar_lea.vmem %s134_s25, 1536  ;;  %p4660_p0 = scmp.lt.s32.totalorder %s134_s25, %s134_s25 }
  0x50   :  { %p4656_p13 = scmp.ne.s32.totalorder %s134_s25, %s4655_s9  ;;  %p4661_p1 = scmp.lt.s32.totalorder %s4655_s9, %s4655_s9 }
  0x52   :  { %p4662_p2 = por %p4661_p1, %p4660_p0 }
  0x54   :  { %p4663_p3 = pnand %p4662_p2, %p4656_p13 }
  0x56   :  { %4666 = shalt.err (!%p4663_p3)
}
  0x57   :  { %s4898_s2 = smov 64   ;;  %s4899_s1 = smov 4  }
  0x58   :  { %139 = dma.hbm_to_vmem [thread:$0]  %s5755_s12, 1536, %s134_s25, [#allocation17], %s4898_s2, %s4898_s2, %s4899_s1  }
  0x59   :  { %s4667_s28 = scalar_lea.hbm %s5758_s15, 256 }
  0x5a   :  { %p4668_p4 = scmp.ne.s32.totalorder %s5758_s15, %s4667_s28  ;;  %p4671_p5 = scmp.lt.u32.totalorder %s4667_s28, %s5758_s15 }
  0x5c   :  { %p4673_p6 = pnand %p4671_p5, %p4668_p4 }
  0x5e   :  { %4676 = shalt.err (!%p4673_p6)
}
  0x5f   :  { %s4677_s4 = scalar_lea.vmem %s160_s23, 256  ;;  %p4682_p8 = scmp.lt.s32.totalorder %s160_s23, %s160_s23 }
  0x60   :  { %p4678_p7 = scmp.ne.s32.totalorder %s160_s23, %s4677_s4  ;;  %p4683_p9 = scmp.lt.s32.totalorder %s4677_s4, %s4677_s4 }
  0x62   :  { %p4684_p10 = por %p4683_p9, %p4682_p8 }
  0x64   :  { %p4685_p11 = pnand %p4684_p10, %p4678_p7 }
  0x66   :  { %4688 = shalt.err (!%p4685_p11)
}
  0x67   :  { %165 = dma.hbm_to_vmem [thread:$0]  %s5758_s15, 256, %s160_s23, [#allocation20], %s4898_s2, %s4898_s2, %s4899_s1  }
  0x68   :  { %s5781_s9 = sld [smem:[#allocation34_spill]] }
  0x6e   :  { %s4689_s24 = scalar_lea.hbm %s5781_s9, 16 }
  0x6f   :  { %p4690_p12 = scmp.ne.s32.totalorder %s5781_s9, %s4689_s24  ;;  %p4693_p13 = scmp.lt.u32.totalorder %s4689_s24, %s5781_s9 }
  0x71   :  { %p4695_p0 = pnand %p4693_p13, %p4690_p12 }
  0x73   :  { %4698 = shalt.err (!%p4695_p0)
}
  0x74   :  { %s4900_s26 = smov [#allocation2]   ;;  %s4901_s15 = smov [#allocation6]  }
  0x75   :  { %43 = dma.hbm_to_smem %s5781_s9, 16, %s4900_s26, [#allocation5]  }
  0x76   :  { %s55_s23 = sshll.u32 %s4901_s15, 4  ;;  %s4902_s29 = smov [#allocation9]   ;;  %s56_s23 = int_to_ptr.vmem [resolvable:$true] %s55_s23 }
  0x77   :  { %s78_s4 = sshll.u32 %s4902_s29, 4  ;;  %s5782_s0 = sld [smem:[#allocation38_spill]]  ;;  %s79_s4 = int_to_ptr.vmem [resolvable:$true] %s78_s4 }
  0x7d   :  { %s4699_s5 = scalar_lea.hbm %s5782_s0, 128 }
  0x7e   :  { %p4700_p1 = scmp.ne.s32.totalorder %s5782_s0, %s4699_s5  ;;  %p4703_p2 = scmp.lt.u32.totalorder %s4699_s5, %s5782_s0 }
  0x80   :  { %p4705_p3 = pnand %p4703_p2, %p4700_p1 }
  0x82   :  { %4708 = shalt.err (!%p4705_p3)
}
  0x83   :  { %s4709_s9 = scalar_lea.vmem %s56_s23, 128  ;;  %p4714_p5 = scmp.lt.s32.totalorder %s56_s23, %s56_s23 }
  0x84   :  { %p4710_p4 = scmp.ne.s32.totalorder %s56_s23, %s4709_s9  ;;  %p4715_p6 = scmp.lt.s32.totalorder %s4709_s9, %s4709_s9 }
  0x86   :  { %p4716_p7 = por %p4715_p6, %p4714_p5 }
  0x88   :  { %p4717_p8 = pnand %p4716_p7, %p4710_p4 }
  0x8a   :  { %4720 = shalt.err (!%p4717_p8)
}
  0x8b   :  { %61 = dma.hbm_to_vmem [thread:$0]  %s5782_s0, 128, %s56_s23, [#allocation3], %s4898_s2, %s4898_s2, %s4899_s1  }
  0x8c   :  { %s5783_s15 = sld [smem:[#allocation40_spill]] }
  0x92   :  { %s4721_s29 = scalar_lea.hbm %s5783_s15, 64 }
  0x93   :  { %p4722_p9 = scmp.ne.s32.totalorder %s5783_s15, %s4721_s29  ;;  %p4725_p10 = scmp.lt.u32.totalorder %s4721_s29, %s5783_s15 }
  0x95   :  { %p4727_p11 = pnand %p4725_p10, %p4722_p9 }
  0x97   :  { %4730 = shalt.err (!%p4727_p11)
}
  0x98   :  { %s4731_s30 = scalar_lea.vmem %s79_s4, 64  ;;  %p4736_p13 = scmp.lt.s32.totalorder %s79_s4, %s79_s4 }
  0x99   :  { %p4732_p12 = scmp.ne.s32.totalorder %s79_s4, %s4731_s30  ;;  %p4737_p0 = scmp.lt.s32.totalorder %s4731_s30, %s4731_s30 }
  0x9b   :  { %p4738_p1 = por %p4737_p0, %p4736_p13 }
  0x9d   :  { %p4739_p2 = pnand %p4738_p1, %p4732_p12 }
  0x9f   :  { %4742 = shalt.err (!%p4739_p2)
}
  0xa0   :  { %81 = dma.hbm_to_vmem [thread:$0]  %s5783_s15, 64, %s79_s4, [#allocation8]  }
  0xa1   :  { %s4903_s24 = smov [#allocation12]   ;;  %s4743_s26 = scalar_lea.hbm %s5751_s8, 3072 }
  0xa2   :  { %s97_s6 = sshll.u32 %s4903_s24, 4  ;;  %p4744_p3 = scmp.ne.s32.totalorder %s5751_s8, %s4743_s26  ;;  %s98_s6 = int_to_ptr.vmem [resolvable:$true] %s97_s6 }
  0xa3   :  { %p4747_p4 = scmp.lt.u32.totalorder %s4743_s26, %s5751_s8 }
  0xa5   :  { %p4749_p5 = pnand %p4747_p4, %p4744_p3 }
  0xa7   :  { %4752 = shalt.err (!%p4749_p5)
}
  0xa8   :  { %s4753_s25 = scalar_lea.vmem %s98_s6, 3072  ;;  %p4758_p7 = scmp.lt.s32.totalorder %s98_s6, %s98_s6 }
  0xa9   :  { %p4754_p6 = scmp.ne.s32.totalorder %s98_s6, %s4753_s25  ;;  %p4759_p8 = scmp.lt.s32.totalorder %s4753_s25, %s4753_s25 }
  0xab   :  { %p4760_p9 = por %p4759_p8, %p4758_p7 }
  0xad   :  { %p4761_p10 = pnand %p4760_p9, %p4754_p6 }
  0xaf   :  { %4764 = shalt.err (!%p4761_p10)
}
  0xb0   :  { %s4904_s4 = smov 128   ;;  %s4905_s15 = smov 8  }
  0xb1   :  { %103 = dma.hbm_to_vmem [thread:$0]  %s5751_s8, 3072, %s98_s6, [#allocation11], %s4904_s4, %s4904_s4, %s4905_s15  }
  0xb2   :  { %s4906_s30 = smov [#allocation15]   ;;  %s4765_s9 = scalar_lea.hbm %s5754_s11, 96 }
  0xb3   :  { %s121_s23 = sshll.u32 %s4906_s30, 4  ;;  %p4766_p11 = scmp.ne.s32.totalorder %s5754_s11, %s4765_s9  ;;  %s122_s23 = int_to_ptr.vmem [resolvable:$true] %s121_s23 }
  0xb4   :  { %p4769_p12 = scmp.lt.u32.totalorder %s4765_s9, %s5754_s11 }
  0xb6   :  { %p4771_p13 = pnand %p4769_p12, %p4766_p11 }
  0xb8   :  { %4774 = shalt.err (!%p4771_p13)
}
  0xb9   :  { %s4775_s29 = scalar_lea.vmem %s122_s23, 96  ;;  %p4780_p1 = scmp.lt.s32.totalorder %s122_s23, %s122_s23 }
  0xba   :  { %p4776_p0 = scmp.ne.s32.totalorder %s122_s23, %s4775_s29  ;;  %p4781_p2 = scmp.lt.s32.totalorder %s4775_s29, %s4775_s29 }
  0xbc   :  { %p4782_p3 = por %p4781_p2, %p4780_p1 }
  0xbe   :  { %p4783_p4 = pnand %p4782_p3, %p4776_p0 }
  0xc0   :  { %4786 = shalt.err (!%p4783_p4)
}
  0xc1   :  { %s4907_s8 = smov 16   ;;  %s4908_s6 = smov 1  }
  0xc2   :  { %127 = dma.hbm_to_vmem [thread:$0]  %s5754_s11, 96, %s122_s23, [#allocation14], %s4907_s8, %s4907_s8, %s4908_s6  }
  0xc3   :  { %s4909_s4 = smov [#allocation18]   ;;  %s4910_s5 = smov [#allocation21]  }
  0xc4   :  { %s145_s15 = sshll.u32 %s4909_s4, 4  ;;  %s172_s7 = sshll.u32 %s4910_s5, 4  ;;  %s146_s15 = int_to_ptr.vmem [resolvable:$true] %s145_s15  ;;  %s173_s7 = int_to_ptr.vmem [resolvable:$true] %s172_s7 }
  0xc5   :  { %s4787_s24 = scalar_lea.hbm %s5756_s13, 96 }
  0xc6   :  { %p4788_p5 = scmp.ne.s32.totalorder %s5756_s13, %s4787_s24  ;;  %p4791_p6 = scmp.lt.u32.totalorder %s4787_s24, %s5756_s13 }
  0xc8   :  { %p4793_p7 = pnand %p4791_p6, %p4788_p5 }
  0xca   :  { %4796 = shalt.err (!%p4793_p7)
}
  0xcb   :  { %s4797_s11 = scalar_lea.vmem %s146_s15, 96  ;;  %p4802_p9 = scmp.lt.s32.totalorder %s146_s15, %s146_s15 }
  0xcc   :  { %p4798_p8 = scmp.ne.s32.totalorder %s146_s15, %s4797_s11  ;;  %p4803_p10 = scmp.lt.s32.totalorder %s4797_s11, %s4797_s11 }
  0xce   :  { %p4804_p11 = por %p4803_p10, %p4802_p9 }
  0xd0   :  { %p4805_p12 = pnand %p4804_p11, %p4798_p8 }
  0xd2   :  { %4808 = shalt.err (!%p4805_p12)
}
  0xd3   :  { %151 = dma.hbm_to_vmem [thread:$0]  %s5756_s13, 96, %s146_s15, [#allocation17], %s4907_s8, %s4907_s8, %s4908_s6  }
  0xd4   :  { %s4809_s25 = scalar_lea.hbm %s5759_s16, 16 }
  0xd5   :  { %p4810_p13 = scmp.ne.s32.totalorder %s5759_s16, %s4809_s25  ;;  %p4813_p0 = scmp.lt.u32.totalorder %s4809_s25, %s5759_s16 }
  0xd7   :  { %p4815_p1 = pnand %p4813_p0, %p4810_p13 }
  0xd9   :  { %4818 = shalt.err (!%p4815_p1)
}
  0xda   :  { %s4819_s24 = scalar_lea.vmem %s173_s7, 16  ;;  %s4823_s9 = scalar_lea.vmem %s173_s7, 32 }
  0xdb   :  { %p4820_p2 = scmp.ne.s32.totalorder %s173_s7, %s4819_s24  ;;  %p4824_p3 = scmp.lt.s32.totalorder %s173_s7, %s173_s7 }
  0xdc   :  { %p4825_p4 = scmp.lt.s32.totalorder %s4823_s9, %s4819_s24 }
  0xde   :  { %p4826_p5 = por %p4825_p4, %p4824_p3 }
  0xe0   :  { %p4827_p6 = pnand %p4826_p5, %p4820_p2 }
  0xe2   :  { %4830 = shalt.err (!%p4827_p6)
}
  0xe3   :  { %175 = dma.hbm_to_vmem [thread:$0]  %s5759_s16, 16, %s173_s7, [#allocation20]  }
  0xe4   :  { %s4911_s6 = smov [#allocation22]   ;;  %s4831_s27 = scalar_lea.hbm %s5761_s18, 256 }
  0xe5   :  { %s183_s15 = sshll.u32 %s4911_s6, 4  ;;  %p4832_p7 = scmp.ne.s32.totalorder %s5761_s18, %s4831_s27  ;;  %s184_s15 = int_to_ptr.vmem [resolvable:$true] %s183_s15 }
  0xe6   :  { %p4835_p8 = scmp.lt.u32.totalorder %s4831_s27, %s5761_s18 }
  0xe8   :  { %p4837_p9 = pnand %p4835_p8, %p4832_p7 }
  0xea   :  { %4840 = shalt.err (!%p4837_p9)
}
  0xeb   :  { %s4841_s12 = scalar_lea.vmem %s184_s15, 256  ;;  %p4846_p11 = scmp.lt.s32.totalorder %s184_s15, %s184_s15 }
  0xec   :  { %p4842_p10 = scmp.ne.s32.totalorder %s184_s15, %s4841_s12  ;;  %p4847_p12 = scmp.lt.s32.totalorder %s4841_s12, %s4841_s12 }
  0xee   :  { %p4848_p13 = por %p4847_p12, %p4846_p11 }
  0xf0   :  { %p4849_p0 = pnand %p4848_p13, %p4842_p10 }
  0xf2   :  { %4852 = shalt.err (!%p4849_p0)
}
  0xf3   :  { %189 = dma.hbm_to_vmem [thread:$0]  %s5761_s18, 256, %s184_s15, [#allocation23], %s4898_s2, %s4898_s2, %s4899_s1  }
  0xf4   :  { %4875 = dma.done.wait [#allocation5], 16  }
  0xf5   :  { %4876 = vsyncadd [#allocation5], 4294967280 }
  0xf6   :  { %4877 = dma.done.wait [#allocation3], 128  }
  0xf7   :  { %4878 = vsyncadd [#allocation3], 4294967168 }
  0xf8   :  { %4879 = dma.done.wait [#allocation8], 80  }
  0xf9   :  { %4880 = vsyncadd [#allocation8], 4294967216 }
  0xfa   :  { %4881 = dma.done.wait [#allocation11], 3104  }
  0xfb   :  { %4882 = vsyncadd [#allocation11], 4294964192 }
  0xfc   :  { %4883 = dma.done.wait [#allocation14], 128  }
  0xfd   :  { %4884 = vsyncadd [#allocation14], 4294967168 }
  0xfe   :  { %4885 = dma.done.wait [#allocation17], 1632  }
  0xff   :  { %4886 = vsyncadd [#allocation17], 4294965664 }
 0x100   :  { %4887 = dma.done.wait [#allocation20], 272  }
 0x101   :  { %4888 = vsyncadd [#allocation20], 4294967024 }
 0x102   :  { %4889 = dma.done.wait [#allocation23], 256  }
 0x103   :  { %4890 = vsyncadd [#allocation23], 4294967040 }
 0x104   :  { %235 = sfence }
 0x105   :  { %v3710_v0 = vld.sshfl [vmem:[#allocation9] sm:$0x33 pattern:$0x76325410]  ;;  %vm285_vm0 = vcmask 1041408   ;;  %v4912_v3 = vmov 0   ;;  %v259_v39 = vlaneseq }
 0x106   :  { %v277_v1 = vcombine.high %v3710_v0, %v3710_v0  ;;  %v287_v2 = vsel %vm285_vm0, %v3710_v0, 0  ;;  %324 = vmatprep.mubr.bf16.mxu0 %v4912_v3  ;;  %s5784_s25 = sld [smem:[#allocation36_spill]]  ;;  %v4434_v7 = vld [vmem:[#allocation12 + $0x4] ss:$8 sps:$4 sm:$0xff]   ;;  %v4436_v8 = vld [vmem:[#allocation12] ss:$8 sps:$4 sm:$0xff]  }
 0x107   :  { %vm278_vm1 = vcmask 31744   ;;  %v4437_v9 = vld [vmem:[#allocation12 + $0x14] ss:$8 sps:$4 sm:$0xff]   ;;  %520 = vmatprep.subr.bf16.mxu1 %v4434_v7  ;;  %v4439_v10 = vld [vmem:[#allocation12 + $0x10] ss:$8 sps:$4 sm:$0xff]   ;;  %s5785_s6 = sld [smem:[#allocation35_spill]] }
 0x108   :  { %3711 = vmatprep.subr.msk.bf16.mxu0 %vm285_vm0, %v277_v1  ;;  %521 = vmatpush1.bf16.msra.mxu1 %v4436_v8  ;;  %v4440_v11 = vld [vmem:[#allocation12 + $0x24] ss:$8 sps:$4 sm:$0xff]   ;;  %v4442_v14 = vld [vmem:[#allocation12 + $0x20] ss:$8 sps:$4 sm:$0xff]   ;;  %v4443_v16 = vld [vmem:[#allocation12 + $0x34] ss:$8 sps:$4 sm:$0xff]  }
 0x109   :  { %293 = vmatpush1.bf16.msra.mxu0 %v287_v2  ;;  %522 = vmatprep.subr.bf16.mxu1 %v4437_v9  ;;  %v4445_v17 = vld [vmem:[#allocation12 + $0x30] ss:$8 sps:$4 sm:$0xff]   ;;  %v4446_v18 = vld [vmem:[#allocation12 + $0x44] ss:$8 sps:$4 sm:$0xff]   ;;  %v4448_v19 = vld [vmem:[#allocation12 + $0x40] ss:$8 sps:$4 sm:$0xff]  }
 0x10a   :  { %v4449_v20 = vld [vmem:[#allocation12 + $0x54] ss:$8 sps:$4 sm:$0xff]   ;;  %v4451_v21 = vld [vmem:[#allocation12 + $0x50] ss:$8 sps:$4 sm:$0xff]   ;;  %v4452_v22 = vld [vmem:[#allocation12 + $0x64] ss:$8 sps:$4 sm:$0xff]  }
 0x10b   :  { %v4454_v23 = vld [vmem:[#allocation12 + $0x60] ss:$8 sps:$4 sm:$0xff]   ;;  %v4455_v24 = vld [vmem:[#allocation12 + $0x74] ss:$8 sps:$4 sm:$0xff]   ;;  %v4457_v25 = vld [vmem:[#allocation12 + $0x70] ss:$8 sps:$4 sm:$0xff]  }
 0x10c   :  { %v250_v4 = vld [vmem:[%s5784_s25] sm:$0xff]  ;;  %v251_v5 = vld [vmem:[%s5784_s25 + $0x8] sm:$0xff]  ;;  %v252_v12 = vld [vmem:[%s5784_s25 + $0x10] sm:$0xff]  ;;  %523 = vmatpush1.bf16.msra.mxu1 %v4439_v10  ;;  %s5786_s11 = sld [smem:[#allocation37_spill]]  ;;  %vm585_vm2 = vcmask 130048   ;;  %v5243_v40 = vshrl.u32 %v259_v39, 7 }
 0x10d   :  { %v254_v6 = vpack.c.bf16 %v251_v5, %v250_v4  ;;  %v253_v13 = vld [vmem:[%s5784_s25 + $0x18] sm:$0xff]  ;;  %524 = vmatprep.subr.bf16.mxu1 %v4440_v11  ;;  %v4461_v28 = vld [vmem:[#allocation12 + $0x94] ss:$8 sps:$4 sm:$0xff]   ;;  %v4463_v29 = vld [vmem:[#allocation12 + $0x90] ss:$8 sps:$4 sm:$0xff]   ;;  %vm513_vm3 = vcmask 523264  }
 0x10e   :  { %v255_v15 = vpack.c.bf16 %v253_v13, %v252_v12  ;;  %v4458_v26 = vld [vmem:[#allocation12 + $0x84] ss:$8 sps:$4 sm:$0xff]   ;;  %v4460_v27 = vld [vmem:[#allocation12 + $0x80] ss:$8 sps:$4 sm:$0xff]   ;;  %v5220_v32 = vld [vmem:[%s5785_s6] sm:$0xff]  ;;  %v261_v41 = vsub.s32 0, %v5243_v40 }
 0x10f   :  { %3712 = vmatmul.mubr.msk.bf16.vlgmr.msra.gmra.mrb[0].mxu0 %vm278_vm1, %v254_v6  ;;  %v4464_v30 = vld [vmem:[#allocation12 + $0xa4] ss:$8 sps:$4 sm:$0xff]   ;;  %v4466_v31 = vld [vmem:[#allocation12 + $0xa0] ss:$8 sps:$4 sm:$0xff]   ;;  %v5225_v33 = vld [vmem:[%s5785_s6 + $0x8] sm:$0xff]  ;;  %v265_v43 = vsub.s32 1, %v5243_v40 }
 0x110   :  { %334 = vmatprep.mubr.bf16.mxu0 %v4912_v3  ;;  %525 = vmatpush1.bf16.msra.mxu1 %v4442_v14  ;;  %v4467_v34 = vld [vmem:[#allocation12 + $0xb4] ss:$8 sps:$4 sm:$0xff]   ;;  %v574_v35 = vpack.c.bf16 %v5225_v33, %v5220_v32  ;;  %v4469_v36 = vld [vmem:[#allocation12 + $0xb0] ss:$8 sps:$4 sm:$0xff]   ;;  %vm4914_vm4 = vmmov 0   ;;  %s4915_s29 = smov 96  }
 0x111   :  { %526 = vmatprep.subr.bf16.mxu1 %v4443_v16  ;;  %v257_v42 = vld [vmem:[#allocation10] sm:$0x3]  ;;  %v381_v16 = vld [vmem:[#allocation13] sm:$0x3]  ;;  %s4916_s12 = smov 32   ;;  %vm652_vm5 = vcmask 261120  }
 0x112   :  { %4025 = vmatprep.subr.bf16.mxu0 %v574_v35  ;;  %v5232_v37 = vld [vmem:[%s5786_s11] sm:$0xff]   ;;  %v5237_v38 = vld [vmem:[%s5786_s11 + $0x8] sm:$0xff]   ;;  %v262_v44 = vrot.slane %v257_v42, %v261_v41  ;;  %v266_v45 = vrot.slane %v257_v42, %v265_v43  ;;  %s573_s25 = sld [smem:[#allocation2]]  ;;  %s3754_s9 = sld [smem:[#allocation2 + $0x1]]  ;;  %vm2372_vm8 = vcmask 123904   ;;  %vm3686_vm9 = vcmask 91136  }
 0x113   :  { %4026 = vmatpush3.bf16.msra.mxu0 %v574_v35  ;;  %s3770_s26 = sld [smem:[#allocation2 + $0x2]]  ;;  %s3786_s16 = sld [smem:[#allocation2 + $0x3]] }
 0x114   :  { %527 = vmatpush1.bf16.msra.mxu1 %v4445_v17  ;;  %v386_v17 = vrot.slane %v381_v16, %v261_v41  ;;  %s3802_s5 = sld [smem:[#allocation2 + $0x4]]  ;;  %s3818_s8 = sld [smem:[#allocation2 + $0x5]] }
 0x115   :  { %528 = vmatprep.subr.bf16.mxu1 %v4446_v18 }
 0x117   :  { %3713 = vmatmul.mubr.msk.bf16.gmra.mrb[4].mxu0 %vm278_vm1, %v255_v15  ;;  %v4913_v15 = vmov 0.0  }
 0x118   :  { %529 = vmatpush1.bf16.msra.mxu1 %v4448_v19  ;;  %4027 = vmatprep.mubr.msk.bf16.mxu0 %vm585_vm2, %v5232_v37  ;;  %s697_s4 = sadd.f32 1.0, %s573_s25 }
 0x119   :  { %530 = vmatprep.subr.bf16.mxu1 %v4449_v20  ;;  %4031 = vmatprep.subr.bf16.mxu0 %v4913_v15  ;;  %s957_s13 = sadd.f32 1.0, %s3754_s9 }
 0x11a   :  { %s1217_s27 = sadd.f32 1.0, %s3770_s26 }
 0x11b   :  { %s1477_s7 = sadd.f32 1.0, %s3786_s16 }
 0x11c   :  { %531 = vmatpush1.bf16.msra.mxu1 %v4451_v21  ;;  %s1725_s30 = sadd.f32 1.0, %s3802_s5 }
 0x11d   :  { %532 = vmatprep.subr.bf16.mxu1 %v4452_v22  ;;  %s1989_s6 = sadd.f32 1.0, %s3818_s8 }
 0x11f   :  { %4028 = vmatmul.mubr.msk.bf16.vlgmr.msra.gmra.mrb[8].mxu0 %vm585_vm2, %v5237_v38 }
 0x120   :  { %533 = vmatpush1.bf16.msra.mxu1 %v4454_v23  ;;  %4035 = vmatprep.mubr.msk.bf16.mxu0 %vm4914_vm4, %v4913_v15 }
 0x121   :  { %534 = vmatprep.subr.bf16.mxu1 %v4455_v24 }
 0x124   :  { %535 = vmatpush1.bf16.msra.mxu1 %v4457_v25 }
 0x125   :  { %536 = vmatprep.subr.bf16.mxu1 %v4458_v26 }
 0x128   :  { %537 = vmatpush1.bf16.msra.mxu1 %v4460_v27 }
 0x129   :  { %538 = vmatprep.subr.bf16.mxu1 %v4461_v28 }
 0x12c   :  { %539 = vmatpush1.bf16.msra.mxu1 %v4463_v29 }
 0x12d   :  { %540 = vmatprep.subr.bf16.mxu1 %v4464_v30 }
 0x130   :  { %541 = vmatpush1.bf16.msra.mxu1 %v4466_v31 }
 0x131   :  { %542 = vmatprep.subr.bf16.mxu1 %v4467_v34 }
 0x134   :  { %543 = vmatpush1.bf16.msra.mxu1 %v4469_v36 }
 0x135   :  { %4069 = vmatprep.subr.bf16.mxu1 %v4913_v15 }
 0x1e2   :  { %v326_v46 = vpop.f32.mrb[0].mxu0 }
 0x1e3   :  { %v327_v47 = vadd.f32 %v326_v46, %v262_v44  ;;  %v328_v48 = vpop.f32.mrb[1].mxu0  ;;  %v5266_v46 = vld [vmem:[#allocation6] sm:$0xff]  }
 0x1e4   :  { %v329_v49 = vadd.f32 %v328_v48, %v266_v45  ;;  %v330_v50 = vpop.f32.mrb[2].mxu0 }
 0x1e5   :  { %v331_v51 = vadd.f32 %v330_v50, %v262_v44  ;;  %v332_v52 = vpop.f32.mrb[3].mxu0  ;;  %v345_v54 = vmax.f32 %v327_v47, 0.0  ;;  %v390_v47 = vrot.slane %v381_v16, %v265_v43  ;;  %v4473_v50 = vld [vmem:[%s5753_s10] sm:$0xff]  }
 0x1e6   :  { %v333_v53 = vadd.f32 %v332_v52, %v266_v45  ;;  %v346_v56 = vmax.f32 %v329_v49, 0.0  ;;  %v698_v52 = vstv %s697_s4 }
 0x1e7   :  { %v347_v55 = vmax.f32 %v331_v51, 0.0  ;;  %v4474_v51 = vld [vmem:[%s5753_s10 + $0x8] sm:$0xff]  }
 0x1e8   :  { %v348_v57 = vmax.f32 %v333_v53, 0.0  ;;  %v699_v53 = vmul.f32 %v698_v52, %v5220_v32  ;;  %v3746_v32 = vld [vmem:[#allocation15] ss:$0 sm:$0xff] }
 0x1e9   :  { %v353_v58 = vpack.c.bf16 %v347_v55, %v345_v54  ;;  %v700_v54 = vmul.f32 %v698_v52, %v5225_v33 }
 0x1ea   :  { %v336_v59 = vpop.f32.mrb[4].mxu0  ;;  %v354_v60 = vpack.c.bf16 %v348_v57, %v346_v56 }
 0x1eb   :  { %v337_v61 = vadd.f32 %v336_v59, %v262_v44  ;;  %v338_v62 = vpop.f32.mrb[5].mxu0 }
 0x1ec   :  { %v339_v63 = vadd.f32 %v338_v62, %v266_v45  ;;  %v340_v0 = vpop.f32.mrb[6].mxu0  ;;  %3738 = vmatprep.mubr.msk.bf16.mxu1 %vm513_vm3, %v354_v60  ;;  %v4475_v62 = vld [vmem:[#allocation16] sm:$0xff]  }
 0x1ed   :  { %v341_v1 = vadd.f32 %v340_v0, %v262_v44  ;;  %v342_v2 = vpop.f32.mrb[7].mxu0  ;;  %553 = vmatmul.mubr.bf16.vlgmr.msra.gmra.mrb[0].mxu1 %v353_v58  ;;  %v349_v5 = vmax.f32 %v337_v61, 0.0 }
 0x1ee   :  { %v343_v4 = vadd.f32 %v342_v2, %v266_v45  ;;  %v350_v7 = vmax.f32 %v339_v63, 0.0  ;;  %v4476_v63 = vld [vmem:[#allocation16 + $0x8] sm:$0xff]  }
 0x1ef   :  { %v351_v6 = vmax.f32 %v341_v1, 0.0 }
 0x1f0   :  { %v352_v8 = vmax.f32 %v343_v4, 0.0 }
 0x1f1   :  { %v355_v9 = vpack.c.bf16 %v351_v6, %v349_v5 }
 0x1f2   :  { %v356_v10 = vpack.c.bf16 %v352_v8, %v350_v7  ;;  %v4029_v11 = vpop.f32.mrb[8].mxu0 }
 0x1f3   :  { %v626_v12 = vpop.f32.mrb[9].mxu0 }
 0x1f4   :  { %3739 = vmatprep.mubr.msk.bf16.mxu1 %vm513_vm3, %v356_v10  ;;  %v4030_v13 = vpop.f32.mrb[10].mxu0 }
 0x1f5   :  { %563 = vmatmul.mubr.bf16.gmra.mrb[4].mxu1 %v355_v9  ;;  %v629_v14 = vpop.f32.mrb[11].mxu0  ;;  %v3750_v9 = vld [vmem:[#allocation18] ss:$0 sm:$0xff] }
 0x1f6   :  { %4073 = vmatprep.mubr.msk.bf16.mxu1 %vm4914_vm4, %v4913_v15 }
 0x2c0   :  { %v554_v18 = vpop.f32.mrb[0].mxu1 }
 0x2c1   :  { %v555_v19 = vadd.f32 %v554_v18, %v386_v17  ;;  %v556_v20 = vpop.f32.mrb[1].mxu1 }
 0x2c2   :  { %v558_v21 = vpop.f32.mrb[2].mxu1  ;;  %v5277_v48 = vadd.f32 %v556_v20, %v390_v47  ;;  %v4477_v20 = vld [vmem:[%s5753_s10 + $0x10] sm:$0xff]  }
 0x2c3   :  { %v559_v22 = vadd.f32 %v558_v21, %v386_v17  ;;  %v627_v23 = vadd.f32 %v626_v12, %v555_v19  ;;  %v560_v24 = vpop.f32.mrb[3].mxu1  ;;  %849 = vrot.lane.b32.xlu0 %v555_v19, %s4915_s29  ;;  %4070 = vmatpush3.bf16.msra.mxu1 %v4477_v20 }
 0x2c4   :  { %v5287_v40 = vadd.f32 %v560_v24, %v390_v47  ;;  %4071 = vmatprep.subr.bf16.mxu1 %v4913_v15 }
 0x2c5   :  { %v630_v25 = vadd.f32 %v629_v14, %v559_v22  ;;  %v641_v26 = vmax.f32 %v627_v23, 0.0 }
 0x2c7   :  { %v642_v27 = vmax.f32 %v630_v25, 0.0  ;;  %851 = vrot.lane.b32.xlu0 %v559_v22, %s4915_s29 }
 0x2c8   :  { %v564_v28 = vpop.f32.mrb[4].mxu1 }
 0x2c9   :  { %v645_v29 = vpack.c.bf16 %v642_v27, %v641_v26  ;;  %v565_v30 = vadd.f32 %v564_v28, %v386_v17  ;;  %v566_v31 = vpop.f32.mrb[5].mxu1 }
 0x2ca   :  { %v568_v34 = vpop.f32.mrb[6].mxu1  ;;  %v5282_v49 = vadd.f32 %v566_v31, %v390_v47 }
 0x2cb   :  { %v635_v35 = vadd.f32 %v4029_v11, %v565_v30  ;;  %v569_v36 = vadd.f32 %v568_v34, %v386_v17  ;;  %v570_v39 = vpop.f32.mrb[7].mxu1  ;;  %853 = vrot.lane.b32.xlu1 %v565_v30, %s4915_s29  ;;  %1109 = vrot.lane.b32.xlu0 %v555_v19, %s4898_s2 }
 0x2cc   :  { %4032 = vmatpush3.bf16.msra.mxu0 %v645_v29  ;;  %v5291_v43 = vadd.f32 %v570_v39, %v390_v47  ;;  %v958_v47 = vstv %s957_s13 }
 0x2cd   :  { %v638_v41 = vadd.f32 %v4030_v13, %v569_v36  ;;  %4033 = vmatprep.subr.bf16.mxu0 %v4913_v15  ;;  %v643_v42 = vmax.f32 %v635_v35, 0.0 }
 0x2cf   :  { %v644_v44 = vmax.f32 %v638_v41, 0.0  ;;  %855 = vrot.lane.b32.xlu1 %v569_v36, %s4915_s29  ;;  %1113 = vrot.lane.b32.xlu0 %v565_v30, %s4898_s2 }
 0x2d1   :  { %v646_v45 = vpack.c.bf16 %v644_v44, %v643_v42 }
 0x2d3   :  { %1111 = vrot.lane.b32.xlu1 %v559_v22, %s4898_s2  ;;  %1369 = vrot.lane.b32.xlu0 %v555_v19, %s4916_s12 }
 0x2d4   :  { %4034 = vmatpush3.bf16.msra.mxu0 %v646_v45  ;;  %v4478_v45 = vld [vmem:[%s5753_s10 + $0x18] sm:$0xff]  }
 0x2d5   :  { %4039 = vmatprep.subr.bf16.mxu0 %v4913_v15  ;;  %4072 = vmatpush3.bf16.msra.mxu1 %v4478_v45 }
 0x2d7   :  { %4036 = vmatmul.mubr.msk.bf16.vlgmr.msra.gmra.mrb[12].mxu0 %vm652_vm5, %v5266_v46  ;;  %1115 = vrot.lane.b32.xlu1 %v569_v36, %s4898_s2 }
 0x2d8   :  { %1373 = vrot.lane.b32.xlu0 %v565_v30, %s4916_s12  ;;  %4043 = vmatprep.mubr.msk.bf16.mxu0 %vm4914_vm4, %v4913_v15 }
 0x2d9   :  { %4040 = vmatpush3.bf16.msra.mxu0 %v4473_v50 }
 0x2da   :  { %4041 = vmatprep.subr.bf16.mxu0 %v4913_v15 }
 0x2db   :  { %1371 = vrot.lane.b32.xlu1 %v559_v22, %s4916_s12 }
 0x2dc   :  { %1881 = vrot.lane.b32.xlu0 %v5277_v48, %s4915_s29 }
 0x2dd   :  { %4042 = vmatpush3.bf16.msra.mxu0 %v4474_v51 }
 0x2de   :  { %4047 = vmatprep.subr.bf16.mxu0 %v4913_v15 }
 0x2df   :  { %1375 = vrot.lane.b32.xlu1 %v569_v36, %s4916_s12 }
 0x2e0   :  { %1885 = vrot.lane.b32.xlu0 %v5282_v49, %s4915_s29 }
 0x2e3   :  { %1883 = vrot.lane.b32.xlu1 %v5287_v40, %s4915_s29 }
 0x2e7   :  { %1887 = vrot.lane.b32.xlu1 %v5291_v43, %s4915_s29 }
 0x335   :  { %v850_v22 = vpop.permute.xlu0 %849 }
 0x339   :  { %v852_v29 = vpop.permute.xlu0 %851 }
 0x33d   :  { %v854_v21 = vpop.permute.xlu1 %853 }
 0x341   :  { %v856_v26 = vpop.permute.xlu1 %855 }
 0x3aa   :  { %v690_v55 = vpop.f32.mrb[12].mxu0 }
 0x3ab   :  { %v4037_v56 = vpop.f32.mrb[13].mxu0  ;;  %v701_v58 = vadd.f32 %v699_v53, %v690_v55 }
 0x3ac   :  { %v693_v57 = vpop.f32.mrb[14].mxu0 }
 0x3ad   :  { %v702_v59 = vadd.f32 %v700_v54, %v693_v57  ;;  %v4038_v60 = vpop.f32.mrb[15].mxu0 }
 0x3ae   :  { %v4480_v60 = vld [vmem:[#allocation16 + $0x18] sm:$0xff]  }
 0x3af   :  { %v703_v61 = vpack.c.bf16 %v702_v59, %v701_v58  ;;  %v4479_v59 = vld [vmem:[#allocation16 + $0x10] sm:$0xff]  }
 0x3b1   :  { %4044 = vmatmul.mubr.msk.bf16.vlgmr.msra.gmra.mrb[16].mxu0 %vm652_vm5, %v703_v61  ;;  %v3762_v61 = vld [vmem:[#allocation15 + $0x1] ss:$0 sm:$0xff] }
 0x3b2   :  { %4051 = vmatprep.mubr.msk.bf16.mxu0 %vm4914_vm4, %v4913_v15  ;;  %4048 = vmatpush3.bf16.msra.mxu0 %v4475_v62 }
 0x3b3   :  { %4049 = vmatprep.subr.bf16.mxu0 %v4913_v15 }
 0x3b6   :  { %4050 = vmatpush3.bf16.msra.mxu0 %v4476_v63 }
 0x484   :  { %v764_v33 = vpop.f32.mrb[16].mxu0 }
 0x485   :  { %v765_v0 = vadd.f32 %v3746_v32, %v764_v33  ;;  %v4045_v1 = vpop.f32.mrb[17].mxu0 }
 0x486   :  { %v767_v2 = vpop.f32.mrb[18].mxu0 }
 0x487   :  { %v768_v4 = vadd.f32 %v3746_v32, %v767_v2  ;;  %v4046_v5 = vpop.f32.mrb[19].mxu0  ;;  %v771_v6 = vmax.f32 %v765_v0, 0.0 }
 0x489   :  { %v772_v7 = vmax.f32 %v768_v4, 0.0 }
 0x48b   :  { %v773_v8 = vpack.c.bf16 %v772_v7, %v771_v6  ;;  %v3766_v6 = vld [vmem:[#allocation18 + $0x1] ss:$0 sm:$0xff] }
 0x48d   :  { %4052 = vmatmul.mubr.msk.bf16.vlgmr.msra.gmra.mrb[20].mxu0 %vm652_vm5, %v773_v8 }
 0x48e   :  { %4057 = vmatprep.mubr.msk.bf16.mxu0 %vm585_vm2, %v5232_v37 }
 0x560   :  { %v834_v10 = vpop.f32.mrb[20].mxu0 }
 0x561   :  { %v835_v11 = vadd.f32 %v3750_v9, %v834_v10  ;;  %v4053_v12 = vpop.f32.mrb[21].mxu0 }
 0x562   :  { %v837_v13 = vpop.f32.mrb[22].mxu0 }
 0x563   :  { %v838_v14 = vadd.f32 %v3750_v9, %v837_v13  ;;  %v4054_v16 = vpop.f32.mrb[23].mxu0  ;;  %v841_v17 = vmax.f32 %v835_v11, 0.0 }
 0x565   :  { %v842_v18 = vmax.f32 %v838_v14, 0.0  ;;  %v959_v50 = vmul.f32 %v958_v47, %v841_v17 }
 0x567   :  { %v844_v19 = vpack.c.bf16 %v842_v18, %v841_v17  ;;  %v960_v54 = vmul.f32 %v958_v47, %v842_v18  ;;  %v1110_v17 = vpop.permute.xlu0 %1109  ;;  %v1112_v18 = vpop.permute.xlu1 %1111 }
 0x569   :  { %4055 = vmatprep.subr.bf16.mxu0 %v844_v19 }
 0x56a   :  { %4056 = vmatpush3.bf16.msra.mxu0 %v844_v19 }
 0x56b   :  { %4061 = vmatprep.subr.bf16.mxu0 %v4913_v15  ;;  %v1114_v19 = vpop.permute.xlu0 %1113 }
 0x56d   :  { %4058 = vmatmul.mubr.msk.bf16.vlgmr.msra.gmra.mrb[24].mxu0 %vm585_vm2, %v5237_v38 }
 0x56e   :  { %4065 = vmatprep.mubr.msk.bf16.mxu0 %vm4914_vm4, %v4913_v15 }
 0x640   :  { %v4059_v23 = vpop.f32.mrb[24].mxu0 }
 0x641   :  { %v904_v24 = vadd.f32 %v4059_v23, %v854_v21  ;;  %v895_v25 = vpop.f32.mrb[25].mxu0  ;;  %v1116_v23 = vpop.permute.xlu1 %1115 }
 0x642   :  { %v896_v27 = vadd.f32 %v895_v25, %v850_v22  ;;  %v4060_v28 = vpop.f32.mrb[26].mxu0 }
 0x643   :  { %v907_v30 = vadd.f32 %v4060_v28, %v856_v26  ;;  %v898_v31 = vpop.f32.mrb[27].mxu0  ;;  %v912_v35 = vmax.f32 %v904_v24, 0.0 }
 0x644   :  { %v899_v34 = vadd.f32 %v898_v31, %v852_v29  ;;  %v910_v39 = vmax.f32 %v896_v27, 0.0 }
 0x645   :  { %v913_v36 = vmax.f32 %v907_v30, 0.0 }
 0x646   :  { %v911_v41 = vmax.f32 %v899_v34, 0.0 }
 0x647   :  { %v915_v42 = vpack.c.bf16 %v913_v36, %v912_v35 }
 0x648   :  { %v914_v44 = vpack.c.bf16 %v911_v41, %v910_v39  ;;  %v4481_v39 = vld [vmem:[%s5753_s10 + $0x20] sm:$0xff]   ;;  %v4482_v41 = vld [vmem:[%s5753_s10 + $0x28] sm:$0xff]  }
 0x64a   :  { %4062 = vmatpush3.bf16.msra.mxu0 %v914_v44 }
 0x64b   :  { %4063 = vmatprep.subr.bf16.mxu0 %v4913_v15 }
 0x64e   :  { %4064 = vmatpush3.bf16.msra.mxu0 %v915_v42  ;;  %v1218_v42 = vstv %s1217_s27 }
 0x64f   :  { %4077 = vmatprep.subr.bf16.mxu0 %v4913_v15 }
 0x651   :  { %4066 = vmatmul.mubr.msk.bf16.vlgmr.msra.gmra.mrb[28].mxu0 %vm652_vm5, %v5266_v46 }
 0x652   :  { %4081 = vmatprep.mubr.msk.bf16.mxu0 %vm4914_vm4, %v4913_v15  ;;  %4078 = vmatpush3.bf16.msra.mxu0 %v4479_v59 }
 0x653   :  { %4079 = vmatprep.subr.bf16.mxu0 %v4913_v15 }
 0x656   :  { %4080 = vmatpush3.bf16.msra.mxu0 %v4480_v60 }
 0x657   :  { %4091 = vmatprep.subr.bf16.mxu0 %v4913_v15 }
 0x724   :  { %v950_v51 = vpop.f32.mrb[28].mxu0 }
 0x725   :  { %v961_v52 = vadd.f32 %v959_v50, %v950_v51  ;;  %v4067_v53 = vpop.f32.mrb[29].mxu0 }
 0x726   :  { %v953_v55 = vpop.f32.mrb[30].mxu0 }
 0x727   :  { %v962_v56 = vadd.f32 %v960_v54, %v953_v55  ;;  %v4068_v57 = vpop.f32.mrb[31].mxu0 }
 0x728   :  { %v4484_v57 = vld [vmem:[#allocation16 + $0x28] sm:$0xff]  }
 0x729   :  { %v963_v58 = vpack.c.bf16 %v962_v56, %v961_v52  ;;  %v4483_v56 = vld [vmem:[#allocation16 + $0x20] sm:$0xff]  }
 0x72b   :  { %4074 = vmatmul.mubr.msk.bf16.vlgmr.msra.gmra.mrb[8].mxu1 %vm652_vm5, %v963_v58  ;;  %v3778_v58 = vld [vmem:[#allocation15 + $0x2] ss:$0 sm:$0xff] }
 0x72c   :  { %4087 = vmatprep.mubr.msk.bf16.mxu1 %vm585_vm2, %v5232_v37 }
 0x7fe   :  { %v1026_v62 = vpop.f32.mrb[8].mxu1 }
 0x7ff   :  { %v1027_v63 = vadd.f32 %v3762_v61, %v1026_v62  ;;  %v4075_v32 = vpop.f32.mrb[9].mxu1 }
 0x800   :  { %v1029_v33 = vpop.f32.mrb[10].mxu1 }
 0x801   :  { %v1030_v0 = vadd.f32 %v3762_v61, %v1029_v33  ;;  %v4076_v1 = vpop.f32.mrb[11].mxu1  ;;  %v1033_v2 = vmax.f32 %v1027_v63, 0.0 }
 0x803   :  { %v1034_v4 = vmax.f32 %v1030_v0, 0.0 }
 0x805   :  { %v1035_v5 = vpack.c.bf16 %v1034_v4, %v1033_v2  ;;  %v3782_v2 = vld [vmem:[#allocation18 + $0x2] ss:$0 sm:$0xff] }
 0x807   :  { %4082 = vmatmul.mubr.msk.bf16.vlgmr.msra.gmra.mrb[32].mxu0 %vm652_vm5, %v1035_v5 }
 0x808   :  { %4095 = vmatprep.mubr.msk.bf16.mxu0 %vm4914_vm4, %v4913_v15 }
 0x8da   :  { %v1098_v7 = vpop.f32.mrb[32].mxu0 }
 0x8db   :  { %v1099_v8 = vadd.f32 %v3766_v6, %v1098_v7  ;;  %v4083_v9 = vpop.f32.mrb[33].mxu0 }
 0x8dc   :  { %v1101_v10 = vpop.f32.mrb[34].mxu0 }
 0x8dd   :  { %v1102_v11 = vadd.f32 %v3766_v6, %v1101_v10  ;;  %v4084_v12 = vpop.f32.mrb[35].mxu0  ;;  %v1105_v13 = vmax.f32 %v1099_v8, 0.0 }
 0x8df   :  { %v1106_v14 = vmax.f32 %v1102_v11, 0.0  ;;  %v1219_v44 = vmul.f32 %v1218_v42, %v1105_v13 }
 0x8e1   :  { %v1108_v16 = vpack.c.bf16 %v1106_v14, %v1105_v13  ;;  %v1220_v51 = vmul.f32 %v1218_v42, %v1106_v14  ;;  %v1370_v13 = vpop.permute.xlu0 %1369  ;;  %v1372_v14 = vpop.permute.xlu1 %1371 }
 0x8e3   :  { %4085 = vmatprep.subr.bf16.mxu1 %v1108_v16 }
 0x8e4   :  { %4086 = vmatpush3.bf16.msra.mxu1 %v1108_v16 }
 0x8e5   :  { %4099 = vmatprep.subr.bf16.mxu1 %v4913_v15  ;;  %v1374_v16 = vpop.permute.xlu0 %1373 }
 0x8e7   :  { %4088 = vmatmul.mubr.msk.bf16.vlgmr.msra.gmra.mrb[12].mxu1 %vm585_vm2, %v5237_v38 }
 0x8e8   :  { %4103 = vmatprep.mubr.msk.bf16.mxu1 %vm4914_vm4, %v4913_v15  ;;  %4100 = vmatpush3.bf16.msra.mxu1 %v4481_v39 }
 0x8e9   :  { %4101 = vmatprep.subr.bf16.mxu1 %v4913_v15 }
 0x8ec   :  { %4102 = vmatpush3.bf16.msra.mxu1 %v4482_v41 }
 0x9ba   :  { %v4089_v20 = vpop.f32.mrb[12].mxu1 }
 0x9bb   :  { %v1164_v21 = vadd.f32 %v4089_v20, %v1114_v19  ;;  %v1155_v22 = vpop.f32.mrb[13].mxu1  ;;  %v1376_v20 = vpop.permute.xlu1 %1375 }
 0x9bc   :  { %v1156_v24 = vadd.f32 %v1155_v22, %v1110_v17  ;;  %v4090_v25 = vpop.f32.mrb[14].mxu1 }
 0x9bd   :  { %v1167_v26 = vadd.f32 %v4090_v25, %v1116_v23  ;;  %v1158_v27 = vpop.f32.mrb[15].mxu1  ;;  %v1172_v29 = vmax.f32 %v1164_v21, 0.0 }
 0x9be   :  { %v1159_v28 = vadd.f32 %v1158_v27, %v1112_v18  ;;  %v1170_v31 = vmax.f32 %v1156_v24, 0.0 }
 0x9bf   :  { %v1173_v30 = vmax.f32 %v1167_v26, 0.0 }
 0x9c0   :  { %v1171_v34 = vmax.f32 %v1159_v28, 0.0 }
 0x9c1   :  { %v1175_v35 = vpack.c.bf16 %v1173_v30, %v1172_v29 }
 0x9c2   :  { %v1174_v36 = vpack.c.bf16 %v1171_v34, %v1170_v31  ;;  %v4485_v34 = vld [vmem:[%s5753_s10 + $0x30] sm:$0xff]  }
 0x9c4   :  { %4092 = vmatpush3.bf16.msra.mxu0 %v1174_v36  ;;  %v1478_v36 = vstv %s1477_s7 }
 0x9c5   :  { %4093 = vmatprep.subr.bf16.mxu0 %v4913_v15 }
 0x9c8   :  { %4094 = vmatpush3.bf16.msra.mxu0 %v1175_v35  ;;  %v4486_v35 = vld [vmem:[%s5753_s10 + $0x38] sm:$0xff]  }
 0x9c9   :  { %4107 = vmatprep.subr.bf16.mxu0 %v4913_v15 }
 0x9cb   :  { %4096 = vmatmul.mubr.msk.bf16.vlgmr.msra.gmra.mrb[36].mxu0 %vm652_vm5, %v5266_v46 }
 0x9cc   :  { %4111 = vmatprep.mubr.msk.bf16.mxu0 %vm4914_vm4, %v4913_v15  ;;  %4108 = vmatpush3.bf16.msra.mxu0 %v4483_v56 }
 0x9cd   :  { %4109 = vmatprep.subr.bf16.mxu0 %v4913_v15 }
 0x9d0   :  { %4110 = vmatpush3.bf16.msra.mxu0 %v4484_v57 }
 0x9d1   :  { %4121 = vmatprep.subr.bf16.mxu0 %v4913_v15 }
 0xa9e   :  { %v1210_v45 = vpop.f32.mrb[36].mxu0 }
 0xa9f   :  { %v1221_v47 = vadd.f32 %v1219_v44, %v1210_v45  ;;  %v4097_v50 = vpop.f32.mrb[37].mxu0 }
 0xaa0   :  { %v1213_v52 = vpop.f32.mrb[38].mxu0 }
 0xaa1   :  { %v1222_v53 = vadd.f32 %v1220_v51, %v1213_v52  ;;  %v4098_v54 = vpop.f32.mrb[39].mxu0 }
 0xaa2   :  { %v4488_v54 = vld [vmem:[#allocation16 + $0x38] sm:$0xff]  }
 0xaa3   :  { %v1223_v55 = vpack.c.bf16 %v1222_v53, %v1221_v47  ;;  %v4487_v53 = vld [vmem:[#allocation16 + $0x30] sm:$0xff]  }
 0xaa5   :  { %4104 = vmatmul.mubr.msk.bf16.vlgmr.msra.gmra.mrb[16].mxu1 %vm652_vm5, %v1223_v55  ;;  %v3794_v55 = vld [vmem:[#allocation15 + $0x3] ss:$0 sm:$0xff] }
 0xaa6   :  { %4117 = vmatprep.mubr.msk.bf16.mxu1 %vm585_vm2, %v5232_v37 }
 0xb78   :  { %v1286_v59 = vpop.f32.mrb[16].mxu1 }
 0xb79   :  { %v1287_v60 = vadd.f32 %v3778_v58, %v1286_v59  ;;  %v4105_v61 = vpop.f32.mrb[17].mxu1 }
 0xb7a   :  { %v1289_v62 = vpop.f32.mrb[18].mxu1 }
 0xb7b   :  { %v1290_v63 = vadd.f32 %v3778_v58, %v1289_v62  ;;  %v4106_v32 = vpop.f32.mrb[19].mxu1  ;;  %v1293_v33 = vmax.f32 %v1287_v60, 0.0 }
 0xb7d   :  { %v1294_v0 = vmax.f32 %v1290_v63, 0.0 }
 0xb7f   :  { %v1295_v1 = vpack.c.bf16 %v1294_v0, %v1293_v33  ;;  %v3798_v33 = vld [vmem:[#allocation18 + $0x3] ss:$0 sm:$0xff] }
 0xb81   :  { %4112 = vmatmul.mubr.msk.bf16.vlgmr.msra.gmra.mrb[40].mxu0 %vm652_vm5, %v1295_v1 }
 0xb82   :  { %4125 = vmatprep.mubr.msk.bf16.mxu0 %vm4914_vm4, %v4913_v15 }
 0xc54   :  { %v1358_v4 = vpop.f32.mrb[40].mxu0 }
 0xc55   :  { %v1359_v5 = vadd.f32 %v3782_v2, %v1358_v4  ;;  %v4113_v6 = vpop.f32.mrb[41].mxu0 }
 0xc56   :  { %v1361_v7 = vpop.f32.mrb[42].mxu0 }
 0xc57   :  { %v1362_v8 = vadd.f32 %v3782_v2, %v1361_v7  ;;  %v4114_v9 = vpop.f32.mrb[43].mxu0  ;;  %v1365_v10 = vmax.f32 %v1359_v5, 0.0 }
 0xc59   :  { %v1366_v11 = vmax.f32 %v1362_v8, 0.0  ;;  %v1479_v39 = vmul.f32 %v1478_v36, %v1365_v10 }
 0xc5b   :  { %v1368_v12 = vpack.c.bf16 %v1366_v11, %v1365_v10  ;;  %v1480_v45 = vmul.f32 %v1478_v36, %v1366_v11  ;;  %v4492_v36 = vld [vmem:[#allocation16 + $0x48] sm:$0xff]  }
 0xc5d   :  { %4115 = vmatprep.subr.bf16.mxu1 %v1368_v12 }
 0xc5e   :  { %4116 = vmatpush3.bf16.msra.mxu1 %v1368_v12 }
 0xc5f   :  { %4129 = vmatprep.subr.bf16.mxu1 %v4913_v15 }
 0xc61   :  { %4118 = vmatmul.mubr.msk.bf16.vlgmr.msra.gmra.mrb[20].mxu1 %vm585_vm2, %v5237_v38 }
 0xc62   :  { %4133 = vmatprep.mubr.msk.bf16.mxu1 %vm4914_vm4, %v4913_v15  ;;  %4130 = vmatpush3.bf16.msra.mxu1 %v4485_v34 }
 0xc63   :  { %4131 = vmatprep.subr.bf16.mxu1 %v4913_v15 }
 0xc66   :  { %4132 = vmatpush3.bf16.msra.mxu1 %v4486_v35  ;;  %v4491_v35 = vld [vmem:[#allocation16 + $0x40] sm:$0xff]  }
 0xd34   :  { %v4119_v17 = vpop.f32.mrb[20].mxu1 }
 0xd35   :  { %v1424_v18 = vadd.f32 %v4119_v17, %v1374_v16  ;;  %v1415_v19 = vpop.f32.mrb[21].mxu1 }
 0xd36   :  { %v1416_v21 = vadd.f32 %v1415_v19, %v1370_v13  ;;  %v4120_v22 = vpop.f32.mrb[22].mxu1 }
 0xd37   :  { %v1427_v23 = vadd.f32 %v4120_v22, %v1376_v20  ;;  %v1418_v24 = vpop.f32.mrb[23].mxu1  ;;  %v1432_v26 = vmax.f32 %v1424_v18, 0.0 }
 0xd38   :  { %v1419_v25 = vadd.f32 %v1418_v24, %v1372_v14  ;;  %v1430_v28 = vmax.f32 %v1416_v21, 0.0 }
 0xd39   :  { %v1433_v27 = vmax.f32 %v1427_v23, 0.0 }
 0xd3a   :  { %v1431_v29 = vmax.f32 %v1419_v25, 0.0 }
 0xd3b   :  { %v1435_v30 = vpack.c.bf16 %v1433_v27, %v1432_v26 }
 0xd3c   :  { %v1434_v31 = vpack.c.bf16 %v1431_v29, %v1430_v28 }
 0xd3e   :  { %4122 = vmatpush3.bf16.msra.mxu0 %v1434_v31 }
 0xd3f   :  { %4123 = vmatprep.subr.bf16.mxu0 %v4913_v15 }
 0xd42   :  { %4124 = vmatpush3.bf16.msra.mxu0 %v1435_v30 }
 0xd43   :  { %4137 = vmatprep.subr.bf16.mxu0 %v4913_v15 }
 0xd45   :  { %4126 = vmatmul.mubr.msk.bf16.vlgmr.msra.gmra.mrb[44].mxu0 %vm652_vm5, %v5266_v46 }
 0xd46   :  { %4141 = vmatprep.mubr.msk.bf16.mxu0 %vm4914_vm4, %v4913_v15  ;;  %4138 = vmatpush3.bf16.msra.mxu0 %v4487_v53 }
 0xd47   :  { %4139 = vmatprep.subr.bf16.mxu0 %v4913_v15 }
 0xd4a   :  { %4140 = vmatpush3.bf16.msra.mxu0 %v4488_v54 }
 0xd4b   :  { %4151 = vmatprep.subr.bf16.mxu0 %v4913_v15 }
 0xe18   :  { %v1470_v41 = vpop.f32.mrb[44].mxu0 }
 0xe19   :  { %v1481_v42 = vadd.f32 %v1479_v39, %v1470_v41  ;;  %v4127_v44 = vpop.f32.mrb[45].mxu0  ;;  %v3810_v39 = vld [vmem:[#allocation15 + $0x4] ss:$0 sm:$0xff] }
 0xe1a   :  { %v1473_v47 = vpop.f32.mrb[46].mxu0 }
 0xe1b   :  { %v1482_v50 = vadd.f32 %v1480_v45, %v1473_v47  ;;  %v4128_v51 = vpop.f32.mrb[47].mxu0 }
 0xe1d   :  { %v1483_v52 = vpack.c.bf16 %v1482_v50, %v1481_v42 }
 0xe1f   :  { %4134 = vmatmul.mubr.msk.bf16.vlgmr.msra.gmra.mrb[24].mxu1 %vm652_vm5, %v1483_v52 }
 0xe20   :  { %4147 = vmatprep.mubr.msk.bf16.mxu1 %vm585_vm2, %v5232_v37 }
 0xef2   :  { %v1546_v56 = vpop.f32.mrb[24].mxu1 }
 0xef3   :  { %v1547_v57 = vadd.f32 %v3794_v55, %v1546_v56  ;;  %v4135_v58 = vpop.f32.mrb[25].mxu1 }
 0xef4   :  { %v1549_v59 = vpop.f32.mrb[26].mxu1 }
 0xef5   :  { %v1550_v60 = vadd.f32 %v3794_v55, %v1549_v59  ;;  %v4136_v61 = vpop.f32.mrb[27].mxu1  ;;  %v1553_v62 = vmax.f32 %v1547_v57, 0.0 }
 0xef7   :  { %v1554_v63 = vmax.f32 %v1550_v60, 0.0 }
 0xef9   :  { %v1555_v32 = vpack.c.bf16 %v1554_v63, %v1553_v62  ;;  %v1882_v63 = vpop.permute.xlu0 %1881 }
 0xefb   :  { %4142 = vmatmul.mubr.msk.bf16.vlgmr.msra.gmra.mrb[48].mxu0 %vm652_vm5, %v1555_v32  ;;  %v1884_v32 = vpop.permute.xlu1 %1883 }
 0xefc   :  { %4155 = vmatprep.mubr.msk.bf16.mxu0 %vm4914_vm4, %v4913_v15 }
 0xfce   :  { %v1618_v0 = vpop.f32.mrb[48].mxu0 }
 0xfcf   :  { %v1619_v1 = vadd.f32 %v3798_v33, %v1618_v0  ;;  %v4143_v2 = vpop.f32.mrb[49].mxu0 }
 0xfd0   :  { %v1621_v4 = vpop.f32.mrb[50].mxu0 }
 0xfd1   :  { %v1622_v5 = vadd.f32 %v3798_v33, %v1621_v4  ;;  %v4144_v6 = vpop.f32.mrb[51].mxu0  ;;  %v1625_v7 = vmax.f32 %v1619_v1, 0.0  ;;  %v1886_v33 = vpop.permute.xlu0 %1885 }
 0xfd2   :  { %v1888_v4 = vpop.permute.xlu1 %1887 }
 0xfd3   :  { %v1626_v8 = vmax.f32 %v1622_v5, 0.0 }
 0xfd5   :  { %v1628_v9 = vpack.c.bf16 %v1626_v8, %v1625_v7 }
 0xfd7   :  { %4145 = vmatprep.subr.bf16.mxu1 %v1628_v9 }
 0xfd8   :  { %4146 = vmatpush3.bf16.msra.mxu1 %v1628_v9 }
 0xfd9   :  { %4159 = vmatprep.subr.bf16.mxu1 %v4913_v15 }
 0xfdb   :  { %4148 = vmatmul.mubr.msk.bf16.vlgmr.msra.gmra.mrb[28].mxu1 %vm585_vm2, %v5237_v38 }
 0xfdc   :  { %4163 = vmatprep.mubr.msk.bf16.mxu1 %vm4914_vm4, %v4913_v15 }
0x10ae   :  { %v4149_v10 = vpop.f32.mrb[28].mxu1 }
0x10af   :  { %v1672_v11 = vadd.f32 %v4149_v10, %v5282_v49  ;;  %v1663_v12 = vpop.f32.mrb[29].mxu1  ;;  %v4490_v49 = vld [vmem:[%s5753_s10 + $0x48] sm:$0xff]  }
0x10b0   :  { %v1664_v13 = vadd.f32 %v1663_v12, %v5277_v48  ;;  %v4150_v14 = vpop.f32.mrb[30].mxu1  ;;  %v4489_v48 = vld [vmem:[%s5753_s10 + $0x40] sm:$0xff]  }
0x10b1   :  { %v1675_v16 = vadd.f32 %v4150_v14, %v5291_v43  ;;  %v1666_v17 = vpop.f32.mrb[31].mxu1  ;;  %v1680_v19 = vmax.f32 %v1672_v11, 0.0  ;;  %4160 = vmatpush3.bf16.msra.mxu1 %v4489_v48 }
0x10b2   :  { %v1667_v18 = vadd.f32 %v1666_v17, %v5287_v40  ;;  %v1678_v21 = vmax.f32 %v1664_v13, 0.0  ;;  %4161 = vmatprep.subr.bf16.mxu1 %v4913_v15  ;;  %v1726_v40 = vstv %s1725_s30  ;;  %v4494_v17 = vld [vmem:[%s5753_s10 + $0x58] sm:$0xff]  }
0x10b3   :  { %v1681_v20 = vmax.f32 %v1675_v16, 0.0  ;;  %v1727_v43 = vmul.f32 %v1726_v40, %v1625_v7  ;;  %v1728_v28 = vmul.f32 %v1726_v40, %v1626_v8  ;;  %v4493_v16 = vld [vmem:[%s5753_s10 + $0x50] sm:$0xff]   ;;  %v4495_v40 = vld [vmem:[#allocation16 + $0x50] sm:$0xff]  }
0x10b4   :  { %v1679_v22 = vmax.f32 %v1667_v18, 0.0 }
0x10b5   :  { %v1683_v23 = vpack.c.bf16 %v1681_v20, %v1680_v19  ;;  %4162 = vmatpush3.bf16.msra.mxu1 %v4490_v49 }
0x10b6   :  { %v1682_v24 = vpack.c.bf16 %v1679_v22, %v1678_v21 }
0x10b8   :  { %4152 = vmatpush3.bf16.msra.mxu0 %v1682_v24 }
0x10b9   :  { %4153 = vmatprep.subr.bf16.mxu0 %v4913_v15 }
0x10bc   :  { %4154 = vmatpush3.bf16.msra.mxu0 %v1683_v23 }
0x10bd   :  { %4167 = vmatprep.subr.bf16.mxu0 %v4913_v15 }
0x10bf   :  { %4156 = vmatmul.mubr.msk.bf16.vlgmr.msra.gmra.mrb[52].mxu0 %vm652_vm5, %v5266_v46 }
0x10c0   :  { %4171 = vmatprep.mubr.msk.bf16.mxu0 %vm4914_vm4, %v4913_v15  ;;  %4168 = vmatpush3.bf16.msra.mxu0 %v4491_v35 }
0x10c1   :  { %4169 = vmatprep.subr.bf16.mxu0 %v4913_v15 }
0x10c4   :  { %4170 = vmatpush3.bf16.msra.mxu0 %v4492_v36 }
0x10c5   :  { %4181 = vmatprep.subr.bf16.mxu0 %v4913_v15 }
0x1192   :  { %v1718_v25 = vpop.f32.mrb[52].mxu0 }
0x1193   :  { %v1729_v26 = vadd.f32 %v1727_v43, %v1718_v25  ;;  %v4157_v27 = vpop.f32.mrb[53].mxu0  ;;  %v4496_v43 = vld [vmem:[#allocation16 + $0x58] sm:$0xff]   ;;  %v5443_v25 = vld [vmem:[#allocation19] sm:$0xff]  }
0x1194   :  { %v1721_v29 = vpop.f32.mrb[54].mxu0  ;;  %v3826_v27 = vld [vmem:[#allocation15 + $0x5] ss:$0 sm:$0xff] }
0x1195   :  { %v1730_v30 = vadd.f32 %v1728_v28, %v1721_v29  ;;  %v4158_v31 = vpop.f32.mrb[55].mxu0 }
0x1197   :  { %v1731_v34 = vpack.c.bf16 %v1730_v30, %v1729_v26  ;;  %v5448_v26 = vld [vmem:[#allocation19 + $0x8] sm:$0xff]  }
0x1199   :  { %4164 = vmatmul.mubr.msk.bf16.vlgmr.msra.gmra.mrb[32].mxu1 %vm652_vm5, %v1731_v34 }
0x119a   :  { %4177 = vmatprep.mubr.msk.bf16.mxu1 %vm585_vm2, %v5232_v37  ;;  %v3814_v37 = vld [vmem:[#allocation18 + $0x4] ss:$0 sm:$0xff] }
0x126c   :  { %v1794_v41 = vpop.f32.mrb[32].mxu1 }
0x126d   :  { %v1795_v42 = vadd.f32 %v3810_v39, %v1794_v41  ;;  %v4165_v44 = vpop.f32.mrb[33].mxu1  ;;  %v5458_v41 = vld [vmem:[%s5757_s14] sm:$0xff]  }
0x126e   :  { %v1797_v45 = vpop.f32.mrb[34].mxu1  ;;  %v5465_v44 = vld [vmem:[%s5757_s14 + $0x8] sm:$0xff]  }
0x126f   :  { %v1798_v47 = vadd.f32 %v3810_v39, %v1797_v45  ;;  %v4166_v50 = vpop.f32.mrb[35].mxu1  ;;  %v1801_v51 = vmax.f32 %v1795_v42, 0.0 }
0x1271   :  { %v1802_v52 = vmax.f32 %v1798_v47, 0.0 }
0x1273   :  { %v1803_v53 = vpack.c.bf16 %v1802_v52, %v1801_v51  ;;  %v3830_v52 = vld [vmem:[#allocation18 + $0x5] ss:$0 sm:$0xff] }
0x1275   :  { %4172 = vmatmul.mubr.msk.bf16.vlgmr.msra.gmra.mrb[56].mxu0 %vm652_vm5, %v1803_v53 }
0x1276   :  { %4185 = vmatprep.mubr.msk.bf16.mxu0 %vm4914_vm4, %v4913_v15 }
0x1348   :  { %v1866_v54 = vpop.f32.mrb[56].mxu0 }
0x1349   :  { %v1867_v55 = vadd.f32 %v3814_v37, %v1866_v54  ;;  %v4173_v56 = vpop.f32.mrb[57].mxu0 }
0x134a   :  { %v1869_v57 = vpop.f32.mrb[58].mxu0 }
0x134b   :  { %v1870_v58 = vadd.f32 %v3814_v37, %v1869_v57  ;;  %v4174_v59 = vpop.f32.mrb[59].mxu0  ;;  %v1873_v60 = vmax.f32 %v1867_v55, 0.0 }
0x134d   :  { %v1874_v61 = vmax.f32 %v1870_v58, 0.0 }
0x134f   :  { %v1876_v62 = vpack.c.bf16 %v1874_v61, %v1873_v60 }
0x1351   :  { %4175 = vmatprep.subr.bf16.mxu1 %v1876_v62 }
0x1352   :  { %4176 = vmatpush3.bf16.msra.mxu1 %v1876_v62 }
0x1353   :  { %4189 = vmatprep.subr.bf16.mxu1 %v4913_v15 }
0x1355   :  { %4178 = vmatmul.mubr.msk.bf16.vlgmr.msra.gmra.mrb[36].mxu1 %vm585_vm2, %v5237_v38 }
0x1356   :  { %4193 = vmatprep.mubr.msk.bf16.mxu1 %vm4914_vm4, %v4913_v15  ;;  %4190 = vmatpush3.bf16.msra.mxu1 %v4493_v16 }
0x1357   :  { %4191 = vmatprep.subr.bf16.mxu1 %v4913_v15 }
0x135a   :  { %4192 = vmatpush3.bf16.msra.mxu1 %v4494_v17 }
0x135b   :  { %4205 = vmatprep.subr.bf16.mxu1 %v4913_v15 }
0x1428   :  { %v4179_v0 = vpop.f32.mrb[36].mxu1 }
0x1429   :  { %v1936_v1 = vadd.f32 %v4179_v0, %v1886_v33  ;;  %v1927_v2 = vpop.f32.mrb[37].mxu1 }
0x142a   :  { %v1928_v5 = vadd.f32 %v1927_v2, %v1882_v63  ;;  %v4180_v6 = vpop.f32.mrb[38].mxu1 }
0x142b   :  { %v1939_v7 = vadd.f32 %v4180_v6, %v1888_v4  ;;  %v1930_v8 = vpop.f32.mrb[39].mxu1  ;;  %v1944_v10 = vmax.f32 %v1936_v1, 0.0 }
0x142c   :  { %v1931_v9 = vadd.f32 %v1930_v8, %v1884_v32  ;;  %v1942_v12 = vmax.f32 %v1928_v5, 0.0 }
0x142d   :  { %v1945_v11 = vmax.f32 %v1939_v7, 0.0 }
0x142e   :  { %v1943_v13 = vmax.f32 %v1931_v9, 0.0 }
0x142f   :  { %v1947_v38 = vpack.c.bf16 %v1945_v11, %v1944_v10 }
0x1430   :  { %v1946_v14 = vpack.c.bf16 %v1943_v13, %v1942_v12 }
0x1432   :  { %4182 = vmatpush3.bf16.msra.mxu0 %v1946_v14 }
0x1433   :  { %4183 = vmatprep.subr.bf16.mxu0 %v4913_v15 }
0x1436   :  { %4184 = vmatpush3.bf16.msra.mxu0 %v1947_v38 }
0x1437   :  { %4197 = vmatprep.subr.bf16.mxu0 %v4913_v15 }
0x1439   :  { %4186 = vmatmul.mubr.msk.bf16.vlgmr.msra.gmra.mrb[60].mxu0 %vm652_vm5, %v5266_v46  ;;  %v1990_v46 = vstv %s1989_s6 }
0x143a   :  { %4201 = vmatprep.mubr.msk.bf16.mxu0 %vm4914_vm4, %v4913_v15  ;;  %v1991_v18 = vmul.f32 %v1990_v46, %v1873_v60  ;;  %v1992_v22 = vmul.f32 %v1990_v46, %v1874_v61  ;;  %4198 = vmatpush3.bf16.msra.mxu0 %v4495_v40  ;;  %v5477_v61 = vld [vmem:[#allocation21] ss:$0 sm:$0xff] }
0x143b   :  { %4199 = vmatprep.subr.bf16.mxu0 %v4913_v15 }
0x143e   :  { %4200 = vmatpush3.bf16.msra.mxu0 %v4496_v43 }
0x143f   :  { %4213 = vmatprep.subr.bf16.mxu0 %v4913_v15 }
0x150c   :  { %v1982_v19 = vpop.f32.mrb[60].mxu0 }
0x150d   :  { %v1993_v20 = vadd.f32 %v1991_v18, %v1982_v19  ;;  %v4187_v21 = vpop.f32.mrb[61].mxu0 }
0x150e   :  { %v1985_v23 = vpop.f32.mrb[62].mxu0 }
0x150f   :  { %v1994_v24 = vadd.f32 %v1992_v22, %v1985_v23  ;;  %v4188_v48 = vpop.f32.mrb[63].mxu0  ;;  %v248_v23 = vld [vmem:[#allocation7] sm:$0x1] }
0x1510   :  { %vm249_vm6 = vcmp.gt.bf16.partialorder %v248_v23, 1056980736 }
0x1511   :  { %v1995_v49 = vpack.c.bf16 %v1994_v24, %v1993_v20  ;;  %v2368_v24 = vsel %vm249_vm6, 65537, %v4912_v3 }
0x1512   :  { %v2369_v48 = vunpack.c.l.b16 %v2368_v24 }
0x1513   :  { %4194 = vmatmul.mubr.msk.bf16.vlgmr.msra.gmra.mrb[40].mxu1 %vm652_vm5, %v1995_v49 }
0x1514   :  { %4209 = vmatprep.mubr.msk.bf16.mxu1 %vm4914_vm4, %v4913_v15  ;;  %4206 = vmatpush3.bf16.msra.mxu1 %v5443_v25  ;;  %vm5505_vm7 = vcmp.ne.s32.totalorder %v2369_v48, 0 }
0x1515   :  { %4207 = vmatprep.subr.bf16.mxu1 %v4913_v15 }
0x1518   :  { %4208 = vmatpush3.bf16.msra.mxu1 %v5448_v26 }
0x1519   :  { %4221 = vmatprep.subr.bf16.mxu1 %v4913_v15 }
0x151b   :  { %4210 = vmatmul.mubr.bf16.vlgmr.msra.gmra.mrb[44].mxu1 %v4912_v3 }
0x151c   :  { %4225 = vmatprep.mubr.msk.bf16.mxu1 %vm4914_vm4, %v4913_v15 }
0x15e6   :  { %v2058_v28 = vpop.f32.mrb[40].mxu1 }
0x15e7   :  { %v2059_v29 = vadd.f32 %v3826_v27, %v2058_v28  ;;  %v4195_v30 = vpop.f32.mrb[41].mxu1 }
0x15e8   :  { %v2061_v31 = vpop.f32.mrb[42].mxu1 }
0x15e9   :  { %v2062_v34 = vadd.f32 %v3826_v27, %v2061_v31  ;;  %v4196_v35 = vpop.f32.mrb[43].mxu1  ;;  %v2065_v36 = vmax.f32 %v2059_v29, 0.0 }
0x15eb   :  { %v2066_v39 = vmax.f32 %v2062_v34, 0.0 }
0x15ed   :  { %v2067_v42 = vpack.c.bf16 %v2066_v39, %v2065_v36 }
0x15ee   :  { %v2232_v45 = vpop.f32.mrb[44].mxu1 }
0x15ef   :  { %4202 = vmatmul.mubr.msk.bf16.vlgmr.msra.gmra.mrb[64].mxu0 %vm652_vm5, %v2067_v42  ;;  %v4211_v47 = vpop.f32.mrb[45].mxu1 }
0x15f0   :  { %4214 = vmatpush3.bf16.msra.mxu0 %v5458_v41  ;;  %4217 = vmatprep.mubr.msk.bf16.mxu0 %vm4914_vm4, %v4913_v15  ;;  %v2235_v50 = vpop.f32.mrb[46].mxu1 }
0x15f1   :  { %4215 = vmatprep.subr.bf16.mxu0 %v4913_v15  ;;  %v4212_v51 = vpop.f32.mrb[47].mxu1 }
0x15f4   :  { %4216 = vmatpush3.bf16.msra.mxu0 %v5465_v44 }
0x15f5   :  { %4229 = vmatprep.subr.bf16.mxu0 %v4913_v15 }
0x15f7   :  { %4218 = vmatmul.mubr.bf16.vlgmr.msra.gmra.mrb[68].mxu0 %v4912_v3 }
0x15f8   :  { %4231 = vmatprep.mubr.msk.bf16.mxu0 %vm4914_vm4, %v4913_v15 }
0x16c2   :  { %v2130_v53 = vpop.f32.mrb[64].mxu0 }
0x16c3   :  { %v2131_v37 = vadd.f32 %v3830_v52, %v2130_v53  ;;  %v4203_v54 = vpop.f32.mrb[65].mxu0 }
0x16c4   :  { %v2133_v55 = vpop.f32.mrb[66].mxu0 }
0x16c5   :  { %v2134_v56 = vadd.f32 %v3830_v52, %v2133_v55  ;;  %v4204_v57 = vpop.f32.mrb[67].mxu0  ;;  %v2137_v58 = vmax.f32 %v2131_v37, 0.0 }
0x16c7   :  { %v2138_v59 = vmax.f32 %v2134_v56, 0.0 }
0x16c9   :  { %v5475_v60 = vpack.c.bf16 %v2138_v59, %v2137_v58 }
0x16ca   :  { %v2284_v62 = vpop.f32.mrb[68].mxu0 }
0x16cb   :  { %v2285_v63 = vadd.f32 %v2284_v62, %v2232_v45  ;;  %4230 = vmatpush3.bf16.msra.mxu0 %v5475_v60  ;;  %v4219_v32 = vpop.f32.mrb[69].mxu0 }
0x16cc   :  { %v2287_v33 = vpop.f32.mrb[70].mxu0  ;;  %4243 = vmatprep.subr.bf16.mxu0 %v4913_v15 }
0x16cd   :  { %v2296_v0 = vadd.f32 %v5477_v61, %v2285_v63  ;;  %v4220_v1 = vpop.f32.mrb[71].mxu0 }
0x16cf   :  { %4507 = vtanh.f32 %v2296_v0  ;;  %v3839_v4 = vmul.f32 -1.442695, %v2296_v0 }
0x16d1   :  { %4509 = vpow2.f32 %v3839_v4 }
0x16d9   :  { %v4508_v2 = vpop.eup %4507 }
0x16da   :  { %2306 = vrot.lane.b32.xlu0 %v4508_v2, %s4898_s2 }
0x16db   :  { %v4510_v5 = vpop.eup %4509 }
0x16dc   :  { %v2300_v6 = vadd.f32 1.0, %v4510_v5 }
0x16de   :  { %4511 = vrcp.f32 %v2300_v6 }
0x16e8   :  { %v4512_v7 = vpop.eup %4511 }
0x16e9   :  { %v2304_v10 = vmul.f32 0.0, %v4512_v7 }
0x174c   :  { %v2307_v8 = vpop.permute.xlu0 %2306 }
0x174d   :  { %v2309_v9 = vmul.f32 %v4512_v7, %v2307_v8 }
0x174f   :  { %2311 = vrot.lane.b32.xlu1 %v2309_v9, %s4916_s12 }
0x17c1   :  { %v2312_v11 = vpop.permute.xlu1 %2311 }
0x17c2   :  { %v5484_v12 = vadd.f32 %v2312_v11, %v2304_v10 }
0x17c4   :  { %4513 = vtanh.f32 %v5484_v12 }
0x17ce   :  { %v4514_v13 = vpop.eup %4513 }
0x17cf   :  { %2317 = vrot.lane.b32.xlu0 %v4514_v13, %s4898_s2 }
0x17ed   :  { %2140 = vxpose.xlu0.b32.start [1/2] (short) (narrow) %v2137_v58, 32 }
0x17f1   :  { %2141 = vxpose.xlu0.b32.end [2/2] (short) (narrow) %v2138_v59, 32 }
0x1841   :  { %v2318_v38 = vpop.permute.xlu0 %2317 }
0x1842   :  { %v2320_v14 = vmul.f32 %v4512_v7, %v2318_v38 }
0x1844   :  { %v2321_v16 = vpack.c.bf16 %v2320_v14, %v2320_v14 }
0x1846   :  { %2323 = vrot.lane.b32.xlu1 %v2321_v16, %s4916_s12 }
0x186d   :  { %v2156_v17 = vpop.trf.xlu0 }
0x1871   :  { %v2157_v46 = vpop.trf.xlu0 }
0x1872   :  { %v5489_v18 = vpack.c.bf16 %v2157_v46, %v2156_v17 }
0x1874   :  { %4222 = vmatpush3.bf16.msra.mxu1 %v5489_v18 }
0x1875   :  { %v2158_v19 = vpop.trf.xlu0  ;;  %4223 = vmatprep.subr.bf16.mxu1 %v4913_v15 }
0x1879   :  { %v2159_v20 = vpop.trf.xlu0 }
0x187a   :  { %v5493_v21 = vpack.c.bf16 %v2159_v20, %v2158_v19 }
0x187c   :  { %4224 = vmatpush3.bf16.msra.mxu1 %v5493_v21 }
0x187d   :  { %4235 = vmatprep.subr.bf16.mxu1 %v4913_v15 }
0x18b8   :  { %v2324_v22 = vpop.permute.xlu1 %2323 }
0x18b9   :  { %4226 = vmatmul.mubr.msk.bf16.vlgmr.msra.gmra.mrb[48].mxu1 %vm652_vm5, %v2324_v22 }
0x18ba   :  { %4236 = vmatpush3.bf16.msra.mxu1 %v5443_v25  ;;  %4239 = vmatprep.mubr.msk.bf16.mxu1 %vm4914_vm4, %v4913_v15 }
0x18bb   :  { %4237 = vmatprep.subr.bf16.mxu1 %v4913_v15 }
0x18be   :  { %4238 = vmatpush3.bf16.msra.mxu1 %v5448_v26 }
0x18bf   :  { %4251 = vmatprep.subr.bf16.mxu1 %v4913_v15 }
0x198c   :  { %v2362_v40 = vpop.f32.mrb[48].mxu1 }
0x198d   :  { %v2371_v43 = vsel %vm5505_vm7, %v2362_v40, -1e+30  ;;  %v4227_v27 = vpop.f32.mrb[49].mxu1 }
0x198e   :  { %v2365_v28 = vpop.f32.mrb[50].mxu1  ;;  %v2373_v29 = vsel %vm2372_vm8, %v2371_v43, -inf }
0x198f   :  { %2374 = vmax.xlane.f32.xlu1 %v2373_v29  ;;  %v4228_v30 = vpop.f32.mrb[51].mxu1 }
0x1a1c   :  { %v2375_v31 = vpop.xlane.xlu1 %2374 }
0x1a1d   :  { %v2376_v34 = vsub.f32 %v2371_v43, %v2375_v31 }
0x1a1f   :  { %v2377_v35 = vmul.f32 1.442695, %v2376_v34 }
0x1a21   :  { %4515 = vpow2.f32 %v2377_v35 }
0x1a2b   :  { %v4516_v3 = vpop.eup %4515 }
0x1a2c   :  { %v2379_v36 = vsel %vm2372_vm8, %v4516_v3, 0.0 }
0x1a2d   :  { %2380 = vadd.xlane.f32.xlu0 %v2379_v36 }
0x1aba   :  { %v2381_v39 = vpop.xlane.xlu0 %2380 }
0x1abb   :  { %v2382_v42 = vadd.f32 1e-16, %v2381_v39 }
0x1abd   :  { %4517 = vrcp.f32 %v2382_v42 }
0x1ac7   :  { %v4518_v45 = vpop.eup %4517 }
0x1ac8   :  { %v2384_v47 = vmul.f32 %v4518_v45, %v4516_v3 }
0x1aca   :  { %v2385_v50 = vpack.c.bf16 %v2384_v47, %v2384_v47 }
0x1acc   :  { %4232 = vmatmul.mubr.msk.bf16.vlgmr.msra.gmra.mrb[72].mxu0 %vm585_vm2, %v2385_v50 }
0x1acd   :  { %4244 = vmatpush3.bf16.msra.mxu0 %v5458_v41  ;;  %4247 = vmatprep.mubr.msk.bf16.mxu0 %vm4914_vm4, %v4913_v15 }
0x1ace   :  { %4245 = vmatprep.subr.bf16.mxu0 %v4913_v15 }
0x1ad1   :  { %4246 = vmatpush3.bf16.msra.mxu0 %v5465_v44 }
0x1ad2   :  { %4259 = vmatprep.subr.bf16.mxu0 %v4913_v15 }
0x1ad4   :  { %4248 = vmatmul.mubr.msk.bf16.vlgmr.msra.gmra.mrb[76].mxu0 %vm652_vm5, %v2324_v22 }
0x1ad5   :  { %4260 = vmatpush3.bf16.msra.mxu0 %v5475_v60  ;;  %4261 = vmatprep.mubr.msk.bf16.mxu0 %vm4914_vm4, %v4913_v15 }
0x1ad6   :  { %4273 = vmatprep.subr.bf16.mxu0 %v4913_v15 }
0x1b9f   :  { %v2423_v51 = vpop.f32.mrb[72].mxu0 }
0x1ba0   :  { %v2429_v52 = vpack.c.bf16 %v2423_v51, %v2423_v51  ;;  %v4233_v53 = vpop.f32.mrb[73].mxu0 }
0x1ba1   :  { %v2426_v37 = vpop.f32.mrb[74].mxu0 }
0x1ba2   :  { %v4234_v54 = vpop.f32.mrb[75].mxu0  ;;  %4240 = vmatmul.mubr.msk.bf16.vlgmr.msra.gmra.mrb[52].mxu1 %vm652_vm5, %v2429_v52 }
0x1ba3   :  { %4252 = vmatpush3.bf16.msra.mxu1 %v5489_v18  ;;  %4255 = vmatprep.mubr.msk.bf16.mxu1 %vm4914_vm4, %v4913_v15 }
0x1ba4   :  { %4253 = vmatprep.subr.bf16.mxu1 %v4913_v15 }
0x1ba7   :  { %4254 = vmatpush3.bf16.msra.mxu1 %v5493_v21  ;;  %v2507_v55 = vpop.f32.mrb[76].mxu0 }
0x1ba8   :  { %v4249_v56 = vpop.f32.mrb[77].mxu0  ;;  %4265 = vmatprep.subr.bf16.mxu1 %v4913_v15 }
0x1ba9   :  { %v2510_v57 = vpop.f32.mrb[78].mxu0 }
0x1baa   :  { %v4250_v58 = vpop.f32.mrb[79].mxu0 }
0x1c75   :  { %v2467_v59 = vpop.f32.mrb[52].mxu1 }
0x1c76   :  { %v2508_v62 = vadd.f32 %v2507_v55, %v2467_v59  ;;  %v4241_v63 = vpop.f32.mrb[53].mxu1 }
0x1c77   :  { %v2470_v32 = vpop.f32.mrb[54].mxu1 }
0x1c78   :  { %v2513_v33 = vadd.f32 %v5477_v61, %v2508_v62  ;;  %v4242_v0 = vpop.f32.mrb[55].mxu1 }
0x1c7a   :  { %4519 = vtanh.f32 %v2513_v33  ;;  %v3844_v2 = vmul.f32 -1.442695, %v2513_v33 }
0x1c7c   :  { %4521 = vpow2.f32 %v3844_v2 }
0x1c84   :  { %v4520_v1 = vpop.eup %4519 }
0x1c85   :  { %2523 = vrot.lane.b32.xlu1 %v4520_v1, %s4898_s2 }
0x1c86   :  { %v4522_v4 = vpop.eup %4521 }
0x1c87   :  { %v2517_v5 = vadd.f32 1.0, %v4522_v4 }
0x1c89   :  { %4523 = vrcp.f32 %v2517_v5 }
0x1c93   :  { %v4524_v6 = vpop.eup %4523 }
0x1c94   :  { %v2521_v9 = vmul.f32 %v4524_v6, %v5484_v12 }
0x1cf7   :  { %v2524_v7 = vpop.permute.xlu1 %2523 }
0x1cf8   :  { %v2526_v8 = vmul.f32 %v4524_v6, %v2524_v7 }
0x1cfa   :  { %2528 = vrot.lane.b32.xlu1 %v2526_v8, %s4916_s12 }
0x1d6c   :  { %v2529_v10 = vpop.permute.xlu1 %2528 }
0x1d6d   :  { %v5536_v11 = vadd.f32 %v2529_v10, %v2521_v9 }
0x1d6f   :  { %4525 = vtanh.f32 %v5536_v11 }
0x1d79   :  { %v4526_v13 = vpop.eup %4525 }
0x1d7a   :  { %2534 = vrot.lane.b32.xlu1 %v4526_v13, %s4898_s2 }
0x1dec   :  { %v2535_v38 = vpop.permute.xlu1 %2534 }
0x1ded   :  { %v2537_v14 = vmul.f32 %v4524_v6, %v2535_v38 }
0x1def   :  { %v2538_v16 = vpack.c.bf16 %v2537_v14, %v2537_v14 }
0x1df1   :  { %2540 = vrot.lane.b32.xlu1 %v2538_v16, %s4916_s12 }
0x1e63   :  { %v2541_v17 = vpop.permute.xlu1 %2540 }
0x1e64   :  { %4256 = vmatmul.mubr.msk.bf16.vlgmr.msra.gmra.mrb[56].mxu1 %vm652_vm5, %v2541_v17 }
0x1e65   :  { %4266 = vmatpush3.bf16.msra.mxu1 %v5443_v25  ;;  %4269 = vmatprep.mubr.msk.bf16.mxu1 %vm4914_vm4, %v4913_v15 }
0x1e66   :  { %4267 = vmatprep.subr.bf16.mxu1 %v4913_v15 }
0x1e69   :  { %4268 = vmatpush3.bf16.msra.mxu1 %v5448_v26 }
0x1e6a   :  { %4281 = vmatprep.subr.bf16.mxu1 %v4913_v15 }
0x1f37   :  { %v2579_v12 = vpop.f32.mrb[56].mxu1 }
0x1f38   :  { %v2585_v46 = vsel %vm5505_vm7, %v2579_v12, -1e+30  ;;  %v4257_v19 = vpop.f32.mrb[57].mxu1 }
0x1f39   :  { %v2582_v20 = vpop.f32.mrb[58].mxu1  ;;  %v2586_v22 = vsel %vm2372_vm8, %v2585_v46, -inf }
0x1f3a   :  { %2587 = vmax.xlane.f32.xlu1 %v2586_v22  ;;  %v4258_v23 = vpop.f32.mrb[59].mxu1 }
0x1fc7   :  { %v2588_v24 = vpop.xlane.xlu1 %2587 }
0x1fc8   :  { %v2589_v48 = vsub.f32 %v2585_v46, %v2588_v24 }
0x1fca   :  { %v2590_v40 = vmul.f32 1.442695, %v2589_v48 }
0x1fcc   :  { %4527 = vpow2.f32 %v2590_v40 }
0x1fd6   :  { %v4528_v43 = vpop.eup %4527 }
0x1fd7   :  { %v2592_v27 = vsel %vm2372_vm8, %v4528_v43, 0.0 }
0x1fd8   :  { %2593 = vadd.xlane.f32.xlu0 %v2592_v27 }
0x2065   :  { %v2594_v28 = vpop.xlane.xlu0 %2593 }
0x2066   :  { %v2595_v29 = vadd.f32 1e-16, %v2594_v28 }
0x2068   :  { %4529 = vrcp.f32 %v2595_v29 }
0x2072   :  { %v4530_v30 = vpop.eup %4529 }
0x2073   :  { %v2597_v31 = vmul.f32 %v4530_v30, %v4528_v43 }
0x2075   :  { %v2598_v34 = vpack.c.bf16 %v2597_v31, %v2597_v31 }
0x2077   :  { %4262 = vmatmul.mubr.msk.bf16.vlgmr.msra.gmra.mrb[80].mxu0 %vm585_vm2, %v2598_v34 }
0x2078   :  { %4274 = vmatpush3.bf16.msra.mxu0 %v5458_v41  ;;  %4277 = vmatprep.mubr.msk.bf16.mxu0 %vm4914_vm4, %v4913_v15 }
0x2079   :  { %4275 = vmatprep.subr.bf16.mxu0 %v4913_v15 }
0x207c   :  { %4276 = vmatpush3.bf16.msra.mxu0 %v5465_v44 }
0x207d   :  { %4289 = vmatprep.subr.bf16.mxu0 %v4913_v15 }
0x207f   :  { %4278 = vmatmul.mubr.msk.bf16.vlgmr.msra.gmra.mrb[84].mxu0 %vm652_vm5, %v2541_v17 }
0x2080   :  { %4290 = vmatpush3.bf16.msra.mxu0 %v5475_v60  ;;  %4291 = vmatprep.mubr.msk.bf16.mxu0 %vm4914_vm4, %v4913_v15 }
0x2081   :  { %4303 = vmatprep.subr.bf16.mxu0 %v4913_v15 }
0x214a   :  { %v2636_v35 = vpop.f32.mrb[80].mxu0 }
0x214b   :  { %v2642_v3 = vpack.c.bf16 %v2636_v35, %v2636_v35  ;;  %v4263_v36 = vpop.f32.mrb[81].mxu0 }
0x214c   :  { %v2639_v39 = vpop.f32.mrb[82].mxu0 }
0x214d   :  { %v4264_v42 = vpop.f32.mrb[83].mxu0  ;;  %4270 = vmatmul.mubr.msk.bf16.vlgmr.msra.gmra.mrb[60].mxu1 %vm652_vm5, %v2642_v3 }
0x214e   :  { %4282 = vmatpush3.bf16.msra.mxu1 %v5489_v18  ;;  %4285 = vmatprep.mubr.msk.bf16.mxu1 %vm4914_vm4, %v4913_v15 }
0x214f   :  { %4283 = vmatprep.subr.bf16.mxu1 %v4913_v15 }
0x2152   :  { %4284 = vmatpush3.bf16.msra.mxu1 %v5493_v21  ;;  %v2720_v45 = vpop.f32.mrb[84].mxu0 }
0x2153   :  { %v4279_v47 = vpop.f32.mrb[85].mxu0  ;;  %4295 = vmatprep.subr.bf16.mxu1 %v4913_v15 }
0x2154   :  { %v2723_v50 = vpop.f32.mrb[86].mxu0 }
0x2155   :  { %v4280_v51 = vpop.f32.mrb[87].mxu0 }
0x2220   :  { %v2680_v52 = vpop.f32.mrb[60].mxu1 }
0x2221   :  { %v2721_v53 = vadd.f32 %v2720_v45, %v2680_v52  ;;  %v4271_v37 = vpop.f32.mrb[61].mxu1 }
0x2222   :  { %v2683_v54 = vpop.f32.mrb[62].mxu1 }
0x2223   :  { %v2726_v55 = vadd.f32 %v5477_v61, %v2721_v53  ;;  %v4272_v56 = vpop.f32.mrb[63].mxu1 }
0x2225   :  { %4531 = vtanh.f32 %v2726_v55  ;;  %v3849_v58 = vmul.f32 -1.442695, %v2726_v55 }
0x2227   :  { %4533 = vpow2.f32 %v3849_v58 }
0x222f   :  { %v4532_v57 = vpop.eup %4531 }
0x2230   :  { %2736 = vrot.lane.b32.xlu0 %v4532_v57, %s4898_s2 }
0x2231   :  { %v4534_v59 = vpop.eup %4533 }
0x2232   :  { %v2730_v62 = vadd.f32 1.0, %v4534_v59 }
0x2234   :  { %4535 = vrcp.f32 %v2730_v62 }
0x223e   :  { %v4536_v63 = vpop.eup %4535 }
0x223f   :  { %v2734_v0 = vmul.f32 %v4536_v63, %v5536_v11 }
0x22a2   :  { %v2737_v32 = vpop.permute.xlu0 %2736 }
0x22a3   :  { %v2739_v33 = vmul.f32 %v4536_v63, %v2737_v32 }
0x22a5   :  { %2741 = vrot.lane.b32.xlu1 %v2739_v33, %s4916_s12 }
0x2317   :  { %v2742_v1 = vpop.permute.xlu1 %2741 }
0x2318   :  { %v5575_v2 = vadd.f32 %v2742_v1, %v2734_v0 }
0x231a   :  { %4537 = vtanh.f32 %v5575_v2 }
0x2324   :  { %v4538_v4 = vpop.eup %4537 }
0x2325   :  { %2747 = vrot.lane.b32.xlu0 %v4538_v4, %s4898_s2 }
0x2397   :  { %v2748_v5 = vpop.permute.xlu0 %2747 }
0x2398   :  { %v2750_v6 = vmul.f32 %v4536_v63, %v2748_v5 }
0x239a   :  { %v2751_v7 = vpack.c.bf16 %v2750_v6, %v2750_v6 }
0x239c   :  { %2753 = vrot.lane.b32.xlu0 %v2751_v7, %s4916_s12 }
0x240e   :  { %v2754_v8 = vpop.permute.xlu0 %2753 }
0x240f   :  { %4286 = vmatmul.mubr.msk.bf16.vlgmr.msra.gmra.mrb[64].mxu1 %vm652_vm5, %v2754_v8 }
0x2410   :  { %4296 = vmatpush3.bf16.msra.mxu1 %v5443_v25  ;;  %4299 = vmatprep.mubr.msk.bf16.mxu1 %vm4914_vm4, %v4913_v15 }
0x2411   :  { %4297 = vmatprep.subr.bf16.mxu1 %v4913_v15 }
0x2414   :  { %4298 = vmatpush3.bf16.msra.mxu1 %v5448_v26 }
0x2415   :  { %4311 = vmatprep.subr.bf16.mxu1 %v4913_v15 }
0x24e2   :  { %v2792_v9 = vpop.f32.mrb[64].mxu1 }
0x24e3   :  { %v2798_v10 = vsel %vm5505_vm7, %v2792_v9, -1e+30  ;;  %v4287_v11 = vpop.f32.mrb[65].mxu1 }
0x24e4   :  { %v2795_v13 = vpop.f32.mrb[66].mxu1  ;;  %v2799_v38 = vsel %vm2372_vm8, %v2798_v10, -inf }
0x24e5   :  { %2800 = vmax.xlane.f32.xlu1 %v2799_v38  ;;  %v4288_v14 = vpop.f32.mrb[67].mxu1 }
0x2572   :  { %v2801_v16 = vpop.xlane.xlu1 %2800 }
0x2573   :  { %v2802_v17 = vsub.f32 %v2798_v10, %v2801_v16 }
0x2575   :  { %v2803_v12 = vmul.f32 1.442695, %v2802_v17 }
0x2577   :  { %4539 = vpow2.f32 %v2803_v12 }
0x2581   :  { %v4540_v46 = vpop.eup %4539 }
0x2582   :  { %v2805_v19 = vsel %vm2372_vm8, %v4540_v46, 0.0 }
0x2583   :  { %2806 = vadd.xlane.f32.xlu0 %v2805_v19 }
0x2610   :  { %v2807_v20 = vpop.xlane.xlu0 %2806 }
0x2611   :  { %v2808_v22 = vadd.f32 1e-16, %v2807_v20 }
0x2613   :  { %4541 = vrcp.f32 %v2808_v22 }
0x261d   :  { %v4542_v23 = vpop.eup %4541 }
0x261e   :  { %v2810_v24 = vmul.f32 %v4542_v23, %v4540_v46 }
0x2620   :  { %v2811_v48 = vpack.c.bf16 %v2810_v24, %v2810_v24 }
0x2622   :  { %4292 = vmatmul.mubr.msk.bf16.vlgmr.msra.gmra.mrb[88].mxu0 %vm585_vm2, %v2811_v48 }
0x2623   :  { %4304 = vmatpush3.bf16.msra.mxu0 %v5458_v41  ;;  %4307 = vmatprep.mubr.msk.bf16.mxu0 %vm4914_vm4, %v4913_v15 }
0x2624   :  { %4305 = vmatprep.subr.bf16.mxu0 %v4913_v15 }
0x2627   :  { %4306 = vmatpush3.bf16.msra.mxu0 %v5465_v44 }
0x2628   :  { %4319 = vmatprep.subr.bf16.mxu0 %v4913_v15 }
0x262a   :  { %4308 = vmatmul.mubr.msk.bf16.vlgmr.msra.gmra.mrb[92].mxu0 %vm652_vm5, %v2754_v8 }
0x262b   :  { %4320 = vmatpush3.bf16.msra.mxu0 %v5475_v60  ;;  %4321 = vmatprep.mubr.msk.bf16.mxu0 %vm4914_vm4, %v4913_v15 }
0x262c   :  { %4333 = vmatprep.subr.bf16.mxu0 %v4913_v15 }
0x26f5   :  { %v2849_v40 = vpop.f32.mrb[88].mxu0 }
0x26f6   :  { %v2855_v43 = vpack.c.bf16 %v2849_v40, %v2849_v40  ;;  %v4293_v27 = vpop.f32.mrb[89].mxu0 }
0x26f7   :  { %v2852_v28 = vpop.f32.mrb[90].mxu0 }
0x26f8   :  { %v4294_v29 = vpop.f32.mrb[91].mxu0  ;;  %4300 = vmatmul.mubr.msk.bf16.vlgmr.msra.gmra.mrb[68].mxu1 %vm652_vm5, %v2855_v43 }
0x26f9   :  { %4312 = vmatpush3.bf16.msra.mxu1 %v5489_v18  ;;  %4315 = vmatprep.mubr.msk.bf16.mxu1 %vm4914_vm4, %v4913_v15 }
0x26fa   :  { %4313 = vmatprep.subr.bf16.mxu1 %v4913_v15 }
0x26fd   :  { %4314 = vmatpush3.bf16.msra.mxu1 %v5493_v21  ;;  %v2933_v30 = vpop.f32.mrb[92].mxu0 }
0x26fe   :  { %v4309_v31 = vpop.f32.mrb[93].mxu0  ;;  %4325 = vmatprep.subr.bf16.mxu1 %v4913_v15 }
0x26ff   :  { %v2936_v34 = vpop.f32.mrb[94].mxu0 }
0x2700   :  { %v4310_v35 = vpop.f32.mrb[95].mxu0 }
0x27cb   :  { %v2893_v3 = vpop.f32.mrb[68].mxu1 }
0x27cc   :  { %v2934_v36 = vadd.f32 %v2933_v30, %v2893_v3  ;;  %v4301_v39 = vpop.f32.mrb[69].mxu1 }
0x27cd   :  { %v2896_v42 = vpop.f32.mrb[70].mxu1 }
0x27ce   :  { %v2939_v45 = vadd.f32 %v5477_v61, %v2934_v36  ;;  %v4302_v47 = vpop.f32.mrb[71].mxu1 }
0x27d0   :  { %4543 = vtanh.f32 %v2939_v45  ;;  %v3854_v51 = vmul.f32 -1.442695, %v2939_v45 }
0x27d2   :  { %4545 = vpow2.f32 %v3854_v51 }
0x27da   :  { %v4544_v50 = vpop.eup %4543 }
0x27db   :  { %2949 = vrot.lane.b32.xlu0 %v4544_v50, %s4898_s2 }
0x27dc   :  { %v4546_v52 = vpop.eup %4545 }
0x27dd   :  { %v2943_v53 = vadd.f32 1.0, %v4546_v52 }
0x27df   :  { %4547 = vrcp.f32 %v2943_v53 }
0x27e9   :  { %v4548_v37 = vpop.eup %4547 }
0x27ea   :  { %v2947_v56 = vmul.f32 %v4548_v37, %v5575_v2 }
0x284d   :  { %v2950_v54 = vpop.permute.xlu0 %2949 }
0x284e   :  { %v2952_v55 = vmul.f32 %v4548_v37, %v2950_v54 }
0x2850   :  { %2954 = vrot.lane.b32.xlu1 %v2952_v55, %s4916_s12 }
0x28c2   :  { %v2955_v57 = vpop.permute.xlu1 %2954 }
0x28c3   :  { %v5614_v58 = vadd.f32 %v2955_v57, %v2947_v56 }
0x28c5   :  { %4549 = vtanh.f32 %v5614_v58 }
0x28cf   :  { %v4550_v59 = vpop.eup %4549 }
0x28d0   :  { %2960 = vrot.lane.b32.xlu1 %v4550_v59, %s4898_s2 }
0x2942   :  { %v2961_v62 = vpop.permute.xlu1 %2960 }
0x2943   :  { %v2963_v63 = vmul.f32 %v4548_v37, %v2961_v62 }
0x2945   :  { %v2964_v32 = vpack.c.bf16 %v2963_v63, %v2963_v63 }
0x2947   :  { %2966 = vrot.lane.b32.xlu0 %v2964_v32, %s4916_s12 }
0x29b9   :  { %v2967_v33 = vpop.permute.xlu0 %2966 }
0x29ba   :  { %4316 = vmatmul.mubr.msk.bf16.vlgmr.msra.gmra.mrb[72].mxu1 %vm652_vm5, %v2967_v33 }
0x29bb   :  { %4326 = vmatpush3.bf16.msra.mxu1 %v5443_v25  ;;  %4329 = vmatprep.mubr.msk.bf16.mxu1 %vm4914_vm4, %v4913_v15 }
0x29bc   :  { %4327 = vmatprep.subr.bf16.mxu1 %v4913_v15 }
0x29bf   :  { %4328 = vmatpush3.bf16.msra.mxu1 %v5448_v26 }
0x29c0   :  { %4341 = vmatprep.subr.bf16.mxu1 %v4913_v15 }
0x2a8d   :  { %v3005_v0 = vpop.f32.mrb[72].mxu1 }
0x2a8e   :  { %v3011_v1 = vsel %vm5505_vm7, %v3005_v0, -1e+30  ;;  %v4317_v2 = vpop.f32.mrb[73].mxu1 }
0x2a8f   :  { %v3008_v4 = vpop.f32.mrb[74].mxu1  ;;  %v3012_v5 = vsel %vm2372_vm8, %v3011_v1, -inf }
0x2a90   :  { %3013 = vmax.xlane.f32.xlu1 %v3012_v5  ;;  %v4318_v6 = vpop.f32.mrb[75].mxu1 }
0x2b1d   :  { %v3014_v7 = vpop.xlane.xlu1 %3013 }
0x2b1e   :  { %v3015_v8 = vsub.f32 %v3011_v1, %v3014_v7 }
0x2b20   :  { %v3016_v9 = vmul.f32 1.442695, %v3015_v8 }
0x2b22   :  { %4551 = vpow2.f32 %v3016_v9 }
0x2b2c   :  { %v4552_v10 = vpop.eup %4551 }
0x2b2d   :  { %v3018_v11 = vsel %vm2372_vm8, %v4552_v10, 0.0 }
0x2b2e   :  { %3019 = vadd.xlane.f32.xlu0 %v3018_v11 }
0x2bbb   :  { %v3020_v13 = vpop.xlane.xlu0 %3019 }
0x2bbc   :  { %v3021_v38 = vadd.f32 1e-16, %v3020_v13 }
0x2bbe   :  { %4553 = vrcp.f32 %v3021_v38 }
0x2bc8   :  { %v4554_v14 = vpop.eup %4553 }
0x2bc9   :  { %v3023_v16 = vmul.f32 %v4554_v14, %v4552_v10 }
0x2bcb   :  { %v3024_v17 = vpack.c.bf16 %v3023_v16, %v3023_v16 }
0x2bcd   :  { %4322 = vmatmul.mubr.msk.bf16.vlgmr.msra.gmra.mrb[96].mxu0 %vm585_vm2, %v3024_v17 }
0x2bce   :  { %4334 = vmatpush3.bf16.msra.mxu0 %v5458_v41  ;;  %4337 = vmatprep.mubr.msk.bf16.mxu0 %vm4914_vm4, %v4913_v15 }
0x2bcf   :  { %4335 = vmatprep.subr.bf16.mxu0 %v4913_v15 }
0x2bd2   :  { %4336 = vmatpush3.bf16.msra.mxu0 %v5465_v44 }
0x2bd3   :  { %4349 = vmatprep.subr.bf16.mxu0 %v4913_v15 }
0x2bd5   :  { %4338 = vmatmul.mubr.msk.bf16.vlgmr.msra.gmra.mrb[100].mxu0 %vm652_vm5, %v2967_v33 }
0x2bd6   :  { %4350 = vmatpush3.bf16.msra.mxu0 %v5475_v60  ;;  %4351 = vmatprep.mubr.msk.bf16.mxu0 %vm4914_vm4, %v4913_v15 }
0x2bd7   :  { %4363 = vmatprep.subr.bf16.mxu0 %v4913_v15 }
0x2ca0   :  { %v3062_v12 = vpop.f32.mrb[96].mxu0 }
0x2ca1   :  { %v3068_v46 = vpack.c.bf16 %v3062_v12, %v3062_v12  ;;  %v4323_v19 = vpop.f32.mrb[97].mxu0 }
0x2ca2   :  { %v3065_v20 = vpop.f32.mrb[98].mxu0 }
0x2ca3   :  { %v4324_v22 = vpop.f32.mrb[99].mxu0  ;;  %4330 = vmatmul.mubr.msk.bf16.vlgmr.msra.gmra.mrb[76].mxu1 %vm652_vm5, %v3068_v46 }
0x2ca4   :  { %4342 = vmatpush3.bf16.msra.mxu1 %v5489_v18  ;;  %4345 = vmatprep.mubr.msk.bf16.mxu1 %vm4914_vm4, %v4913_v15 }
0x2ca5   :  { %4343 = vmatprep.subr.bf16.mxu1 %v4913_v15 }
0x2ca8   :  { %4344 = vmatpush3.bf16.msra.mxu1 %v5493_v21  ;;  %v3146_v23 = vpop.f32.mrb[100].mxu0 }
0x2ca9   :  { %v4339_v24 = vpop.f32.mrb[101].mxu0  ;;  %4355 = vmatprep.subr.bf16.mxu1 %v4913_v15 }
0x2caa   :  { %v3149_v48 = vpop.f32.mrb[102].mxu0 }
0x2cab   :  { %v4340_v40 = vpop.f32.mrb[103].mxu0 }
0x2d76   :  { %v3106_v43 = vpop.f32.mrb[76].mxu1 }
0x2d77   :  { %v3147_v27 = vadd.f32 %v3146_v23, %v3106_v43  ;;  %v4331_v28 = vpop.f32.mrb[77].mxu1 }
0x2d78   :  { %v3109_v29 = vpop.f32.mrb[78].mxu1 }
0x2d79   :  { %v3152_v30 = vadd.f32 %v5477_v61, %v3147_v27  ;;  %v4332_v31 = vpop.f32.mrb[79].mxu1 }
0x2d7b   :  { %4555 = vtanh.f32 %v3152_v30  ;;  %v3859_v35 = vmul.f32 -1.442695, %v3152_v30 }
0x2d7d   :  { %4557 = vpow2.f32 %v3859_v35 }
0x2d85   :  { %v4556_v34 = vpop.eup %4555 }
0x2d86   :  { %3162 = vrot.lane.b32.xlu0 %v4556_v34, %s4898_s2 }
0x2d87   :  { %v4558_v3 = vpop.eup %4557 }
0x2d88   :  { %v3156_v36 = vadd.f32 1.0, %v4558_v3 }
0x2d8a   :  { %4559 = vrcp.f32 %v3156_v36 }
0x2d94   :  { %v4560_v39 = vpop.eup %4559 }
0x2d95   :  { %v3160_v47 = vmul.f32 %v4560_v39, %v5614_v58 }
0x2df8   :  { %v3163_v42 = vpop.permute.xlu0 %3162 }
0x2df9   :  { %v3165_v45 = vmul.f32 %v4560_v39, %v3163_v42 }
0x2dfb   :  { %3167 = vrot.lane.b32.xlu1 %v3165_v45, %s4916_s12 }
0x2e6d   :  { %v3168_v50 = vpop.permute.xlu1 %3167 }
0x2e6e   :  { %v5653_v51 = vadd.f32 %v3168_v50, %v3160_v47 }
0x2e70   :  { %4561 = vtanh.f32 %v5653_v51 }
0x2e7a   :  { %v4562_v52 = vpop.eup %4561 }
0x2e7b   :  { %3173 = vrot.lane.b32.xlu1 %v4562_v52, %s4898_s2  ;;  %v4503_v52 = vld [vmem:[#allocation22] sm:$0xff]  }
0x2eed   :  { %v3174_v53 = vpop.permute.xlu1 %3173 }
0x2eee   :  { %v3176_v37 = vmul.f32 %v4560_v39, %v3174_v53 }
0x2ef0   :  { %v3177_v54 = vpack.c.bf16 %v3176_v37, %v3176_v37 }
0x2ef2   :  { %3179 = vrot.lane.b32.xlu0 %v3177_v54, %s4916_s12 }
0x2f64   :  { %v3180_v55 = vpop.permute.xlu0 %3179 }
0x2f65   :  { %4346 = vmatmul.mubr.msk.bf16.vlgmr.msra.gmra.mrb[80].mxu1 %vm652_vm5, %v3180_v55 }
0x2f66   :  { %4356 = vmatpush3.bf16.msra.mxu1 %v5443_v25  ;;  %4359 = vmatprep.mubr.msk.bf16.mxu1 %vm4914_vm4, %v4913_v15 }
0x2f67   :  { %4357 = vmatprep.subr.bf16.mxu1 %v4913_v15 }
0x2f6a   :  { %4358 = vmatpush3.bf16.msra.mxu1 %v5448_v26 }
0x2f6b   :  { %4371 = vmatprep.subr.bf16.mxu1 %v4913_v15 }
0x3038   :  { %v3218_v56 = vpop.f32.mrb[80].mxu1 }
0x3039   :  { %v3224_v57 = vsel %vm5505_vm7, %v3218_v56, -1e+30  ;;  %v4347_v58 = vpop.f32.mrb[81].mxu1 }
0x303a   :  { %v3221_v59 = vpop.f32.mrb[82].mxu1  ;;  %v3225_v62 = vsel %vm2372_vm8, %v3224_v57, -inf  ;;  %v4504_v58 = vld [vmem:[#allocation22 + $0x8] sm:$0xff]  }
0x303b   :  { %3226 = vmax.xlane.f32.xlu1 %v3225_v62  ;;  %v4348_v63 = vpop.f32.mrb[83].mxu1 }
0x30c8   :  { %v3227_v25 = vpop.xlane.xlu1 %3226 }
0x30c9   :  { %v3228_v32 = vsub.f32 %v3224_v57, %v3227_v25  ;;  %v4502_v57 = vld [vmem:[%s5760_s17 + $0x8] sm:$0xff]  }
0x30cb   :  { %v3229_v33 = vmul.f32 1.442695, %v3228_v32 }
0x30cd   :  { %4563 = vpow2.f32 %v3229_v33 }
0x30d7   :  { %v4564_v0 = vpop.eup %4563 }
0x30d8   :  { %v3231_v1 = vsel %vm2372_vm8, %v4564_v0, 0.0 }
0x30d9   :  { %3232 = vadd.xlane.f32.xlu0 %v3231_v1 }
0x3166   :  { %v3233_v26 = vpop.xlane.xlu0 %3232 }
0x3167   :  { %v3234_v2 = vadd.f32 1e-16, %v3233_v26 }
0x3169   :  { %4565 = vrcp.f32 %v3234_v2  ;;  %v4505_v2 = vld [vmem:[%s5763_s20] sm:$0xff]  }
0x3173   :  { %v4566_v4 = vpop.eup %4565 }
0x3174   :  { %v3236_v5 = vmul.f32 %v4566_v4, %v4564_v0  ;;  %v4506_v4 = vld [vmem:[%s5763_s20 + $0x8] sm:$0xff]   ;;  %s4917_s20 = smov [#allocation24]  }
0x3175   :  { %s3694_s1 = sshll.u32 %s4917_s20, 4  ;;  %s3695_s1 = int_to_ptr.vmem [resolvable:$true] %s3694_s1 }
0x3176   :  { %v3237_v6 = vpack.c.bf16 %v3236_v5, %v3236_v5  ;;  %p4858_p2 = scmp.lt.s32.totalorder %s3695_s1, %s3695_s1 }
0x3178   :  { %4352 = vmatmul.mubr.msk.bf16.vlgmr.msra.gmra.mrb[104].mxu0 %vm585_vm2, %v3237_v6  ;;  %v3873_v6 = vld [vmem:[%s5762_s19] ss:$0 sm:$0xff]  ;;  %s4853_s19 = scalar_lea.vmem %s3695_s1, 32 }
0x3179   :  { %4364 = vmatpush3.bf16.msra.mxu0 %v5458_v41  ;;  %4367 = vmatprep.mubr.msk.bf16.mxu0 %vm4914_vm4, %v4913_v15  ;;  %p4854_p1 = scmp.ne.s32.totalorder %s3695_s1, %s4853_s19  ;;  %p4859_p3 = scmp.lt.s32.totalorder %s4853_s19, %s4853_s19 }
0x317a   :  { %4365 = vmatprep.subr.bf16.mxu0 %v4913_v15 }
0x317b   :  { %p4860_p4 = por %p4859_p3, %p4858_p2 }
0x317d   :  { %4366 = vmatpush3.bf16.msra.mxu0 %v5465_v44  ;;  %p4861_p5 = pnand %p4860_p4, %p4854_p1 }
0x317e   :  { %4379 = vmatprep.subr.bf16.mxu0 %v4913_v15 }
0x3180   :  { %4368 = vmatmul.mubr.msk.bf16.vlgmr.msra.gmra.mrb[108].mxu0 %vm652_vm5, %v3180_v55  ;;  %v4501_v55 = vld [vmem:[%s5760_s17] sm:$0xff]  }
0x3181   :  { %4380 = vmatpush3.bf16.msra.mxu0 %v5475_v60  ;;  %4381 = vmatprep.mubr.msk.bf16.mxu0 %vm4914_vm4, %v4913_v15 }
0x3182   :  { %4393 = vmatprep.subr.bf16.mxu0 %v4913_v15 }
0x324b   :  { %v3275_v7 = vpop.f32.mrb[104].mxu0 }
0x324c   :  { %v3281_v41 = vpack.c.bf16 %v3275_v7, %v3275_v7  ;;  %v4353_v8 = vpop.f32.mrb[105].mxu0 }
0x324d   :  { %v3278_v9 = vpop.f32.mrb[106].mxu0 }
0x324e   :  { %v4354_v10 = vpop.f32.mrb[107].mxu0  ;;  %4360 = vmatmul.mubr.msk.bf16.vlgmr.msra.gmra.mrb[84].mxu1 %vm652_vm5, %v3281_v41 }
0x324f   :  { %4372 = vmatpush3.bf16.msra.mxu1 %v5489_v18  ;;  %4375 = vmatprep.mubr.msk.bf16.mxu1 %vm4914_vm4, %v4913_v15 }
0x3250   :  { %4373 = vmatprep.subr.bf16.mxu1 %v4913_v15 }
0x3253   :  { %4374 = vmatpush3.bf16.msra.mxu1 %v5493_v21  ;;  %v3359_v44 = vpop.f32.mrb[108].mxu0 }
0x3254   :  { %v4369_v60 = vpop.f32.mrb[109].mxu0  ;;  %4385 = vmatprep.subr.bf16.mxu1 %v4913_v15 }
0x3255   :  { %v3362_v11 = vpop.f32.mrb[110].mxu0 }
0x3256   :  { %v4370_v13 = vpop.f32.mrb[111].mxu0 }
0x3321   :  { %v3319_v38 = vpop.f32.mrb[84].mxu1 }
0x3322   :  { %v3360_v14 = vadd.f32 %v3359_v44, %v3319_v38  ;;  %v4361_v16 = vpop.f32.mrb[85].mxu1 }
0x3323   :  { %v3322_v17 = vpop.f32.mrb[86].mxu1 }
0x3324   :  { %v3365_v12 = vadd.f32 %v5477_v61, %v3360_v14  ;;  %v4362_v18 = vpop.f32.mrb[87].mxu1 }
0x3326   :  { %4567 = vtanh.f32 %v3365_v12  ;;  %v3864_v19 = vmul.f32 -1.442695, %v3365_v12 }
0x3328   :  { %4569 = vpow2.f32 %v3864_v19 }
0x3330   :  { %v4568_v46 = vpop.eup %4567 }
0x3331   :  { %3375 = vrot.lane.b32.xlu0 %v4568_v46, %s4898_s2 }
0x3332   :  { %v4570_v21 = vpop.eup %4569 }
0x3333   :  { %v3369_v20 = vadd.f32 1.0, %v4570_v21 }
0x3335   :  { %4571 = vrcp.f32 %v3369_v20 }
0x333f   :  { %v4572_v22 = vpop.eup %4571 }
0x3340   :  { %v3373_v48 = vmul.f32 %v4572_v22, %v5653_v51 }
0x33a3   :  { %v3376_v23 = vpop.permute.xlu0 %3375 }
0x33a4   :  { %v3378_v24 = vmul.f32 %v4572_v22, %v3376_v23 }
0x33a6   :  { %3380 = vrot.lane.b32.xlu1 %v3378_v24, %s4916_s12 }
0x3418   :  { %v3381_v40 = vpop.permute.xlu1 %3380 }
0x3419   :  { %v3383_v43 = vadd.f32 %v3381_v40, %v3373_v48 }
0x341b   :  { %4573 = vtanh.f32 %v3383_v43 }
0x3425   :  { %v4574_v61 = vpop.eup %4573 }
0x3426   :  { %3386 = vrot.lane.b32.xlu1 %v4574_v61, %s4898_s2 }
0x3498   :  { %v3387_v27 = vpop.permute.xlu1 %3386 }
0x3499   :  { %v3389_v28 = vmul.f32 %v4572_v22, %v3387_v27 }
0x349b   :  { %v3390_v29 = vpack.c.bf16 %v3389_v28, %v3389_v28 }
0x349d   :  { %3392 = vrot.lane.b32.xlu0 %v3390_v29, %s4916_s12 }
0x350f   :  { %v3393_v30 = vpop.permute.xlu0 %3392 }
0x3510   :  { %4376 = vmatmul.mubr.msk.bf16.vlgmr.msra.gmra.mrb[88].mxu1 %vm652_vm5, %v3393_v30 }
0x3511   :  { %4389 = vmatprep.mubr.msk.bf16.mxu1 %vm4914_vm4, %v4913_v15  ;;  %4386 = vmatpush3.bf16.msra.mxu1 %v4503_v52 }
0x3512   :  { %4387 = vmatprep.subr.bf16.mxu1 %v4913_v15 }
0x3515   :  { %4388 = vmatpush3.bf16.msra.mxu1 %v4504_v58 }
0x3516   :  { %4401 = vmatprep.subr.bf16.mxu1 %v4913_v15 }
0x35e3   :  { %v3431_v31 = vpop.f32.mrb[88].mxu1 }
0x35e4   :  { %v3437_v34 = vsel %vm5505_vm7, %v3431_v31, -1e+30  ;;  %v4377_v35 = vpop.f32.mrb[89].mxu1 }
0x35e5   :  { %v3434_v3 = vpop.f32.mrb[90].mxu1  ;;  %v3438_v36 = vsel %vm2372_vm8, %v3437_v34, -inf }
0x35e6   :  { %3439 = vmax.xlane.f32.xlu1 %v3438_v36  ;;  %v4378_v39 = vpop.f32.mrb[91].mxu1 }
0x3673   :  { %v3440_v42 = vpop.xlane.xlu1 %3439 }
0x3674   :  { %v3441_v45 = vsub.f32 %v3437_v34, %v3440_v42 }
0x3676   :  { %v3442_v47 = vmul.f32 1.442695, %v3441_v45 }
0x3678   :  { %4575 = vpow2.f32 %v3442_v47 }
0x3682   :  { %v4576_v50 = vpop.eup %4575 }
0x3683   :  { %v3444_v51 = vsel %vm2372_vm8, %v4576_v50, 0.0 }
0x3684   :  { %3445 = vadd.xlane.f32.xlu0 %v3444_v51 }
0x3711   :  { %v3446_v49 = vpop.xlane.xlu0 %3445 }
0x3712   :  { %v3447_v53 = vadd.f32 1e-16, %v3446_v49 }
0x3714   :  { %4577 = vrcp.f32 %v3447_v53 }
0x371e   :  { %v4578_v37 = vpop.eup %4577 }
0x371f   :  { %v3449_v54 = vmul.f32 %v4578_v37, %v4576_v50 }
0x3721   :  { %v3450_v56 = vpack.c.bf16 %v3449_v54, %v3449_v54 }
0x3723   :  { %4382 = vmatmul.mubr.msk.bf16.vlgmr.msra.gmra.mrb[112].mxu0 %vm585_vm2, %v3450_v56 }
0x3724   :  { %4394 = vmatpush3.bf16.msra.mxu0 %v4501_v55  ;;  %4397 = vmatprep.mubr.msk.bf16.mxu0 %vm4914_vm4, %v4913_v15 }
0x3725   :  { %4395 = vmatprep.subr.bf16.mxu0 %v4913_v15 }
0x3728   :  { %4396 = vmatpush3.bf16.msra.mxu0 %v4502_v57 }
0x372b   :  { %4398 = vmatmul.mubr.msk.bf16.vlgmr.msra.gmra.mrb[116].mxu0 %vm652_vm5, %v3393_v30 }
0x37f6   :  { %v3488_v59 = vpop.f32.mrb[112].mxu0 }
0x37f7   :  { %v3498_v62 = vpack.c.bf16 %v3488_v59, %v3488_v59  ;;  %v4383_v63 = vpop.f32.mrb[113].mxu0 }
0x37f8   :  { %v3491_v25 = vpop.f32.mrb[114].mxu0 }
0x37f9   :  { %v4384_v32 = vpop.f32.mrb[115].mxu0  ;;  %4390 = vmatmul.mubr.msk.bf16.vlgmr.msra.gmra.mrb[92].mxu1 %vm652_vm5, %v3498_v62 }
0x37fa   :  { %4405 = vmatprep.mubr.msk.bf16.mxu1 %vm4914_vm4, %v4913_v15  ;;  %4402 = vmatpush3.bf16.msra.mxu1 %v4505_v2 }
0x37fb   :  { %4403 = vmatprep.subr.bf16.mxu1 %v4913_v15  ;;  %v3874_v15 = vld [vmem:[%s5764_s21] ss:$0 sm:$0xff] }
0x37fe   :  { %v3604_v33 = vpop.f32.mrb[116].mxu0  ;;  %4404 = vmatpush3.bf16.msra.mxu1 %v4506_v4 }
0x37ff   :  { %v4399_v0 = vpop.f32.mrb[117].mxu0 }
0x3800   :  { %v3607_v1 = vpop.f32.mrb[118].mxu0 }
0x3801   :  { %v4400_v26 = vpop.f32.mrb[119].mxu0 }
0x38cc   :  { %v3552_v5 = vpop.f32.mrb[92].mxu1 }
0x38cd   :  { %v3605_v7 = vadd.f32 %v3604_v33, %v3552_v5  ;;  %v4391_v41 = vpop.f32.mrb[93].mxu1 }
0x38ce   :  { %v3555_v8 = vpop.f32.mrb[94].mxu1 }
0x38cf   :  { %v3617_v9 = vadd.f32 %v3873_v6, %v3605_v7  ;;  %v4392_v10 = vpop.f32.mrb[95].mxu1 }
0x38d1   :  { %v3618_v44 = vmax.f32 %v3617_v9, 0.0 }
0x38d3   :  { %v3619_v60 = vpack.c.bf16 %v3618_v44, %v3618_v44 }
0x38d5   :  { %4406 = vmatmul.mubr.msk.bf16.vlgmr.msra.gmra.mrb[96].mxu1 %vm652_vm5, %v3619_v60 }
0x39a8   :  { %v3680_v11 = vpop.f32.mrb[96].mxu1 }
0x39a9   :  { %v3681_v13 = vadd.f32 %v3874_v15, %v3680_v11  ;;  %v4407_v38 = vpop.f32.mrb[97].mxu1 }
0x39aa   :  { %v3683_v14 = vpop.f32.mrb[98].mxu1 }
0x39ab   :  { %v4408_v16 = vpop.f32.mrb[99].mxu1  ;;  %3687 = vst.msk [vmem:[#allocation24] sm:$0x3] %vm3686_vm9, %v3681_v13 }
0x39ac   :  { %4864 = shalt.err (!%p4861_p5)
}
0x39ad   :  { %s4865_s21 = scalar_lea.hbm %s5765_s22, 32 }
0x39ae   :  { %p4866_p6 = scmp.ne.s32.totalorder %s5765_s22, %s4865_s21  ;;  %p4869_p7 = scmp.lt.u32.totalorder %s4865_s21, %s5765_s22 }
0x39b0   :  { %p4871_p8 = pnand %p4869_p7, %p4866_p6 }
0x39b2   :  { %4874 = shalt.err (!%p4871_p8)
}
0x39b3   :  { %3697 = dma.vmem_to_hbm [thread:$0]  %s3695_s1, 32, %s5765_s22, [#allocation4]  }
0x39b4   :  { %4891 = dma.done.wait [#allocation4], 32  }
0x39b5   :  { %4892 = vsyncadd [#allocation4], 4294967264 }
0x39b6   :  { %3701 = vsyncpa [#allocation3], 1 }
0x39b7   :  { %3702 = vsyncpa [#allocation8], 1 }
0x39b8   :  { %3703 = vsyncpa [#allocation11], 1 }
0x39b9   :  { %3704 = vsyncpa [#allocation14], 1 }
0x39ba   :  { %3705 = vsyncpa [#allocation17], 1 }
0x39bb   :  { %3706 = vsyncpa [#allocation20], 1 }
0x39bc   :  { %3707 = vsyncpa [#allocation23], 1 }
0x39bd   :  { %3708 = vsyncpa [#allocation4], 1 }
0x39be   :  { %3709 = vsyncpa [#allocation5], 1 }

</bundles_post_ra>
